<compile_context>
chip_gen: v7x
topology: tpu7x:2x2x1
jax: 0.10.0
libtpu: 0.0.40
codegen_flags: <defaults>
</compile_context>

<pallas_src>
import functools

import jax
import jax.numpy as jnp
from jax.experimental import pallas as pl
from jax.experimental.pallas import tpu as pltpu

BN_EPS = 1e-5
_VMEM_LIMIT = 32 * 1024 * 1024


def _round_up(x, m):
    return ((x + m - 1) // m) * m


# ----------------------------- Pallas kernels -----------------------------

def _block_kernel(p_ref, w_ref, g_ref, b_ref, o_ref, *, groups, inv_count):
    """Fused: (M,K)@(K,groups*Cout) matmul -> per-channel batch stats ->
    BN affine -> ReLU.  Columns are grouped (phase/position, channel)."""
    # MXU matmul, bf16 operands, f32 accumulation.
    y = jnp.dot(p_ref[...], w_ref[...], preferred_element_type=jnp.float32)
    _, cfull = y.shape
    cout = cfull // groups

    # Column sums / sums of squares (cross-sublane reduce), then pool the
    # `groups` column groups so stats are per physical output channel.
    cs = jnp.sum(y, axis=0, keepdims=True)          # (1, groups*Cout)
    cq = jnp.sum(y * y, axis=0, keepdims=True)
    s = cs[:, 0:cout]
    q = cq[:, 0:cout]
    for g in range(1, groups):
        s = s + cs[:, g * cout:(g + 1) * cout]
        q = q + cq[:, g * cout:(g + 1) * cout]

    mean = s * inv_count
    var = jnp.maximum(q * inv_count - mean * mean, 0.0)   # clamp: no NaN rsqrt
    scale = g_ref[...] * jax.lax.rsqrt(var + BN_EPS)       # (1, Cout)
    shift = b_ref[...] - mean * scale
    scale_f = jnp.tile(scale, (1, groups))                 # (1, groups*Cout)
    shift_f = jnp.tile(shift, (1, groups))
    o_ref[...] = jnp.maximum(y * scale_f + shift_f, 0.0)


def _final_kernel(w_ref, p_ref, b_ref, o_ref):
    """Transposed final layer: (4*Cimg, K) @ (K, TM) + bias -> tanh.
    Output tile is lane-dense along M."""
    y = jnp.dot(w_ref[...], p_ref[...], preferred_element_type=jnp.float32)
    o_ref[...] = jnp.tanh(y + b_ref[...])


# ----------------------------- Pallas wrappers -----------------------------

def fused_block(patches, wmat, gamma, beta, groups):
    """patches (M, K) f32, wmat (K, groups*Cout) f32 -> (M, groups*Cout) f32.

    Whole block fits in VMEM at these sizes, so a single grid step keeps the
    pre-BN activation resident (no HBM round trip between matmul/stats/BN)."""
    m, k = patches.shape
    cfull = wmat.shape[1]
    cout = cfull // groups
    kern = functools.partial(_block_kernel, groups=groups,
                             inv_count=1.0 / float(m * groups))
    return pl.pallas_call(
        kern,
        out_shape=jax.ShapeDtypeStruct((m, cfull), jnp.float32),
        grid=(1,),
        in_specs=[pl.BlockSpec((m, k), lambda i: (0, 0)),
                  pl.BlockSpec((k, cfull), lambda i: (0, 0)),
                  pl.BlockSpec((1, cout), lambda i: (0, 0)),
                  pl.BlockSpec((1, cout), lambda i: (0, 0))],
        out_specs=pl.BlockSpec((m, cfull), lambda i: (0, 0)),
        compiler_params=pltpu.CompilerParams(
            dimension_semantics=("arbitrary",),
            vmem_limit_bytes=_VMEM_LIMIT),
    )(patches.astype(jnp.bfloat16), wmat.astype(jnp.bfloat16),
      gamma.reshape(1, cout).astype(jnp.float32),
      beta.reshape(1, cout).astype(jnp.float32))


def fused_final(wt, pt, bias_col):
    """wt (4*Cimg, K), pt (K, M), bias_col (4*Cimg, 1) -> (4*Cimg, M).

    Grid tiles the lane-dense M dimension ("parallel", >=2 steps here so
    dual-TensorCore chips can shard it)."""
    cfull, k = wt.shape
    m = pt.shape[1]
    tm = min(512, _round_up(m, 128))
    mp = _round_up(m, tm)
    if mp != m:
        pt = jnp.pad(pt, ((0, 0), (0, mp - m)))
    out = pl.pallas_call(
        _final_kernel,
        out_shape=jax.ShapeDtypeStruct((cfull, mp), jnp.float32),
        grid=(mp // tm,),
        in_specs=[pl.BlockSpec((cfull, k), lambda i: (0, 0)),
                  pl.BlockSpec((k, tm), lambda i: (0, i)),
                  pl.BlockSpec((cfull, 1), lambda i: (0, 0))],
        out_specs=pl.BlockSpec((cfull, tm), lambda i: (0, i)),
        compiler_params=pltpu.CompilerParams(
            dimension_semantics=("parallel",),
            vmem_limit_bytes=_VMEM_LIMIT),
    )(wt.astype(jnp.bfloat16), pt.astype(jnp.bfloat16),
      bias_col.astype(jnp.float32))
    return out[:, :m]


# -------------------- sub-pixel lowering of ConvTranspose2d ------------------
# ConvTranspose2d(k=4, stride=2, pad=1): output pixel (2m+r, 2l+s) is a 2x2
# stride-1 conv over the input zero-padded by 1.  _TAPS[r] maps 3x3-window row
# offset `a` -> kernel row index kh used by phase r (offsets not listed
# contribute zero for that phase).
# TODO(synk): window gathering / pixel-shuffle reshapes stay in XLA glue; they
# could be folded into the kernels with in-kernel window slicing if these
# layers ever dominate.
_TAPS = ({0: 3, 1: 1}, {1: 2, 2: 0})


def subpixel_weight(w):
    """ConvTranspose2d weight (Cin, Cout, 4, 4), s=2, p=1 -> (9*Cin, 4*Cout).
    Rows ordered (a, b, ci) over the 3x3 window; cols ordered (r, s, co)."""
    cin, cout = w.shape[0], w.shape[1]
    zero = jnp.zeros((cin, cout), w.dtype)
    phase_cols = []
    for r in (0, 1):
        for s in (0, 1):
            rows = []
            for a in range(3):
                for b in range(3):
                    if a in _TAPS[r] and b in _TAPS[s]:
                        rows.append(w[:, :, _TAPS[r][a], _TAPS[s][b]])
                    else:
                        rows.append(zero)
            phase_cols.append(jnp.concatenate(rows, axis=0))   # (9*Cin, Cout)
    return jnp.concatenate(phase_cols, axis=1)                 # (9*Cin, 4*Cout)


def subpixel_patches(x_nhwc):
    """NHWC -> (N*H*W, 9*Cin) 3x3-window patch matrix (row = (n,h,w))."""
    n, h, w, c = x_nhwc.shape
    xp = jnp.pad(x_nhwc, ((0, 0), (1, 1), (1, 1), (0, 0)))
    wins = [xp[:, a:a + h, b:b + w, :] for a in range(3) for b in range(3)]
    p = jnp.stack(wins, axis=3)                    # (N, H, W, 9, Cin)
    return p.reshape(n * h * w, 9 * c)


def subpixel_patches_t(x_nhwc):
    """NHWC -> transposed patch matrix (9*Cin, N*H*W) (col = (n,h,w))."""
    n, h, w, c = x_nhwc.shape
    xp = jnp.pad(x_nhwc, ((0, 0), (1, 1), (1, 1), (0, 0)))
    wins = [xp[:, a:a + h, b:b + w, :] for a in range(3) for b in range(3)]
    p = jnp.stack(wins, axis=0)                    # (9, N, H, W, Cin)
    p = p.transpose(0, 4, 1, 2, 3)                 # (9, Cin, N, H, W)
    return p.reshape(9 * c, n * h * w)


# ----------------------------- Generator forward -----------------------------

def generator_forward(x_nchw, blocks, final):
    n = x_nchw.shape[0]

    # Block 1: ConvTranspose(k=4, s=1, p=0) on a 1x1 input == matmul against a
    # (Cin, 16*Cout) weight; the 16 column groups are the 4x4 output pixels.
    b0 = blocks[0]
    cin0, c1 = b0["W"].shape[0], b0["W"].shape[1]
    z = x_nchw.reshape(n, cin0)
    wmat0 = b0["W"].transpose(0, 2, 3, 1).reshape(cin0, 16 * c1)
    y = fused_block(z, wmat0, b0["gamma"], b0["beta"], groups=16)
    h = y.reshape(n, 4, 4, c1)                     # NHWC

    # Blocks 2-4: sub-pixel ConvTranspose(k=4, s=2, p=1) + BN + ReLU, fused.
    for blk in blocks[1:]:
        hh, ww = h.shape[1], h.shape[2]
        cout = blk["W"].shape[1]
        p = subpixel_patches(h)
        y = fused_block(p, subpixel_weight(blk["W"]), blk["gamma"],
                        blk["beta"], groups=4)     # (N*hh*ww, 4*cout)
        y = y.reshape(n, hh, ww, 2, 2, cout).transpose(0, 1, 3, 2, 4, 5)
        h = y.reshape(n, 2 * hh, 2 * ww, cout)     # NHWC pixel shuffle

    # Final layer: transposed (lane-dense) matmul + bias + tanh.
    hh, ww = h.shape[1], h.shape[2]
    cimg = final["W"].shape[1]
    pt = subpixel_patches_t(h)                     # (9*Cin, N*hh*ww)
    wt = subpixel_weight(final["W"]).T             # (4*cimg, 9*Cin)
    bias_col = jnp.tile(final["b"], 4).reshape(4 * cimg, 1)
    ot = fused_final(wt, pt, bias_col)             # (4*cimg, N*hh*ww)
    ot = ot.reshape(2, 2, cimg, n, hh, ww).transpose(3, 2, 4, 0, 5, 1)
    return ot.reshape(n, cimg, 2 * hh, 2 * ww)     # NCHW


# ----------------------------- pure-JAX reference -----------------------------

def _bf16(x):
    return x.astype(jnp.bfloat16).astype(jnp.float32)


def ref_convtranspose(x, w, stride, pad):
    """Reference ConvTranspose2d (NCHW, weight (Cin,Cout,k,k)); operands are
    bf16-rounded to match the Pallas MXU path, math in f32."""
    k = w.shape[2]
    wf = jnp.flip(_bf16(w), (2, 3)).transpose(1, 0, 2, 3)   # (Cout, Cin, k, k)
    return jax.lax.conv_general_dilated(
        _bf16(x), wf, window_strides=(1, 1),
        padding=[(k - 1 - pad, k - 1 - pad)] * 2,
        lhs_dilation=(stride, stride),
        dimension_numbers=("NCHW", "OIHW", "NCHW"),
        precision=jax.lax.Precision.HIGHEST)


def ref_generator(x, blocks, final):
    h = x
    for blk in blocks:
        y = ref_convtranspose(h, blk["W"], blk["stride"], blk["pad"])
        mean = y.mean(axis=(0, 2, 3), keepdims=True)
        var = y.var(axis=(0, 2, 3), keepdims=True)          # biased (train)
        yn = (y - mean) * jax.lax.rsqrt(var + BN_EPS)
        h = jnp.maximum(yn * blk["gamma"].reshape(1, -1, 1, 1)
                        + blk["beta"].reshape(1, -1, 1, 1), 0.0)
    y = ref_convtranspose(h, final["W"], final["stride"], final["pad"])
    return jnp.tanh(y + final["b"].reshape(1, -1, 1, 1))


# ----------------------------- params / main -----------------------------

def init_generator_params(key, z_dim, channels_img, features_g):
    cfgs = [(z_dim, features_g * 16, 1, 0),
            (features_g * 16, features_g * 8, 2, 1),
            (features_g * 8, features_g * 4, 2, 1),
            (features_g * 4, features_g * 2, 2, 1)]
    blocks = []
    for cin, cout, s, p in cfgs:
        key, k1, k2, k3 = jax.random.split(key, 4)
        blocks.append(dict(
            W=0.05 * jax.random.normal(k1, (cin, cout, 4, 4), jnp.float32),
            gamma=1.0 + 0.1 * jax.random.normal(k2, (cout,), jnp.float32),
            beta=0.1 * jax.random.normal(k3, (cout,), jnp.float32),
            stride=s, pad=p))
    key, k1, k2 = jax.random.split(key, 3)
    final = dict(
        W=0.05 * jax.random.normal(k1, (features_g * 2, channels_img, 4, 4),
                                   jnp.float32),
        b=0.05 * jax.random.normal(k2, (channels_img,), jnp.float32),
        stride=2, pad=1)
    return blocks, final


if __name__ == "__main__":
    Z_DIM, CHANNELS_IMG, FEATURES_G, BATCH = 32, 3, 4, 2

    key = jax.random.PRNGKey(0)
    key, kx, kp = jax.random.split(key, 3)
    x = jax.random.normal(kx, (BATCH, Z_DIM, 1, 1), jnp.float32)  # NCHW noise
    blocks, final = init_generator_params(kp, Z_DIM, CHANNELS_IMG, FEATURES_G)

    fwd = jax.jit(generator_forward)
    out = jax.block_until_ready(fwd(x, blocks, final))

    assert out.shape == (BATCH, CHANNELS_IMG, 64, 64), out.shape
    assert bool(jnp.all(jnp.isfinite(out)))
    assert float(jnp.max(jnp.abs(out))) <= 1.0 + 1e-5            # tanh range

    ref = ref_generator(x, blocks, final)
    err = float(jnp.max(jnp.abs(out - ref)))
    assert err < 5e-2, f"mismatch vs reference: {err}"

    print("KERNEL_OK")
</pallas_src>

<mosaic_0001>
module attributes {stable_mosaic.version = 11 : i64} {
  func.func @_block_kernel(%arg0: i32, %arg1: memref<2x32xbf16, #tpu.memory_space<vmem>>, %arg2: memref<32x1024xbf16, #tpu.memory_space<vmem>>, %arg3: memref<1x64xf32, #tpu.memory_space<vmem>>, %arg4: memref<1x64xf32, #tpu.memory_space<vmem>>, %arg5: memref<2x1024xf32, #tpu.memory_space<vmem>>) attributes {dimension_semantics = [#tpu.dimension_semantics<arbitrary>], iteration_bounds = array<i64: 1>, scalar_prefetch = 0 : i64, scratch_operands = 0 : i64, tpu.core_type = #tpu.core_type<tc>, window_params = [{pipeline_mode = #tpu.pipeline_mode<synchronous>, transform_indices = @transform_0, window_bounds = array<i64: 2, 32>}, {pipeline_mode = #tpu.pipeline_mode<synchronous>, transform_indices = @transform_1, window_bounds = array<i64: 32, 1024>}, {pipeline_mode = #tpu.pipeline_mode<synchronous>, transform_indices = @transform_2, window_bounds = array<i64: 1, 64>}, {pipeline_mode = #tpu.pipeline_mode<synchronous>, transform_indices = @transform_3, window_bounds = array<i64: 1, 64>}, {pipeline_mode = #tpu.pipeline_mode<synchronous>, transform_indices = @transform_4, window_bounds = array<i64: 2, 1024>}]} {
    %c0 = arith.constant 0 : index
    %c0_0 = arith.constant 0 : index
    %0 = vector.load %arg1[%c0, %c0_0] : memref<2x32xbf16, #tpu.memory_space<vmem>>, vector<2x32xbf16>
    %c0_1 = arith.constant 0 : index
    %c0_2 = arith.constant 0 : index
    %1 = vector.load %arg2[%c0_1, %c0_2] : memref<32x1024xbf16, #tpu.memory_space<vmem>>, vector<32x1024xbf16>
    %cst = arith.constant dense<0.000000e+00> : vector<2x1024xf32>
    %2 = tpu.matmul %0, %1, %cst {dimension_numbers = #tpu.dot_dimension_numbers<[1], [0], [0], [1], [0, 0, 1, 1], [], []>} : vector<2x32xbf16>, vector<32x1024xbf16>, vector<2x1024xf32> -> vector<2x1024xf32>
    %cst_3 = arith.constant dense<0.000000e+00> : vector<1024xf32>
    %3 = vector.multi_reduction <add>, %2, %cst_3 [0] : vector<2x1024xf32> to vector<1024xf32>
    %4 = vector.shape_cast %3 : vector<1024xf32> to vector<1x1024xf32>
    %5 = arith.mulf %2, %2 : vector<2x1024xf32>
    %cst_4 = arith.constant dense<0.000000e+00> : vector<1024xf32>
    %6 = vector.multi_reduction <add>, %5, %cst_4 [0] : vector<2x1024xf32> to vector<1024xf32>
    %7 = vector.shape_cast %6 : vector<1024xf32> to vector<1x1024xf32>
    %8 = vector.extract_strided_slice %4 {offsets = [0, 0], sizes = [1, 64], strides = [1, 1]} : vector<1x1024xf32> to vector<1x64xf32>
    %9 = vector.extract_strided_slice %7 {offsets = [0, 0], sizes = [1, 64], strides = [1, 1]} : vector<1x1024xf32> to vector<1x64xf32>
    %10 = vector.extract_strided_slice %4 {offsets = [0, 64], sizes = [1, 64], strides = [1, 1]} : vector<1x1024xf32> to vector<1x64xf32>
    %11 = arith.addf %8, %10 : vector<1x64xf32>
    %12 = vector.extract_strided_slice %7 {offsets = [0, 64], sizes = [1, 64], strides = [1, 1]} : vector<1x1024xf32> to vector<1x64xf32>
    %13 = arith.addf %9, %12 : vector<1x64xf32>
    %14 = vector.extract_strided_slice %4 {offsets = [0, 128], sizes = [1, 64], strides = [1, 1]} : vector<1x1024xf32> to vector<1x64xf32>
    %15 = arith.addf %11, %14 : vector<1x64xf32>
    %16 = vector.extract_strided_slice %7 {offsets = [0, 128], sizes = [1, 64], strides = [1, 1]} : vector<1x1024xf32> to vector<1x64xf32>
    %17 = arith.addf %13, %16 : vector<1x64xf32>
    %18 = vector.extract_strided_slice %4 {offsets = [0, 192], sizes = [1, 64], strides = [1, 1]} : vector<1x1024xf32> to vector<1x64xf32>
    %19 = arith.addf %15, %18 : vector<1x64xf32>
    %20 = vector.extract_strided_slice %7 {offsets = [0, 192], sizes = [1, 64], strides = [1, 1]} : vector<1x1024xf32> to vector<1x64xf32>
    %21 = arith.addf %17, %20 : vector<1x64xf32>
    %22 = vector.extract_strided_slice %4 {offsets = [0, 256], sizes = [1, 64], strides = [1, 1]} : vector<1x1024xf32> to vector<1x64xf32>
    %23 = arith.addf %19, %22 : vector<1x64xf32>
    %24 = vector.extract_strided_slice %7 {offsets = [0, 256], sizes = [1, 64], strides = [1, 1]} : vector<1x1024xf32> to vector<1x64xf32>
    %25 = arith.addf %21, %24 : vector<1x64xf32>
    %26 = vector.extract_strided_slice %4 {offsets = [0, 320], sizes = [1, 64], strides = [1, 1]} : vector<1x1024xf32> to vector<1x64xf32>
    %27 = arith.addf %23, %26 : vector<1x64xf32>
    %28 = vector.extract_strided_slice %7 {offsets = [0, 320], sizes = [1, 64], strides = [1, 1]} : vector<1x1024xf32> to vector<1x64xf32>
    %29 = arith.addf %25, %28 : vector<1x64xf32>
    %30 = vector.extract_strided_slice %4 {offsets = [0, 384], sizes = [1, 64], strides = [1, 1]} : vector<1x1024xf32> to vector<1x64xf32>
    %31 = arith.addf %27, %30 : vector<1x64xf32>
    %32 = vector.extract_strided_slice %7 {offsets = [0, 384], sizes = [1, 64], strides = [1, 1]} : vector<1x1024xf32> to vector<1x64xf32>
    %33 = arith.addf %29, %32 : vector<1x64xf32>
    %34 = vector.extract_strided_slice %4 {offsets = [0, 448], sizes = [1, 64], strides = [1, 1]} : vector<1x1024xf32> to vector<1x64xf32>
    %35 = arith.addf %31, %34 : vector<1x64xf32>
    %36 = vector.extract_strided_slice %7 {offsets = [0, 448], sizes = [1, 64], strides = [1, 1]} : vector<1x1024xf32> to vector<1x64xf32>
    %37 = arith.addf %33, %36 : vector<1x64xf32>
    %38 = vector.extract_strided_slice %4 {offsets = [0, 512], sizes = [1, 64], strides = [1, 1]} : vector<1x1024xf32> to vector<1x64xf32>
    %39 = arith.addf %35, %38 : vector<1x64xf32>
    %40 = vector.extract_strided_slice %7 {offsets = [0, 512], sizes = [1, 64], strides = [1, 1]} : vector<1x1024xf32> to vector<1x64xf32>
    %41 = arith.addf %37, %40 : vector<1x64xf32>
    %42 = vector.extract_strided_slice %4 {offsets = [0, 576], sizes = [1, 64], strides = [1, 1]} : vector<1x1024xf32> to vector<1x64xf32>
    %43 = arith.addf %39, %42 : vector<1x64xf32>
    %44 = vector.extract_strided_slice %7 {offsets = [0, 576], sizes = [1, 64], strides = [1, 1]} : vector<1x1024xf32> to vector<1x64xf32>
    %45 = arith.addf %41, %44 : vector<1x64xf32>
    %46 = vector.extract_strided_slice %4 {offsets = [0, 640], sizes = [1, 64], strides = [1, 1]} : vector<1x1024xf32> to vector<1x64xf32>
    %47 = arith.addf %43, %46 : vector<1x64xf32>
    %48 = vector.extract_strided_slice %7 {offsets = [0, 640], sizes = [1, 64], strides = [1, 1]} : vector<1x1024xf32> to vector<1x64xf32>
    %49 = arith.addf %45, %48 : vector<1x64xf32>
    %50 = vector.extract_strided_slice %4 {offsets = [0, 704], sizes = [1, 64], strides = [1, 1]} : vector<1x1024xf32> to vector<1x64xf32>
    %51 = arith.addf %47, %50 : vector<1x64xf32>
    %52 = vector.extract_strided_slice %7 {offsets = [0, 704], sizes = [1, 64], strides = [1, 1]} : vector<1x1024xf32> to vector<1x64xf32>
    %53 = arith.addf %49, %52 : vector<1x64xf32>
    %54 = vector.extract_strided_slice %4 {offsets = [0, 768], sizes = [1, 64], strides = [1, 1]} : vector<1x1024xf32> to vector<1x64xf32>
    %55 = arith.addf %51, %54 : vector<1x64xf32>
    %56 = vector.extract_strided_slice %7 {offsets = [0, 768], sizes = [1, 64], strides = [1, 1]} : vector<1x1024xf32> to vector<1x64xf32>
    %57 = arith.addf %53, %56 : vector<1x64xf32>
    %58 = vector.extract_strided_slice %4 {offsets = [0, 832], sizes = [1, 64], strides = [1, 1]} : vector<1x1024xf32> to vector<1x64xf32>
    %59 = arith.addf %55, %58 : vector<1x64xf32>
    %60 = vector.extract_strided_slice %7 {offsets = [0, 832], sizes = [1, 64], strides = [1, 1]} : vector<1x1024xf32> to vector<1x64xf32>
    %61 = arith.addf %57, %60 : vector<1x64xf32>
    %62 = vector.extract_strided_slice %4 {offsets = [0, 896], sizes = [1, 64], strides = [1, 1]} : vector<1x1024xf32> to vector<1x64xf32>
    %63 = arith.addf %59, %62 : vector<1x64xf32>
    %64 = vector.extract_strided_slice %7 {offsets = [0, 896], sizes = [1, 64], strides = [1, 1]} : vector<1x1024xf32> to vector<1x64xf32>
    %65 = arith.addf %61, %64 : vector<1x64xf32>
    %66 = vector.extract_strided_slice %4 {offsets = [0, 960], sizes = [1, 64], strides = [1, 1]} : vector<1x1024xf32> to vector<1x64xf32>
    %67 = arith.addf %63, %66 : vector<1x64xf32>
    %68 = vector.extract_strided_slice %7 {offsets = [0, 960], sizes = [1, 64], strides = [1, 1]} : vector<1x1024xf32> to vector<1x64xf32>
    %69 = arith.addf %65, %68 : vector<1x64xf32>
    %cst_5 = arith.constant 3.125000e-02 : f32
    %70 = vector.broadcast %cst_5 : f32 to vector<1x64xf32>
    %71 = arith.mulf %67, %70 : vector<1x64xf32>
    %cst_6 = arith.constant 3.125000e-02 : f32
    %72 = vector.broadcast %cst_6 : f32 to vector<1x64xf32>
    %73 = arith.mulf %69, %72 : vector<1x64xf32>
    %74 = arith.mulf %71, %71 : vector<1x64xf32>
    %75 = arith.subf %73, %74 : vector<1x64xf32>
    %cst_7 = arith.constant 0.000000e+00 : f32
    %76 = vector.broadcast %cst_7 : f32 to vector<1x64xf32>
    %77 = arith.maximumf %75, %76 : vector<1x64xf32>
    %c0_8 = arith.constant 0 : index
    %c0_9 = arith.constant 0 : index
    %78 = vector.load %arg3[%c0_8, %c0_9] : memref<1x64xf32, #tpu.memory_space<vmem>>, vector<1x64xf32>
    %cst_10 = arith.constant 9.99999974E-6 : f32
    %79 = vector.broadcast %cst_10 : f32 to vector<1x64xf32>
    %80 = arith.addf %77, %79 : vector<1x64xf32>
    %81 = math.rsqrt %80 : vector<1x64xf32>
    %82 = arith.mulf %78, %81 : vector<1x64xf32>
    %c0_11 = arith.constant 0 : index
    %c0_12 = arith.constant 0 : index
    %83 = vector.load %arg4[%c0_11, %c0_12] : memref<1x64xf32, #tpu.memory_space<vmem>>, vector<1x64xf32>
    %84 = arith.mulf %71, %82 : vector<1x64xf32>
    %85 = arith.subf %83, %84 : vector<1x64xf32>
    %86 = tpu.concatenate %82, %82, %82, %82, %82, %82, %82, %82, %82, %82, %82, %82, %82, %82, %82, %82 in 1 : vector<1x64xf32>, vector<1x64xf32>, vector<1x64xf32>, vector<1x64xf32>, vector<1x64xf32>, vector<1x64xf32>, vector<1x64xf32>, vector<1x64xf32>, vector<1x64xf32>, vector<1x64xf32>, vector<1x64xf32>, vector<1x64xf32>, vector<1x64xf32>, vector<1x64xf32>, vector<1x64xf32>, vector<1x64xf32> -> vector<1x1024xf32>
    %87 = tpu.concatenate %85, %85, %85, %85, %85, %85, %85, %85, %85, %85, %85, %85, %85, %85, %85, %85 in 1 : vector<1x64xf32>, vector<1x64xf32>, vector<1x64xf32>, vector<1x64xf32>, vector<1x64xf32>, vector<1x64xf32>, vector<1x64xf32>, vector<1x64xf32>, vector<1x64xf32>, vector<1x64xf32>, vector<1x64xf32>, vector<1x64xf32>, vector<1x64xf32>, vector<1x64xf32>, vector<1x64xf32>, vector<1x64xf32> -> vector<1x1024xf32>
    %88 = vector.broadcast %86 : vector<1x1024xf32> to vector<2x1024xf32>
    %89 = arith.mulf %2, %88 : vector<2x1024xf32>
    %90 = vector.broadcast %87 : vector<1x1024xf32> to vector<2x1024xf32>
    %91 = arith.addf %89, %90 : vector<2x1024xf32>
    %cst_13 = arith.constant 0.000000e+00 : f32
    %92 = vector.broadcast %cst_13 : f32 to vector<2x1024xf32>
    %93 = arith.maximumf %91, %92 : vector<2x1024xf32>
    %c0_14 = arith.constant 0 : index
    %c0_15 = arith.constant 0 : index
    %94 = vector.load %arg5[%c0_14, %c0_15] : memref<2x1024xf32, #tpu.memory_space<vmem>>, vector<2x1024xf32>
    tpu.vector_store %arg5[%c0_14, %c0_15], %93 {strides = array<i32>} : memref<2x1024xf32, #tpu.memory_space<vmem>>, vector<2x1024xf32>,
    return
  }
  func.func @transform_0(%arg0: i32) -> (i32, i32) {
    %c0_i32 = arith.constant 0 : i32
    %c0_i32_0 = arith.constant 0 : i32
    %c0_i32_1 = arith.constant 0 : i32
    return %c0_i32, %c0_i32_0 : i32, i32
  }
  func.func @transform_1(%arg0: i32) -> (i32, i32) {
    %c0_i32 = arith.constant 0 : i32
    %c0_i32_0 = arith.constant 0 : i32
    %c0_i32_1 = arith.constant 0 : i32
    return %c0_i32, %c0_i32_0 : i32, i32
  }
  func.func @transform_2(%arg0: i32) -> (i32, i32) {
    %c0_i32 = arith.constant 0 : i32
    %c0_i32_0 = arith.constant 0 : i32
    %c0_i32_1 = arith.constant 0 : i32
    return %c0_i32, %c0_i32_0 : i32, i32
  }
  func.func @transform_3(%arg0: i32) -> (i32, i32) {
    %c0_i32 = arith.constant 0 : i32
    %c0_i32_0 = arith.constant 0 : i32
    %c0_i32_1 = arith.constant 0 : i32
    return %c0_i32, %c0_i32_0 : i32, i32
  }
  func.func @transform_4(%arg0: i32) -> (i32, i32) {
    %c0_i32 = arith.constant 0 : i32
    %c0_i32_0 = arith.constant 0 : i32
    %c0_i32_1 = arith.constant 0 : i32
    return %c0_i32, %c0_i32_0 : i32, i32
  }
}

module attributes {stable_mosaic.version = 11 : i64} {
  func.func @_block_kernel(%arg0: i32, %arg1: memref<32x576xbf16, #tpu.memory_space<vmem>>, %arg2: memref<576x128xbf16, #tpu.memory_space<vmem>>, %arg3: memref<1x32xf32, #tpu.memory_space<vmem>>, %arg4: memref<1x32xf32, #tpu.memory_space<vmem>>, %arg5: memref<32x128xf32, #tpu.memory_space<vmem>>) attributes {dimension_semantics = [#tpu.dimension_semantics<arbitrary>], iteration_bounds = array<i64: 1>, scalar_prefetch = 0 : i64, scratch_operands = 0 : i64, tpu.core_type = #tpu.core_type<tc>, window_params = [{pipeline_mode = #tpu.pipeline_mode<synchronous>, transform_indices = @transform_0, window_bounds = array<i64: 32, 576>}, {pipeline_mode = #tpu.pipeline_mode<synchronous>, transform_indices = @transform_1, window_bounds = array<i64: 576, 128>}, {pipeline_mode = #tpu.pipeline_mode<synchronous>, transform_indices = @transform_2, window_bounds = array<i64: 1, 32>}, {pipeline_mode = #tpu.pipeline_mode<synchronous>, transform_indices = @transform_3, window_bounds = array<i64: 1, 32>}, {pipeline_mode = #tpu.pipeline_mode<synchronous>, transform_indices = @transform_4, window_bounds = array<i64: 32, 128>}]} {
    %c0 = arith.constant 0 : index
    %c0_0 = arith.constant 0 : index
    %0 = vector.load %arg1[%c0, %c0_0] : memref<32x576xbf16, #tpu.memory_space<vmem>>, vector<32x576xbf16>
    %c0_1 = arith.constant 0 : index
    %c0_2 = arith.constant 0 : index
    %1 = vector.load %arg2[%c0_1, %c0_2] : memref<576x128xbf16, #tpu.memory_space<vmem>>, vector<576x128xbf16>
    %cst = arith.constant dense<0.000000e+00> : vector<32x128xf32>
    %2 = tpu.matmul %0, %1, %cst {dimension_numbers = #tpu.dot_dimension_numbers<[1], [0], [0], [1], [0, 0, 1, 1], [], []>} : vector<32x576xbf16>, vector<576x128xbf16>, vector<32x128xf32> -> vector<32x128xf32>
    %cst_3 = arith.constant dense<0.000000e+00> : vector<128xf32>
    %3 = vector.multi_reduction <add>, %2, %cst_3 [0] : vector<32x128xf32> to vector<128xf32>
    %4 = vector.shape_cast %3 : vector<128xf32> to vector<1x128xf32>
    %5 = arith.mulf %2, %2 : vector<32x128xf32>
    %cst_4 = arith.constant dense<0.000000e+00> : vector<128xf32>
    %6 = vector.multi_reduction <add>, %5, %cst_4 [0] : vector<32x128xf32> to vector<128xf32>
    %7 = vector.shape_cast %6 : vector<128xf32> to vector<1x128xf32>
    %8 = vector.extract_strided_slice %4 {offsets = [0, 0], sizes = [1, 32], strides = [1, 1]} : vector<1x128xf32> to vector<1x32xf32>
    %9 = vector.extract_strided_slice %7 {offsets = [0, 0], sizes = [1, 32], strides = [1, 1]} : vector<1x128xf32> to vector<1x32xf32>
    %10 = vector.extract_strided_slice %4 {offsets = [0, 32], sizes = [1, 32], strides = [1, 1]} : vector<1x128xf32> to vector<1x32xf32>
    %11 = arith.addf %8, %10 : vector<1x32xf32>
    %12 = vector.extract_strided_slice %7 {offsets = [0, 32], sizes = [1, 32], strides = [1, 1]} : vector<1x128xf32> to vector<1x32xf32>
    %13 = arith.addf %9, %12 : vector<1x32xf32>
    %14 = vector.extract_strided_slice %4 {offsets = [0, 64], sizes = [1, 32], strides = [1, 1]} : vector<1x128xf32> to vector<1x32xf32>
    %15 = arith.addf %11, %14 : vector<1x32xf32>
    %16 = vector.extract_strided_slice %7 {offsets = [0, 64], sizes = [1, 32], strides = [1, 1]} : vector<1x128xf32> to vector<1x32xf32>
    %17 = arith.addf %13, %16 : vector<1x32xf32>
    %18 = vector.extract_strided_slice %4 {offsets = [0, 96], sizes = [1, 32], strides = [1, 1]} : vector<1x128xf32> to vector<1x32xf32>
    %19 = arith.addf %15, %18 : vector<1x32xf32>
    %20 = vector.extract_strided_slice %7 {offsets = [0, 96], sizes = [1, 32], strides = [1, 1]} : vector<1x128xf32> to vector<1x32xf32>
    %21 = arith.addf %17, %20 : vector<1x32xf32>
    %cst_5 = arith.constant 7.812500e-03 : f32
    %22 = vector.broadcast %cst_5 : f32 to vector<1x32xf32>
    %23 = arith.mulf %19, %22 : vector<1x32xf32>
    %cst_6 = arith.constant 7.812500e-03 : f32
    %24 = vector.broadcast %cst_6 : f32 to vector<1x32xf32>
    %25 = arith.mulf %21, %24 : vector<1x32xf32>
    %26 = arith.mulf %23, %23 : vector<1x32xf32>
    %27 = arith.subf %25, %26 : vector<1x32xf32>
    %cst_7 = arith.constant 0.000000e+00 : f32
    %28 = vector.broadcast %cst_7 : f32 to vector<1x32xf32>
    %29 = arith.maximumf %27, %28 : vector<1x32xf32>
    %c0_8 = arith.constant 0 : index
    %c0_9 = arith.constant 0 : index
    %30 = vector.load %arg3[%c0_8, %c0_9] : memref<1x32xf32, #tpu.memory_space<vmem>>, vector<1x32xf32>
    %cst_10 = arith.constant 9.99999974E-6 : f32
    %31 = vector.broadcast %cst_10 : f32 to vector<1x32xf32>
    %32 = arith.addf %29, %31 : vector<1x32xf32>
    %33 = math.rsqrt %32 : vector<1x32xf32>
    %34 = arith.mulf %30, %33 : vector<1x32xf32>
    %c0_11 = arith.constant 0 : index
    %c0_12 = arith.constant 0 : index
    %35 = vector.load %arg4[%c0_11, %c0_12] : memref<1x32xf32, #tpu.memory_space<vmem>>, vector<1x32xf32>
    %36 = arith.mulf %23, %34 : vector<1x32xf32>
    %37 = arith.subf %35, %36 : vector<1x32xf32>
    %38 = tpu.concatenate %34, %34, %34, %34 in 1 : vector<1x32xf32>, vector<1x32xf32>, vector<1x32xf32>, vector<1x32xf32> -> vector<1x128xf32>
    %39 = tpu.concatenate %37, %37, %37, %37 in 1 : vector<1x32xf32>, vector<1x32xf32>, vector<1x32xf32>, vector<1x32xf32> -> vector<1x128xf32>
    %40 = vector.broadcast %38 : vector<1x128xf32> to vector<32x128xf32>
    %41 = arith.mulf %2, %40 : vector<32x128xf32>
    %42 = vector.broadcast %39 : vector<1x128xf32> to vector<32x128xf32>
    %43 = arith.addf %41, %42 : vector<32x128xf32>
    %cst_13 = arith.constant 0.000000e+00 : f32
    %44 = vector.broadcast %cst_13 : f32 to vector<32x128xf32>
    %45 = arith.maximumf %43, %44 : vector<32x128xf32>
    %c0_14 = arith.constant 0 : index
    %c0_15 = arith.constant 0 : index
    %46 = vector.load %arg5[%c0_14, %c0_15] : memref<32x128xf32, #tpu.memory_space<vmem>>, vector<32x128xf32>
    tpu.vector_store %arg5[%c0_14, %c0_15], %45 {strides = array<i32>} : memref<32x128xf32, #tpu.memory_space<vmem>>, vector<32x128xf32>,
    return
  }
  func.func @transform_0(%arg0: i32) -> (i32, i32) {
    %c0_i32 = arith.constant 0 : i32
    %c0_i32_0 = arith.constant 0 : i32
    %c0_i32_1 = arith.constant 0 : i32
    return %c0_i32, %c0_i32_0 : i32, i32
  }
  func.func @transform_1(%arg0: i32) -> (i32, i32) {
    %c0_i32 = arith.constant 0 : i32
    %c0_i32_0 = arith.constant 0 : i32
    %c0_i32_1 = arith.constant 0 : i32
    return %c0_i32, %c0_i32_0 : i32, i32
  }
  func.func @transform_2(%arg0: i32) -> (i32, i32) {
    %c0_i32 = arith.constant 0 : i32
    %c0_i32_0 = arith.constant 0 : i32
    %c0_i32_1 = arith.constant 0 : i32
    return %c0_i32, %c0_i32_0 : i32, i32
  }
  func.func @transform_3(%arg0: i32) -> (i32, i32) {
    %c0_i32 = arith.constant 0 : i32
    %c0_i32_0 = arith.constant 0 : i32
    %c0_i32_1 = arith.constant 0 : i32
    return %c0_i32, %c0_i32_0 : i32, i32
  }
  func.func @transform_4(%arg0: i32) -> (i32, i32) {
    %c0_i32 = arith.constant 0 : i32
    %c0_i32_0 = arith.constant 0 : i32
    %c0_i32_1 = arith.constant 0 : i32
    return %c0_i32, %c0_i32_0 : i32, i32
  }
}

module attributes {stable_mosaic.version = 11 : i64} {
  func.func @_block_kernel(%arg0: i32, %arg1: memref<128x288xbf16, #tpu.memory_space<vmem>>, %arg2: memref<288x64xbf16, #tpu.memory_space<vmem>>, %arg3: memref<1x16xf32, #tpu.memory_space<vmem>>, %arg4: memref<1x16xf32, #tpu.memory_space<vmem>>, %arg5: memref<128x64xf32, #tpu.memory_space<vmem>>) attributes {dimension_semantics = [#tpu.dimension_semantics<arbitrary>], iteration_bounds = array<i64: 1>, scalar_prefetch = 0 : i64, scratch_operands = 0 : i64, tpu.core_type = #tpu.core_type<tc>, window_params = [{pipeline_mode = #tpu.pipeline_mode<synchronous>, transform_indices = @transform_0, window_bounds = array<i64: 128, 288>}, {pipeline_mode = #tpu.pipeline_mode<synchronous>, transform_indices = @transform_1, window_bounds = array<i64: 288, 64>}, {pipeline_mode = #tpu.pipeline_mode<synchronous>, transform_indices = @transform_2, window_bounds = array<i64: 1, 16>}, {pipeline_mode = #tpu.pipeline_mode<synchronous>, transform_indices = @transform_3, window_bounds = array<i64: 1, 16>}, {pipeline_mode = #tpu.pipeline_mode<synchronous>, transform_indices = @transform_4, window_bounds = array<i64: 128, 64>}]} {
    %c0 = arith.constant 0 : index
    %c0_0 = arith.constant 0 : index
    %0 = vector.load %arg1[%c0, %c0_0] : memref<128x288xbf16, #tpu.memory_space<vmem>>, vector<128x288xbf16>
    %c0_1 = arith.constant 0 : index
    %c0_2 = arith.constant 0 : index
    %1 = vector.load %arg2[%c0_1, %c0_2] : memref<288x64xbf16, #tpu.memory_space<vmem>>, vector<288x64xbf16>
    %cst = arith.constant dense<0.000000e+00> : vector<128x64xf32>
    %2 = tpu.matmul %0, %1, %cst {dimension_numbers = #tpu.dot_dimension_numbers<[1], [0], [0], [1], [0, 0, 1, 1], [], []>} : vector<128x288xbf16>, vector<288x64xbf16>, vector<128x64xf32> -> vector<128x64xf32>
    %cst_3 = arith.constant dense<0.000000e+00> : vector<64xf32>
    %3 = vector.multi_reduction <add>, %2, %cst_3 [0] : vector<128x64xf32> to vector<64xf32>
    %4 = vector.shape_cast %3 : vector<64xf32> to vector<1x64xf32>
    %5 = arith.mulf %2, %2 : vector<128x64xf32>
    %cst_4 = arith.constant dense<0.000000e+00> : vector<64xf32>
    %6 = vector.multi_reduction <add>, %5, %cst_4 [0] : vector<128x64xf32> to vector<64xf32>
    %7 = vector.shape_cast %6 : vector<64xf32> to vector<1x64xf32>
    %8 = vector.extract_strided_slice %4 {offsets = [0, 0], sizes = [1, 16], strides = [1, 1]} : vector<1x64xf32> to vector<1x16xf32>
    %9 = vector.extract_strided_slice %7 {offsets = [0, 0], sizes = [1, 16], strides = [1, 1]} : vector<1x64xf32> to vector<1x16xf32>
    %10 = vector.extract_strided_slice %4 {offsets = [0, 16], sizes = [1, 16], strides = [1, 1]} : vector<1x64xf32> to vector<1x16xf32>
    %11 = arith.addf %8, %10 : vector<1x16xf32>
    %12 = vector.extract_strided_slice %7 {offsets = [0, 16], sizes = [1, 16], strides = [1, 1]} : vector<1x64xf32> to vector<1x16xf32>
    %13 = arith.addf %9, %12 : vector<1x16xf32>
    %14 = vector.extract_strided_slice %4 {offsets = [0, 32], sizes = [1, 16], strides = [1, 1]} : vector<1x64xf32> to vector<1x16xf32>
    %15 = arith.addf %11, %14 : vector<1x16xf32>
    %16 = vector.extract_strided_slice %7 {offsets = [0, 32], sizes = [1, 16], strides = [1, 1]} : vector<1x64xf32> to vector<1x16xf32>
    %17 = arith.addf %13, %16 : vector<1x16xf32>
    %18 = vector.extract_strided_slice %4 {offsets = [0, 48], sizes = [1, 16], strides = [1, 1]} : vector<1x64xf32> to vector<1x16xf32>
    %19 = arith.addf %15, %18 : vector<1x16xf32>
    %20 = vector.extract_strided_slice %7 {offsets = [0, 48], sizes = [1, 16], strides = [1, 1]} : vector<1x64xf32> to vector<1x16xf32>
    %21 = arith.addf %17, %20 : vector<1x16xf32>
    %cst_5 = arith.constant 0.001953125 : f32
    %22 = vector.broadcast %cst_5 : f32 to vector<1x16xf32>
    %23 = arith.mulf %19, %22 : vector<1x16xf32>
    %cst_6 = arith.constant 0.001953125 : f32
    %24 = vector.broadcast %cst_6 : f32 to vector<1x16xf32>
    %25 = arith.mulf %21, %24 : vector<1x16xf32>
    %26 = arith.mulf %23, %23 : vector<1x16xf32>
    %27 = arith.subf %25, %26 : vector<1x16xf32>
    %cst_7 = arith.constant 0.000000e+00 : f32
    %28 = vector.broadcast %cst_7 : f32 to vector<1x16xf32>
    %29 = arith.maximumf %27, %28 : vector<1x16xf32>
    %c0_8 = arith.constant 0 : index
    %c0_9 = arith.constant 0 : index
    %30 = vector.load %arg3[%c0_8, %c0_9] : memref<1x16xf32, #tpu.memory_space<vmem>>, vector<1x16xf32>
    %cst_10 = arith.constant 9.99999974E-6 : f32
    %31 = vector.broadcast %cst_10 : f32 to vector<1x16xf32>
    %32 = arith.addf %29, %31 : vector<1x16xf32>
    %33 = math.rsqrt %32 : vector<1x16xf32>
    %34 = arith.mulf %30, %33 : vector<1x16xf32>
    %c0_11 = arith.constant 0 : index
    %c0_12 = arith.constant 0 : index
    %35 = vector.load %arg4[%c0_11, %c0_12] : memref<1x16xf32, #tpu.memory_space<vmem>>, vector<1x16xf32>
    %36 = arith.mulf %23, %34 : vector<1x16xf32>
    %37 = arith.subf %35, %36 : vector<1x16xf32>
    %38 = tpu.concatenate %34, %34, %34, %34 in 1 : vector<1x16xf32>, vector<1x16xf32>, vector<1x16xf32>, vector<1x16xf32> -> vector<1x64xf32>
    %39 = tpu.concatenate %37, %37, %37, %37 in 1 : vector<1x16xf32>, vector<1x16xf32>, vector<1x16xf32>, vector<1x16xf32> -> vector<1x64xf32>
    %40 = vector.broadcast %38 : vector<1x64xf32> to vector<128x64xf32>
    %41 = arith.mulf %2, %40 : vector<128x64xf32>
    %42 = vector.broadcast %39 : vector<1x64xf32> to vector<128x64xf32>
    %43 = arith.addf %41, %42 : vector<128x64xf32>
    %cst_13 = arith.constant 0.000000e+00 : f32
    %44 = vector.broadcast %cst_13 : f32 to vector<128x64xf32>
    %45 = arith.maximumf %43, %44 : vector<128x64xf32>
    %c0_14 = arith.constant 0 : index
    %c0_15 = arith.constant 0 : index
    %46 = vector.load %arg5[%c0_14, %c0_15] : memref<128x64xf32, #tpu.memory_space<vmem>>, vector<128x64xf32>
    tpu.vector_store %arg5[%c0_14, %c0_15], %45 {strides = array<i32>} : memref<128x64xf32, #tpu.memory_space<vmem>>, vector<128x64xf32>,
    return
  }
  func.func @transform_0(%arg0: i32) -> (i32, i32) {
    %c0_i32 = arith.constant 0 : i32
    %c0_i32_0 = arith.constant 0 : i32
    %c0_i32_1 = arith.constant 0 : i32
    return %c0_i32, %c0_i32_0 : i32, i32
  }
  func.func @transform_1(%arg0: i32) -> (i32, i32) {
    %c0_i32 = arith.constant 0 : i32
    %c0_i32_0 = arith.constant 0 : i32
    %c0_i32_1 = arith.constant 0 : i32
    return %c0_i32, %c0_i32_0 : i32, i32
  }
  func.func @transform_2(%arg0: i32) -> (i32, i32) {
    %c0_i32 = arith.constant 0 : i32
    %c0_i32_0 = arith.constant 0 : i32
    %c0_i32_1 = arith.constant 0 : i32
    return %c0_i32, %c0_i32_0 : i32, i32
  }
  func.func @transform_3(%arg0: i32) -> (i32, i32) {
    %c0_i32 = arith.constant 0 : i32
    %c0_i32_0 = arith.constant 0 : i32
    %c0_i32_1 = arith.constant 0 : i32
    return %c0_i32, %c0_i32_0 : i32, i32
  }
  func.func @transform_4(%arg0: i32) -> (i32, i32) {
    %c0_i32 = arith.constant 0 : i32
    %c0_i32_0 = arith.constant 0 : i32
    %c0_i32_1 = arith.constant 0 : i32
    return %c0_i32, %c0_i32_0 : i32, i32
  }
}

module attributes {stable_mosaic.version = 11 : i64} {
  func.func @_block_kernel(%arg0: i32, %arg1: memref<512x144xbf16, #tpu.memory_space<vmem>>, %arg2: memref<144x32xbf16, #tpu.memory_space<vmem>>, %arg3: memref<1x8xf32, #tpu.memory_space<vmem>>, %arg4: memref<1x8xf32, #tpu.memory_space<vmem>>, %arg5: memref<512x32xf32, #tpu.memory_space<vmem>>) attributes {dimension_semantics = [#tpu.dimension_semantics<arbitrary>], iteration_bounds = array<i64: 1>, scalar_prefetch = 0 : i64, scratch_operands = 0 : i64, tpu.core_type = #tpu.core_type<tc>, window_params = [{pipeline_mode = #tpu.pipeline_mode<synchronous>, transform_indices = @transform_0, window_bounds = array<i64: 512, 144>}, {pipeline_mode = #tpu.pipeline_mode<synchronous>, transform_indices = @transform_1, window_bounds = array<i64: 144, 32>}, {pipeline_mode = #tpu.pipeline_mode<synchronous>, transform_indices = @transform_2, window_bounds = array<i64: 1, 8>}, {pipeline_mode = #tpu.pipeline_mode<synchronous>, transform_indices = @transform_3, window_bounds = array<i64: 1, 8>}, {pipeline_mode = #tpu.pipeline_mode<synchronous>, transform_indices = @transform_4, window_bounds = array<i64: 512, 32>}]} {
    %c0 = arith.constant 0 : index
    %c0_0 = arith.constant 0 : index
    %0 = vector.load %arg1[%c0, %c0_0] : memref<512x144xbf16, #tpu.memory_space<vmem>>, vector<512x144xbf16>
    %c0_1 = arith.constant 0 : index
    %c0_2 = arith.constant 0 : index
    %1 = vector.load %arg2[%c0_1, %c0_2] : memref<144x32xbf16, #tpu.memory_space<vmem>>, vector<144x32xbf16>
    %cst = arith.constant dense<0.000000e+00> : vector<512x32xf32>
    %2 = tpu.matmul %0, %1, %cst {dimension_numbers = #tpu.dot_dimension_numbers<[1], [0], [0], [1], [0, 0, 1, 1], [], []>} : vector<512x144xbf16>, vector<144x32xbf16>, vector<512x32xf32> -> vector<512x32xf32>
    %cst_3 = arith.constant dense<0.000000e+00> : vector<32xf32>
    %3 = vector.multi_reduction <add>, %2, %cst_3 [0] : vector<512x32xf32> to vector<32xf32>
    %4 = vector.shape_cast %3 : vector<32xf32> to vector<1x32xf32>
    %5 = arith.mulf %2, %2 : vector<512x32xf32>
    %cst_4 = arith.constant dense<0.000000e+00> : vector<32xf32>
    %6 = vector.multi_reduction <add>, %5, %cst_4 [0] : vector<512x32xf32> to vector<32xf32>
    %7 = vector.shape_cast %6 : vector<32xf32> to vector<1x32xf32>
    %8 = vector.extract_strided_slice %4 {offsets = [0, 0], sizes = [1, 8], strides = [1, 1]} : vector<1x32xf32> to vector<1x8xf32>
    %9 = vector.extract_strided_slice %7 {offsets = [0, 0], sizes = [1, 8], strides = [1, 1]} : vector<1x32xf32> to vector<1x8xf32>
    %10 = vector.extract_strided_slice %4 {offsets = [0, 8], sizes = [1, 8], strides = [1, 1]} : vector<1x32xf32> to vector<1x8xf32>
    %11 = arith.addf %8, %10 : vector<1x8xf32>
    %12 = vector.extract_strided_slice %7 {offsets = [0, 8], sizes = [1, 8], strides = [1, 1]} : vector<1x32xf32> to vector<1x8xf32>
    %13 = arith.addf %9, %12 : vector<1x8xf32>
    %14 = vector.extract_strided_slice %4 {offsets = [0, 16], sizes = [1, 8], strides = [1, 1]} : vector<1x32xf32> to vector<1x8xf32>
    %15 = arith.addf %11, %14 : vector<1x8xf32>
    %16 = vector.extract_strided_slice %7 {offsets = [0, 16], sizes = [1, 8], strides = [1, 1]} : vector<1x32xf32> to vector<1x8xf32>
    %17 = arith.addf %13, %16 : vector<1x8xf32>
    %18 = vector.extract_strided_slice %4 {offsets = [0, 24], sizes = [1, 8], strides = [1, 1]} : vector<1x32xf32> to vector<1x8xf32>
    %19 = arith.addf %15, %18 : vector<1x8xf32>
    %20 = vector.extract_strided_slice %7 {offsets = [0, 24], sizes = [1, 8], strides = [1, 1]} : vector<1x32xf32> to vector<1x8xf32>
    %21 = arith.addf %17, %20 : vector<1x8xf32>
    %cst_5 = arith.constant 4.8828125E-4 : f32
    %22 = vector.broadcast %cst_5 : f32 to vector<1x8xf32>
    %23 = arith.mulf %19, %22 : vector<1x8xf32>
    %cst_6 = arith.constant 4.8828125E-4 : f32
    %24 = vector.broadcast %cst_6 : f32 to vector<1x8xf32>
    %25 = arith.mulf %21, %24 : vector<1x8xf32>
    %26 = arith.mulf %23, %23 : vector<1x8xf32>
    %27 = arith.subf %25, %26 : vector<1x8xf32>
    %cst_7 = arith.constant 0.000000e+00 : f32
    %28 = vector.broadcast %cst_7 : f32 to vector<1x8xf32>
    %29 = arith.maximumf %27, %28 : vector<1x8xf32>
    %c0_8 = arith.constant 0 : index
    %c0_9 = arith.constant 0 : index
    %30 = vector.load %arg3[%c0_8, %c0_9] : memref<1x8xf32, #tpu.memory_space<vmem>>, vector<1x8xf32>
    %cst_10 = arith.constant 9.99999974E-6 : f32
    %31 = vector.broadcast %cst_10 : f32 to vector<1x8xf32>
    %32 = arith.addf %29, %31 : vector<1x8xf32>
    %33 = math.rsqrt %32 : vector<1x8xf32>
    %34 = arith.mulf %30, %33 : vector<1x8xf32>
    %c0_11 = arith.constant 0 : index
    %c0_12 = arith.constant 0 : index
    %35 = vector.load %arg4[%c0_11, %c0_12] : memref<1x8xf32, #tpu.memory_space<vmem>>, vector<1x8xf32>
    %36 = arith.mulf %23, %34 : vector<1x8xf32>
    %37 = arith.subf %35, %36 : vector<1x8xf32>
    %38 = tpu.concatenate %34, %34, %34, %34 in 1 : vector<1x8xf32>, vector<1x8xf32>, vector<1x8xf32>, vector<1x8xf32> -> vector<1x32xf32>
    %39 = tpu.concatenate %37, %37, %37, %37 in 1 : vector<1x8xf32>, vector<1x8xf32>, vector<1x8xf32>, vector<1x8xf32> -> vector<1x32xf32>
    %40 = vector.broadcast %38 : vector<1x32xf32> to vector<512x32xf32>
    %41 = arith.mulf %2, %40 : vector<512x32xf32>
    %42 = vector.broadcast %39 : vector<1x32xf32> to vector<512x32xf32>
    %43 = arith.addf %41, %42 : vector<512x32xf32>
    %cst_13 = arith.constant 0.000000e+00 : f32
    %44 = vector.broadcast %cst_13 : f32 to vector<512x32xf32>
    %45 = arith.maximumf %43, %44 : vector<512x32xf32>
    %c0_14 = arith.constant 0 : index
    %c0_15 = arith.constant 0 : index
    %46 = vector.load %arg5[%c0_14, %c0_15] : memref<512x32xf32, #tpu.memory_space<vmem>>, vector<512x32xf32>
    tpu.vector_store %arg5[%c0_14, %c0_15], %45 {strides = array<i32>} : memref<512x32xf32, #tpu.memory_space<vmem>>, vector<512x32xf32>,
    return
  }
  func.func @transform_0(%arg0: i32) -> (i32, i32) {
    %c0_i32 = arith.constant 0 : i32
    %c0_i32_0 = arith.constant 0 : i32
    %c0_i32_1 = arith.constant 0 : i32
    return %c0_i32, %c0_i32_0 : i32, i32
  }
  func.func @transform_1(%arg0: i32) -> (i32, i32) {
    %c0_i32 = arith.constant 0 : i32
    %c0_i32_0 = arith.constant 0 : i32
    %c0_i32_1 = arith.constant 0 : i32
    return %c0_i32, %c0_i32_0 : i32, i32
  }
  func.func @transform_2(%arg0: i32) -> (i32, i32) {
    %c0_i32 = arith.constant 0 : i32
    %c0_i32_0 = arith.constant 0 : i32
    %c0_i32_1 = arith.constant 0 : i32
    return %c0_i32, %c0_i32_0 : i32, i32
  }
  func.func @transform_3(%arg0: i32) -> (i32, i32) {
    %c0_i32 = arith.constant 0 : i32
    %c0_i32_0 = arith.constant 0 : i32
    %c0_i32_1 = arith.constant 0 : i32
    return %c0_i32, %c0_i32_0 : i32, i32
  }
  func.func @transform_4(%arg0: i32) -> (i32, i32) {
    %c0_i32 = arith.constant 0 : i32
    %c0_i32_0 = arith.constant 0 : i32
    %c0_i32_1 = arith.constant 0 : i32
    return %c0_i32, %c0_i32_0 : i32, i32
  }
}

module attributes {stable_mosaic.version = 11 : i64} {
  func.func @_final_kernel(%arg0: i32, %arg1: memref<12x72xbf16, #tpu.memory_space<vmem>>, %arg2: memref<72x512xbf16, #tpu.memory_space<vmem>>, %arg3: memref<12x1xf32, #tpu.memory_space<vmem>>, %arg4: memref<12x512xf32, #tpu.memory_space<vmem>>) attributes {dimension_semantics = [#tpu.dimension_semantics<parallel>], iteration_bounds = array<i64: 4>, scalar_prefetch = 0 : i64, scratch_operands = 0 : i64, tpu.core_type = #tpu.core_type<tc>, window_params = [{pipeline_mode = #tpu.pipeline_mode<synchronous>, transform_indices = @transform_0, window_bounds = array<i64: 12, 72>}, {transform_indices = @transform_1, window_bounds = array<i64: 72, 512>}, {pipeline_mode = #tpu.pipeline_mode<synchronous>, transform_indices = @transform_2, window_bounds = array<i64: 12, 1>}, {transform_indices = @transform_3, window_bounds = array<i64: 12, 512>}]} {
    %c0 = arith.constant 0 : index
    %c0_0 = arith.constant 0 : index
    %0 = vector.load %arg1[%c0, %c0_0] : memref<12x72xbf16, #tpu.memory_space<vmem>>, vector<12x72xbf16>
    %c0_1 = arith.constant 0 : index
    %c0_2 = arith.constant 0 : index
    %1 = vector.load %arg2[%c0_1, %c0_2] : memref<72x512xbf16, #tpu.memory_space<vmem>>, vector<72x512xbf16>
    %cst = arith.constant dense<0.000000e+00> : vector<12x512xf32>
    %2 = tpu.matmul %0, %1, %cst {dimension_numbers = #tpu.dot_dimension_numbers<[1], [0], [0], [1], [0, 0, 1, 1], [], []>} : vector<12x72xbf16>, vector<72x512xbf16>, vector<12x512xf32> -> vector<12x512xf32>
    %c0_3 = arith.constant 0 : index
    %c0_4 = arith.constant 0 : index
    %3 = vector.load %arg3[%c0_3, %c0_4] : memref<12x1xf32, #tpu.memory_space<vmem>>, vector<12x1xf32>
    %4 = vector.broadcast %3 : vector<12x1xf32> to vector<12x512xf32>
    %5 = arith.addf %2, %4 : vector<12x512xf32>
    %6 = math.tanh %5 : vector<12x512xf32>
    %c0_5 = arith.constant 0 : index
    %c0_6 = arith.constant 0 : index
    %7 = vector.load %arg4[%c0_5, %c0_6] : memref<12x512xf32, #tpu.memory_space<vmem>>, vector<12x512xf32>
    tpu.vector_store %arg4[%c0_5, %c0_6], %6 {strides = array<i32>} : memref<12x512xf32, #tpu.memory_space<vmem>>, vector<12x512xf32>,
    return
  }
  func.func @transform_0(%arg0: i32) -> (i32, i32) {
    %c0_i32 = arith.constant 0 : i32
    %c0_i32_0 = arith.constant 0 : i32
    %c0_i32_1 = arith.constant 0 : i32
    return %c0_i32, %c0_i32_0 : i32, i32
  }
  func.func @transform_1(%arg0: i32) -> (i32, i32) {
    %c0_i32 = arith.constant 0 : i32
    %c0_i32_0 = arith.constant 0 : i32
    return %c0_i32, %arg0 : i32, i32
  }
  func.func @transform_2(%arg0: i32) -> (i32, i32) {
    %c0_i32 = arith.constant 0 : i32
    %c0_i32_0 = arith.constant 0 : i32
    %c0_i32_1 = arith.constant 0 : i32
    return %c0_i32, %c0_i32_0 : i32, i32
  }
  func.func @transform_3(%arg0: i32) -> (i32, i32) {
    %c0_i32 = arith.constant 0 : i32
    %c0_i32_0 = arith.constant 0 : i32
    return %c0_i32, %arg0 : i32, i32
  }
}

</mosaic_0001>

<bundles_post_ra>
// kernel: tile.8
= control target key start
LH: loop header
LB: loop body
LE: loop exit
PB: predicated region body
PF: predicated region fallthrough
CT: control target
= control target key end

     0   :  { %2 = vsyncpa [#allocation1], 0  ;;  %s44_s6 = smov [#allocation0]   ;;  %s70_s0 = inlined_call_operand.hbm [shape: f32[3], index: 0, kind: input, shape index: {}]   ;;  %s71_s1 = inlined_call_operand.vmem [shape: f32[4,3], index: 1, kind: output, shape index: {}]  }
   0x1   :  { %s9_s7 = sshll.u32 %s44_s6, 4  ;;  %s20_s10 = scalar_lea.hbm %s70_s0, 16  ;;  %s10_s7 = int_to_ptr.vmem [resolvable:$true] %s9_s7 }
   0x2   :  { %p21_p0 = scmp.ne.s32.totalorder %s70_s0, %s20_s10  ;;  %p24_p1 = scmp.lt.u32.totalorder %s20_s10, %s70_s0 }
   0x4   :  { %p26_p2 = pnand %p24_p1, %p21_p0 }
   0x6   :  { %29 = shalt.err (!%p26_p2)
}
   0x7   :  { %s30_s15 = scalar_lea.vmem %s10_s7, 16  ;;  %s34_s16 = scalar_lea.vmem %s10_s7, 32 }
   0x8   :  { %p31_p3 = scmp.ne.s32.totalorder %s10_s7, %s30_s15  ;;  %p35_p4 = scmp.lt.s32.totalorder %s10_s7, %s10_s7 }
   0x9   :  { %p36_p5 = scmp.lt.s32.totalorder %s34_s16, %s30_s15 }
   0xb   :  { %p37_p6 = por %p36_p5, %p35_p4 }
   0xd   :  { %p38_p7 = pnand %p37_p6, %p31_p3 }
   0xf   :  { %41 = shalt.err (!%p38_p7)
}
  0x10   :  { %12 = dma.hbm_to_vmem [thread:$0]  %s70_s0, 16, %s10_s7, [#allocation1]  }
  0x11   :  { %42 = dma.done.wait [#allocation1], 16  }
  0x12   :  { %43 = vsyncadd [#allocation1], 4294967280  ;;  %v16_v0 = vld [vmem:[#allocation0] ss:$0 sm:$0xff] }
  0x13   :  { %17 = vst [vmem:[%s71_s1] sm:$0xf] %v16_v0 }
  0x14   :  { %18 = vsyncpa [#allocation1], 1 }

// kernel: tile.0
= control target key start
LH: loop header
LB: loop body
LE: loop exit
PB: predicated region body
PF: predicated region fallthrough
CT: control target
= control target key end

     0   :  { %vm7_vm0 = vcmask 7168   ;;  %s26_s10 = smov 126   ;;  %s49_s0 = inlined_call_operand.vmem [shape: f32[4,3], index: 0, kind: input, shape index: {}]   ;;  %s50_s1 = inlined_call_operand.vmem [shape: f32[12,1], index: 1, kind: output, shape index: {}]  }
   0x1   :  { %v4_v0 = vld [vmem:[%s49_s0] sm:$0xf]  ;;  %s25_s0 = smov 127  }
   0x2   :  { %5 = vst [vmem:[#allocation0] sm:$0xf] %v4_v0 }
   0x9   :  { %v9_v1 = vld [vmem:[#allocation0] sm:$0xf]  }
   0xa   :  { %v6_v2 = vld [vmem:[#allocation0] sm:$0xf]   ;;  %10 = vrot.lane.b32.xlu0 %v9_v1, %s25_s0 }
   0xb   :  { %8 = vst.msk [vmem:[%s50_s1] ss:$3 sm:$0xf] %vm7_vm0, %v6_v2   ;;  %v15_v3 = vld [vmem:[#allocation0] sm:$0xf]  }
   0xe   :  { %16 = vrot.lane.b32.xlu0 %v15_v3, %s26_s10 }
  0x7c   :  { %v11_v4 = vpop.permute.xlu0 %10  }
  0x7d   :  { %21 = vst.msk [vmem:[%s50_s1 + $0x1] ss:$3 sm:$0xf] %vm7_vm0, %v11_v4  }
  0x80   :  { %v17_v5 = vpop.permute.xlu0 %16  }
  0x81   :  { %22 = vst.msk [vmem:[%s50_s1 + $0x2] ss:$3 sm:$0xf] %vm7_vm0, %v17_v5  }

// kernel: generator_forward.5
= control target key start
LH: loop header
LB: loop body
LE: loop exit
PB: predicated region body
PF: predicated region fallthrough
CT: control target
= control target key end

     0   :  { %v636_v3 = vmov 0   ;;  %vm115_vm0 = vcmask 261120   ;;  %vm283_vm1 = vcmask 1041408   ;;  %vm518_vm2 = vcmask 523264   ;;  %s833_s1 = inlined_call_operand.vmem [shape: bf16[32,1024], index: 1, kind: input, shape index: {}]   ;;  %s834_s0 = inlined_call_operand.vmem [shape: bf16[2,32], index: 0, kind: input, shape index: {}]   ;;  %s835_s2 = inlined_call_operand.vmem [shape: f32[1,64], index: 2, kind: input, shape index: {}]   ;;  %s836_s3 = inlined_call_operand.vmem [shape: f32[1,64], index: 3, kind: input, shape index: {}]   ;;  %s837_s4 = inlined_call_operand.vmem [shape: f32[2,1024], index: 4, kind: output, shape index: {}]  }
   0x1   :  { %v19_v0 = vld [vmem:[%s833_s1] sm:$0xff]  ;;  %v20_v2 = vld [vmem:[%s833_s1 + $0x8] sm:$0xff]  ;;  %151 = vmatprep.mubr.bf16.mxu0 %v636_v3  ;;  %192 = vmatprep.mubr.bf16.mxu1 %v636_v3  ;;  %v21_v15 = vld [vmem:[%s833_s1 + $0x10] sm:$0xff] }
   0x2   :  { %v23_v1 = vld [vmem:[%s833_s1 + $0x20] sm:$0xff]  ;;  %v24_v6 = vld [vmem:[%s833_s1 + $0x28] sm:$0xff]  ;;  %v25_v16 = vld [vmem:[%s833_s1 + $0x30] sm:$0xff] }
   0x3   :  { %v612_v4 = vcombine.high %v19_v0, %v23_v1  ;;  %v611_v5 = vcombine.low %v19_v0, %v23_v1  ;;  %v27_v7 = vld [vmem:[%s833_s1 + $0x40] sm:$0xff]  ;;  %v614_v9 = vcombine.high %v20_v2, %v24_v6  ;;  %v613_v11 = vcombine.low %v20_v2, %v24_v6  ;;  %v28_v12 = vld [vmem:[%s833_s1 + $0x48] sm:$0xff]  ;;  %v22_v18 = vld [vmem:[%s833_s1 + $0x18] sm:$0xff] }
   0x4   :  { %v31_v8 = vld [vmem:[%s833_s1 + $0x60] sm:$0xff]  ;;  %v32_v13 = vld [vmem:[%s833_s1 + $0x68] sm:$0xff]  ;;  %v26_v19 = vld [vmem:[%s833_s1 + $0x38] sm:$0xff]  ;;  %v616_v21 = vcombine.high %v21_v15, %v25_v16  ;;  %v615_v26 = vcombine.low %v21_v15, %v25_v16 }
   0x5   :  { %v620_v10 = vcombine.high %v27_v7, %v31_v8  ;;  %119 = vmatprep.subr.bf16.mxu0 %v612_v4  ;;  %v622_v14 = vcombine.high %v28_v12, %v32_v13  ;;  %160 = vmatprep.subr.bf16.mxu1 %v614_v9  ;;  %v619_v17 = vcombine.low %v27_v7, %v31_v8  ;;  %v29_v22 = vld [vmem:[%s833_s1 + $0x50] sm:$0xff]  ;;  %v18_v25 = vld [vmem:[%s834_s0] sm:$0x1]  ;;  %v30_v27 = vld [vmem:[%s833_s1 + $0x58] sm:$0xff]  ;;  %s637_s0 = smov 64  }
   0x6   :  { %120 = vmatpush1.bf16.msra.mxu0 %v611_v5  ;;  %161 = vmatpush1.bf16.msra.mxu1 %v613_v11  ;;  %v621_v20 = vcombine.low %v28_v12, %v32_v13  ;;  %v33_v23 = vld [vmem:[%s833_s1 + $0x70] sm:$0xff]  ;;  %v618_v24 = vcombine.high %v22_v18, %v26_v19  ;;  %v34_v28 = vld [vmem:[%s833_s1 + $0x78] sm:$0xff]  ;;  %v617_v30 = vcombine.low %v22_v18, %v26_v19 }
   0x7   :  { %121 = vmatprep.subr.bf16.mxu0 %v620_v10  ;;  %162 = vmatprep.subr.bf16.mxu1 %v622_v14  ;;  %v624_v29 = vcombine.high %v29_v22, %v33_v23  ;;  %v626_v31 = vcombine.high %v30_v27, %v34_v28  ;;  %v623_v32 = vcombine.low %v29_v22, %v33_v23 }
   0x8   :  { %v625_v33 = vcombine.low %v30_v27, %v34_v28 }
   0xa   :  { %122 = vmatpush1.bf16.msra.mxu0 %v619_v17  ;;  %163 = vmatpush1.bf16.msra.mxu1 %v621_v20 }
   0xb   :  { %201 = vmatprep.subr.bf16.mxu0 %v616_v21  ;;  %242 = vmatprep.subr.bf16.mxu1 %v618_v24 }
   0xd   :  { %627 = vmatmul.mubr.msk.bf16.vlgmr.msra.gmra.mrb[0].mxu0 %vm115_vm0, %v18_v25  ;;  %628 = vmatmul.mubr.msk.bf16.vlgmr.msra.gmra.mrb[0].mxu1 %vm115_vm0, %v18_v25 }
   0xe   :  { %202 = vmatpush1.bf16.msra.mxu0 %v615_v26  ;;  %233 = vmatprep.mubr.bf16.mxu0 %v636_v3 }
   0xf   :  { %203 = vmatprep.subr.bf16.mxu0 %v624_v29  ;;  %243 = vmatpush1.bf16.msra.mxu1 %v617_v30 }
  0x10   :  { %274 = vmatprep.mubr.bf16.mxu1 %v636_v3  ;;  %244 = vmatprep.subr.bf16.mxu1 %v626_v31 }
  0x12   :  { %204 = vmatpush1.bf16.msra.mxu0 %v623_v32 }
  0x13   :  { %245 = vmatpush1.bf16.msra.mxu1 %v625_v33 }
  0x15   :  { %629 = vmatmul.mubr.msk.bf16.vlgmr.msra.gmra.mrb[4].mxu0 %vm115_vm0, %v18_v25 }
  0x16   :  { %630 = vmatmul.mubr.msk.bf16.vlgmr.msra.gmra.mrb[4].mxu1 %vm115_vm0, %v18_v25 }
  0xe0   :  { %v719_v34 = vpop.f32.mrb[0].mxu0  ;;  %v727_v38 = vpop.f32.mrb[0].mxu1 }
  0xe1   :  { %v284_v35 = vsel %vm283_vm1, %v719_v34, 0.0  ;;  %v340_v36 = vmul.f32 %v719_v34, %v719_v34  ;;  %v725_v37 = vpop.f32.mrb[1].mxu0  ;;  %v298_v43 = vsel %vm283_vm1, %v727_v38, 0.0  ;;  %v735_v44 = vpop.f32.mrb[1].mxu1  ;;  %v342_v49 = vmul.f32 %v727_v38, %v727_v38 }
  0xe2   :  { %v285_v39 = vrot.slane %v284_v35, 4  ;;  %v291_v40 = vsel %vm283_vm1, %v725_v37, 0.0  ;;  %v341_v41 = vmul.f32 %v725_v37, %v725_v37  ;;  %v157_v42 = vpop.f32.mrb[2].mxu0  ;;  %v299_v48 = vrot.slane %v298_v43, 4  ;;  %v198_v50 = vpop.f32.mrb[2].mxu1 }
  0xe3   :  { %v348_v45 = vsel %vm283_vm1, %v340_v36, 0.0  ;;  %v292_v46 = vrot.slane %v291_v40, 4  ;;  %v158_v47 = vpop.f32.mrb[3].mxu0  ;;  %v305_v54 = vsel %vm283_vm1, %v735_v44, 0.0  ;;  %v199_v55 = vpop.f32.mrb[3].mxu1  ;;  %v362_v57 = vsel %vm283_vm1, %v342_v49, 0.0 }
  0xe4   :  { %v286_v51 = vadd.f32 %v285_v39, %v284_v35  ;;  %v349_v52 = vrot.slane %v348_v45, 4  ;;  %v355_v53 = vsel %vm283_vm1, %v341_v41, 0.0  ;;  %v306_v59 = vrot.slane %v305_v54, 4 }
  0xe5   :  { %v293_v56 = vadd.f32 %v292_v46, %v291_v40  ;;  %v343_v60 = vmul.f32 %v735_v44, %v735_v44  ;;  %v356_v61 = vrot.slane %v355_v53, 4  ;;  %v300_v63 = vadd.f32 %v299_v48, %v298_v43 }
  0xe6   :  { %v350_v58 = vadd.f32 %v349_v52, %v348_v45  ;;  %v287_v62 = vrot.slane %v286_v51, 2  ;;  %v363_v0 = vrot.slane %v362_v57, 4  ;;  %v307_v9 = vadd.f32 %v306_v59, %v305_v54 }
  0xe7   :  { %v369_v1 = vsel %vm283_vm1, %v343_v60, 0.0  ;;  %v294_v3 = vrot.slane %v293_v56, 2  ;;  %v357_v15 = vadd.f32 %v356_v61, %v355_v53  ;;  %v301_v21 = vrot.slane %v300_v63, 2 }
  0xe8   :  { %v747_v2 = vpop.f32.mrb[4].mxu0  ;;  %v288_v7 = vadd.f32 %v287_v62, %v286_v51  ;;  %v351_v8 = vrot.slane %v350_v58, 2  ;;  %v370_v22 = vrot.slane %v369_v1, 4  ;;  %v364_v26 = vadd.f32 %v363_v0, %v362_v57 }
  0xe9   :  { %v312_v4 = vsel %vm283_vm1, %v747_v2, 0.0  ;;  %v344_v5 = vmul.f32 %v747_v2, %v747_v2  ;;  %v753_v6 = vpop.f32.mrb[5].mxu0  ;;  %v759_v14 = vpop.f32.mrb[4].mxu1  ;;  %v295_v24 = vadd.f32 %v294_v3, %v293_v56  ;;  %v308_v31 = vrot.slane %v307_v9, 2 }
  0xea   :  { %v313_v10 = vrot.slane %v312_v4, 4  ;;  %v319_v11 = vsel %vm283_vm1, %v753_v6, 0.0  ;;  %v345_v12 = vmul.f32 %v753_v6, %v753_v6  ;;  %v239_v13 = vpop.f32.mrb[6].mxu0  ;;  %v289_v18 = vrot.slane %v288_v7, 1  ;;  %v762_v20 = vpop.f32.mrb[5].mxu1 }
  0xeb   :  { %v376_v16 = vsel %vm283_vm1, %v344_v5, 0.0  ;;  %v320_v17 = vrot.slane %v319_v11, 4  ;;  %v240_v19 = vpop.f32.mrb[7].mxu0  ;;  %v280_v25 = vpop.f32.mrb[6].mxu1  ;;  %v352_v29 = vadd.f32 %v351_v8, %v350_v58  ;;  %v296_v33 = vrot.slane %v295_v24, 1 }
  0xec   :  { %v383_v23 = vsel %vm283_vm1, %v345_v12, 0.0  ;;  %v314_v27 = vadd.f32 %v313_v10, %v312_v4  ;;  %v765_v28 = vadd.f32 %v289_v18, %v288_v7  ;;  %v281_v30 = vpop.f32.mrb[7].mxu1  ;;  %v377_v32 = vrot.slane %v376_v16, 4 }
  0xed   :  { %v326_v35 = vsel %vm283_vm1, %v759_v14, 0.0  ;;  %v321_v36 = vadd.f32 %v320_v17, %v319_v11  ;;  %v384_v39 = vrot.slane %v383_v23, 4  ;;  %v353_v40 = vrot.slane %v352_v29, 1 }
  0xee   :  { %405 = vrot.lane.b32.xlu0 %v765_v28, %s637_s0  ;;  %v327_v41 = vrot.slane %v326_v35, 4  ;;  %v371_v42 = vadd.f32 %v370_v22, %v369_v1  ;;  %v771_v43 = vadd.f32 %v296_v33, %v295_v24  ;;  %v346_v45 = vmul.f32 %v759_v14, %v759_v14 }
  0xef   :  { %v358_v46 = vrot.slane %v357_v15, 2  ;;  %v315_v47 = vrot.slane %v314_v27, 2  ;;  %v775_v48 = vadd.f32 %v353_v40, %v352_v29  ;;  %v333_v49 = vsel %vm283_vm1, %v762_v20, 0.0 }
  0xf0   :  { %v347_v50 = vmul.f32 %v762_v20, %v762_v20  ;;  %417 = vrot.lane.b32.xlu1 %v771_v43, %s637_s0  ;;  %v390_v51 = vsel %vm283_vm1, %v346_v45, 0.0  ;;  %v302_v53 = vadd.f32 %v301_v21, %v300_v63  ;;  %v365_v54 = vrot.slane %v364_v26, 2 }
  0xf1   :  { %v359_v52 = vadd.f32 %v358_v46, %v357_v15  ;;  %v378_v55 = vadd.f32 %v377_v32, %v376_v16  ;;  %v322_v56 = vrot.slane %v321_v36, 2  ;;  %v385_v57 = vadd.f32 %v384_v39, %v383_v23 }
  0xf2   :  { %410 = vrot.lane.b32.xlu0 %v775_v48, %s637_s0  ;;  %v328_v58 = vadd.f32 %v327_v41, %v326_v35  ;;  %v334_v60 = vrot.slane %v333_v49, 4  ;;  %v303_v61 = vrot.slane %v302_v53, 1  ;;  %v366_v62 = vadd.f32 %v365_v54, %v364_v26 }
  0xf3   :  { %v360_v59 = vrot.slane %v359_v52, 1  ;;  %v391_v0 = vrot.slane %v390_v51, 4  ;;  %v397_v1 = vsel %vm283_vm1, %v347_v50, 0.0  ;;  %v309_v3 = vadd.f32 %v308_v31, %v307_v9 }
  0xf4   :  { %v372_v4 = vrot.slane %v371_v42, 2  ;;  %v789_v63 = vadd.f32 %v303_v61, %v302_v53  ;;  %v367_v7 = vrot.slane %v366_v62, 1  ;;  %v316_v11 = vadd.f32 %v315_v47, %v314_v27 }
  0xf5   :  { %v787_v5 = vadd.f32 %v360_v59, %v359_v52  ;;  %v310_v8 = vrot.slane %v309_v3, 1  ;;  %v379_v12 = vrot.slane %v378_v55, 2  ;;  %v329_v13 = vrot.slane %v328_v58, 2 }
  0xf6   :  { %v373_v10 = vadd.f32 %v372_v4, %v371_v42  ;;  %v335_v15 = vadd.f32 %v334_v60, %v333_v49  ;;  %v398_v16 = vrot.slane %v397_v1, 4  ;;  %429 = vrot.lane.b32.xlu0 %v789_v63, %s637_s0  ;;  %v392_v9 = vadd.f32 %v391_v0, %v390_v51 }
  0xf7   :  { %422 = vrot.lane.b32.xlu1 %v787_v5, %s637_s0  ;;  %v368_v17 = vadd.f32 %v367_v7, %v366_v62  ;;  %v323_v18 = vadd.f32 %v322_v56, %v321_v36  ;;  %v386_v19 = vrot.slane %v385_v57, 2  ;;  %v311_v21 = vadd.f32 %v310_v8, %v309_v3 }
  0xf8   :  { %v374_v22 = vrot.slane %v373_v10, 1  ;;  %v317_v23 = vrot.slane %v316_v11, 1  ;;  %v380_v24 = vadd.f32 %v379_v12, %v378_v55  ;;  %v336_v25 = vrot.slane %v335_v15, 2 }
  0xf9   :  { %v399_v26 = vadd.f32 %v398_v16, %v397_v1  ;;  %v324_v27 = vrot.slane %v323_v18, 1  ;;  %v387_v29 = vadd.f32 %v386_v19, %v385_v57  ;;  %v330_v30 = vadd.f32 %v329_v13, %v328_v58 }
  0xfa   :  { %441 = vrot.lane.b32.xlu0 %v311_v21, %s637_s0  ;;  %v375_v31 = vadd.f32 %v374_v22, %v373_v10  ;;  %v318_v32 = vadd.f32 %v317_v23, %v316_v11  ;;  %v381_v33 = vrot.slane %v380_v24, 1  ;;  %v393_v35 = vrot.slane %v392_v9, 2 }
  0xfb   :  { %434 = vrot.lane.b32.xlu1 %v368_v17, %s637_s0  ;;  %v325_v36 = vadd.f32 %v324_v27, %v323_v18  ;;  %v331_v39 = vrot.slane %v330_v30, 1  ;;  %v337_v40 = vadd.f32 %v336_v25, %v335_v15  ;;  %v388_v42 = vrot.slane %v387_v29, 1 }
  0xfc   :  { %v382_v41 = vadd.f32 %v381_v33, %v380_v24  ;;  %v394_v45 = vadd.f32 %v393_v35, %v392_v9  ;;  %v400_v46 = vrot.slane %v399_v26, 2 }
  0xfd   :  { %v332_v47 = vadd.f32 %v331_v39, %v330_v30  ;;  %v389_v49 = vadd.f32 %v388_v42, %v387_v29  ;;  %v338_v51 = vrot.slane %v337_v40, 1 }
  0xfe   :  { %453 = vrot.lane.b32.xlu0 %v318_v32, %s637_s0  ;;  %v395_v50 = vrot.slane %v394_v45, 1  ;;  %v401_v52 = vadd.f32 %v400_v46, %v399_v26 }
  0xff   :  { %446 = vrot.lane.b32.xlu1 %v375_v31, %s637_s0  ;;  %v339_v54 = vadd.f32 %v338_v51, %v337_v40 }
 0x100   :  { %v396_v53 = vadd.f32 %v395_v50, %v394_v45  ;;  %v402_v55 = vrot.slane %v401_v52, 1 }
 0x102   :  { %465 = vrot.lane.b32.xlu0 %v325_v36, %s637_s0  ;;  %v403_v56 = vadd.f32 %v402_v55, %v401_v52 }
 0x103   :  { %458 = vrot.lane.b32.xlu1 %v382_v41, %s637_s0 }
 0x106   :  { %477 = vrot.lane.b32.xlu0 %v332_v47, %s637_s0 }
 0x107   :  { %470 = vrot.lane.b32.xlu1 %v389_v49, %s637_s0 }
 0x10a   :  { %489 = vrot.lane.b32.xlu0 %v339_v54, %s637_s0 }
 0x10b   :  { %482 = vrot.lane.b32.xlu1 %v396_v53, %s637_s0 }
 0x10f   :  { %494 = vrot.lane.b32.xlu1 %v403_v56, %s637_s0 }
 0x160   :  { %v406_v57 = vpop.permute.xlu0 %405 }
 0x161   :  { %v408_v58 = vadd.f32 %v406_v57, %v765_v28 }
 0x162   :  { %v418_v59 = vpop.permute.xlu1 %417 }
 0x163   :  { %v414_v60 = vadd.f32 %v408_v58, %v771_v43 }
 0x164   :  { %v411_v61 = vpop.permute.xlu0 %410 }
 0x165   :  { %v420_v62 = vadd.f32 %v418_v59, %v414_v60  ;;  %v413_v0 = vadd.f32 %v411_v61, %v775_v48 }
 0x167   :  { %v415_v1 = vadd.f32 %v413_v0, %v787_v5  ;;  %v426_v3 = vadd.f32 %v420_v62, %v789_v63 }
 0x168   :  { %v430_v7 = vpop.permute.xlu0 %429 }
 0x169   :  { %v423_v4 = vpop.permute.xlu1 %422  ;;  %v432_v10 = vadd.f32 %v430_v7, %v426_v3 }
 0x16a   :  { %v425_v8 = vadd.f32 %v423_v4, %v415_v1  ;;  %v638_v1 = vmov 1983009808  }
 0x16b   :  { %v438_v12 = vadd.f32 %v432_v10, %v311_v21  ;;  %v572_v3 = vunpack.c.l.s4 %v638_v1 }
 0x16c   :  { %v427_v11 = vadd.f32 %v425_v8, %v368_v17  ;;  %v442_v15 = vpop.permute.xlu0 %441 }
 0x16d   :  { %v435_v13 = vpop.permute.xlu1 %434  ;;  %v444_v16 = vadd.f32 %v442_v15, %v438_v12  ;;  %v573_v8 = vunpack.c.0.s8 %v572_v3 }
 0x16e   :  { %v437_v28 = vadd.f32 %v435_v13, %v427_v11 }
 0x16f   :  { %v450_v43 = vadd.f32 %v444_v16, %v318_v32 }
 0x170   :  { %v439_v9 = vadd.f32 %v437_v28, %v375_v31  ;;  %v454_v19 = vpop.permute.xlu0 %453 }
 0x171   :  { %v447_v18 = vpop.permute.xlu1 %446  ;;  %v456_v48 = vadd.f32 %v454_v19, %v450_v43 }
 0x172   :  { %v449_v22 = vadd.f32 %v447_v18, %v439_v9 }
 0x173   :  { %v462_v5 = vadd.f32 %v456_v48, %v325_v36 }
 0x174   :  { %v451_v23 = vadd.f32 %v449_v22, %v382_v41  ;;  %v466_v63 = vpop.permute.xlu0 %465 }
 0x175   :  { %v459_v24 = vpop.permute.xlu1 %458  ;;  %v468_v26 = vadd.f32 %v466_v63, %v462_v5 }
 0x176   :  { %v461_v25 = vadd.f32 %v459_v24, %v451_v23 }
 0x177   :  { %v474_v29 = vadd.f32 %v468_v26, %v332_v47  ;;  %v511_v47 = vlaneseq }
 0x178   :  { %v463_v27 = vadd.f32 %v461_v25, %v389_v49  ;;  %v478_v21 = vpop.permute.xlu0 %477 }
 0x179   :  { %v471_v17 = vpop.permute.xlu1 %470  ;;  %v480_v33 = vadd.f32 %v478_v21, %v474_v29  ;;  %v512_v57 = vshrl.u32 %v511_v47, 7 }
 0x17a   :  { %v473_v30 = vadd.f32 %v471_v17, %v463_v27 }
 0x17b   :  { %v486_v39 = vadd.f32 %v480_v33, %v339_v54  ;;  %v513_v54 = vsub.s32 0, %v512_v57  ;;  %v576_v12 = vsub.s32 %v573_v8, %v512_v57 }
 0x17c   :  { %v475_v35 = vadd.f32 %v473_v30, %v396_v53  ;;  %v490_v32 = vpop.permute.xlu0 %489  ;;  %v503_v53 = vld [vmem:[%s835_s2] sm:$0x1] }
 0x17d   :  { %v483_v31 = vpop.permute.xlu1 %482  ;;  %v492_v42 = vadd.f32 %v490_v32, %v486_v39 }
 0x17e   :  { %v485_v40 = vadd.f32 %v483_v31, %v475_v35 }
 0x17f   :  { %v498_v45 = vmul.f32 0.03125, %v492_v42 }
 0x180   :  { %v487_v46 = vadd.f32 %v485_v40, %v403_v56  ;;  %v507_v56 = vld [vmem:[%s836_s3] sm:$0x1] }
 0x181   :  { %v495_v41 = vpop.permute.xlu1 %494  ;;  %v500_v50 = vmul.f32 %v498_v45, %v498_v45 }
 0x182   :  { %v497_v36 = vadd.f32 %v495_v41, %v487_v46 }
 0x184   :  { %v499_v51 = vmul.f32 0.03125, %v497_v36 }
 0x186   :  { %v501_v52 = vsub.f32 %v499_v51, %v500_v50 }
 0x188   :  { %v502_v55 = vmax.f32 %v501_v52, 0.0 }
 0x18a   :  { %v504_v49 = vadd.f32 1e-05, %v502_v55 }
 0x18c   :  { %634 = vrsqrt.f32 %v504_v49 }
 0x196   :  { %v635_v58 = vpop.eup %634 }
 0x197   :  { %v506_v59 = vmul.f32 %v635_v58, %v503_v53 }
 0x199   :  { %v514_v60 = vrot.slane %v506_v59, %v513_v54  ;;  %v508_v61 = vmul.f32 %v506_v59, %v498_v45 }
 0x19b   :  { %515 = vrot.lane.b32.xlu0 %v514_v60, %s637_s0  ;;  %v509_v62 = vsub.f32 %v507_v56, %v508_v61 }
 0x19d   :  { %v524_v0 = vrot.slane %v509_v62, %v513_v54 }
 0x19f   :  { %525 = vrot.lane.b32.xlu1 %v524_v0, %s637_s0 }
 0x20d   :  { %v516_v4 = vpop.permute.xlu0 %515 }
 0x20e   :  { %v519_v7 = vsel %vm518_vm2, %v506_v59, %v516_v4 }
 0x20f   :  { %v532_v10 = vrot.slane %v519_v7, %v513_v54 }
 0x211   :  { %v526_v11 = vpop.permute.xlu1 %525  ;;  %v533_v13 = vmul.f32 %v532_v10, %v719_v34  ;;  %v534_v28 = vmul.f32 %v532_v10, %v725_v37  ;;  %v535_v16 = vmul.f32 %v532_v10, %v727_v38  ;;  %v536_v9 = vmul.f32 %v532_v10, %v735_v44 }
 0x212   :  { %v528_v15 = vsel %vm518_vm2, %v509_v62, %v526_v11  ;;  %v537_v18 = vmul.f32 %v532_v10, %v747_v2  ;;  %v538_v19 = vmul.f32 %v532_v10, %v753_v6  ;;  %v539_v22 = vmul.f32 %v532_v10, %v759_v14 }
 0x213   :  { %v544_v43 = vrot.slane %v528_v15, %v513_v54  ;;  %v540_v48 = vmul.f32 %v532_v10, %v762_v20 }
 0x215   :  { %v545_v23 = vadd.f32 %v544_v43, %v533_v13  ;;  %v546_v5 = vadd.f32 %v544_v43, %v534_v28  ;;  %v547_v24 = vadd.f32 %v544_v43, %v535_v16  ;;  %v548_v34 = vadd.f32 %v544_v43, %v536_v9 }
 0x216   :  { %v549_v63 = vadd.f32 %v544_v43, %v537_v18  ;;  %v550_v25 = vadd.f32 %v544_v43, %v538_v19  ;;  %v551_v37 = vadd.f32 %v544_v43, %v539_v22  ;;  %v552_v26 = vadd.f32 %v544_v43, %v540_v48 }
 0x217   :  { %v553_v38 = vmax.f32 %v545_v23, 0.0  ;;  %v554_v27 = vmax.f32 %v546_v5, 0.0  ;;  %v555_v44 = vmax.f32 %v547_v24, 0.0  ;;  %v556_v29 = vmax.f32 %v548_v34, 0.0 }
 0x218   :  { %v557_v17 = vmax.f32 %v549_v63, 0.0  ;;  %v558_v2 = vmax.f32 %v550_v25, 0.0  ;;  %v559_v21 = vmax.f32 %v551_v37, 0.0  ;;  %v560_v6 = vmax.f32 %v552_v26, 0.0 }
 0x219   :  { %v569_v30 = vcombine.low %v553_v38, %v554_v27  ;;  %v570_v14 = vcombine.low %v555_v44, %v556_v29 }
 0x21a   :  { %v586_v33 = vcombine.low %v557_v17, %v558_v2  ;;  %v587_v20 = vcombine.low %v559_v21, %v560_v6 }
 0x21b   :  { %v577_v35 = vrot.slane %v569_v30, %v576_v12  ;;  %v584_v39 = vrot.slane %v570_v14, %v576_v12 }
 0x21c   :  { %v594_v31 = vrot.slane %v586_v33, %v576_v12  ;;  %v601_v32 = vrot.slane %v587_v20, %v576_v12 }
 0x21d   :  { %v585_v40 = vcombine.low %v577_v35, %v584_v39 }
 0x21e   :  { %v602_v42 = vcombine.low %v594_v31, %v601_v32 }
 0x21f   :  { %605 = vst [vmem:[%s837_s4] sm:$0xff] %v585_v40 }
 0x220   :  { %606 = vst [vmem:[%s837_s4 + $0x8] sm:$0xff] %v602_v42 }

// kernel: generator_forward.6
= control target key start
LH: loop header
LB: loop body
LE: loop exit
PB: predicated region body
PF: predicated region fallthrough
CT: control target
= control target key end

     0   :  { %vm368_vm0 = vcmask 523264   ;;  %s825_s29 = smov 32   ;;  %vm596_vm1 = vcmask 261120   ;;  %vm599_vm2 = vcmask 785408   ;;  %s1047_s1 = inlined_call_operand.vmem [shape: bf16[576,128], index: 1, kind: input, shape index: {}]   ;;  %s1048_s0 = inlined_call_operand.vmem [shape: bf16[32,576], index: 0, kind: input, shape index: {}]   ;;  %s1049_s2 = inlined_call_operand.vmem [shape: f32[1,32], index: 2, kind: input, shape index: {}]   ;;  %s1050_s3 = inlined_call_operand.vmem [shape: f32[1,32], index: 3, kind: input, shape index: {}]   ;;  %s1051_s4 = inlined_call_operand.vmem [shape: f32[32,128], index: 4, kind: output, shape index: {}]  }
   0x1   :  { %v771_v0 = vld [vmem:[%s1047_s1 + $0x40] sm:$0xff]   ;;  %v775_v4 = vld [vmem:[%s1047_s1 + $0x48] sm:$0xff]   ;;  %v779_v8 = vld [vmem:[%s1047_s1 + $0x50] sm:$0xff]  }
   0x2   :  { %v772_v1 = vld [vmem:[%s1047_s1 + $0xc0] sm:$0xff]   ;;  %694 = vmatprep.subr.bf16.mxu0 %v771_v0  ;;  %v776_v5 = vld [vmem:[%s1047_s1 + $0xc8] sm:$0xff]   ;;  %v780_v9 = vld [vmem:[%s1047_s1 + $0xd0] sm:$0xff]  }
   0x3   :  { %v773_v2 = vld [vmem:[%s1047_s1] sm:$0xff]   ;;  %722 = vmatprep.subr.bf16.mxu1 %v772_v1  ;;  %v777_v6 = vld [vmem:[%s1047_s1 + $0x8] sm:$0xff]   ;;  %v781_v10 = vld [vmem:[%s1047_s1 + $0x10] sm:$0xff]  }
   0x4   :  { %v774_v3 = vld [vmem:[%s1047_s1 + $0x80] sm:$0xff]   ;;  %695 = vmatpush3.bf16.msra.mxu0 %v773_v2  ;;  %v778_v7 = vld [vmem:[%s1047_s1 + $0x88] sm:$0xff]   ;;  %v782_v11 = vld [vmem:[%s1047_s1 + $0x90] sm:$0xff]  }
   0x5   :  { %723 = vmatpush3.bf16.msra.mxu1 %v774_v3  ;;  %696 = vmatprep.subr.bf16.mxu0 %v775_v4  ;;  %v783_v12 = vld [vmem:[%s1047_s1 + $0x58] sm:$0xff]   ;;  %v787_v16 = vld [vmem:[%s1047_s1 + $0x60] sm:$0xff]   ;;  %v791_v20 = vld [vmem:[%s1047_s1 + $0x68] sm:$0xff]  }
   0x6   :  { %724 = vmatprep.subr.bf16.mxu1 %v776_v5  ;;  %v784_v13 = vld [vmem:[%s1047_s1 + $0xd8] sm:$0xff]   ;;  %v788_v17 = vld [vmem:[%s1047_s1 + $0xe0] sm:$0xff]   ;;  %v792_v21 = vld [vmem:[%s1047_s1 + $0xe8] sm:$0xff]  }
   0x7   :  { %v785_v14 = vld [vmem:[%s1047_s1 + $0x18] sm:$0xff]   ;;  %v789_v18 = vld [vmem:[%s1047_s1 + $0x20] sm:$0xff]   ;;  %v793_v22 = vld [vmem:[%s1047_s1 + $0x28] sm:$0xff]  }
   0x8   :  { %697 = vmatpush3.bf16.msra.mxu0 %v777_v6  ;;  %v786_v15 = vld [vmem:[%s1047_s1 + $0x98] sm:$0xff]   ;;  %v790_v19 = vld [vmem:[%s1047_s1 + $0xa0] sm:$0xff]   ;;  %v794_v23 = vld [vmem:[%s1047_s1 + $0xa8] sm:$0xff]  }
   0x9   :  { %725 = vmatpush3.bf16.msra.mxu1 %v778_v7  ;;  %698 = vmatprep.subr.bf16.mxu0 %v779_v8  ;;  %v795_v24 = vld [vmem:[%s1047_s1 + $0x70] sm:$0xff]   ;;  %v799_v28 = vld [vmem:[%s1047_s1 + $0x78] sm:$0xff]   ;;  %v808_v35 = vld [vmem:[%s1048_s0 + $0xc] ss:$20 sps:$4 sm:$0xff]  }
   0xa   :  { %726 = vmatprep.subr.bf16.mxu1 %v780_v9  ;;  %v796_v25 = vld [vmem:[%s1047_s1 + $0xf0] sm:$0xff]   ;;  %v800_v29 = vld [vmem:[%s1047_s1 + $0xf8] sm:$0xff]   ;;  %v809_v36 = vld [vmem:[%s1047_s1 + $0x100] sm:$0xff]   ;;  %456 = vmatprep.mubr.bf16.mxu1 %v808_v35 }
   0xb   :  { %v797_v26 = vld [vmem:[%s1047_s1 + $0x30] sm:$0xff]   ;;  %v801_v30 = vld [vmem:[%s1047_s1 + $0x38] sm:$0xff]   ;;  %v810_v37 = vld [vmem:[%s1047_s1 + $0x108] sm:$0xff]  }
   0xc   :  { %699 = vmatpush3.bf16.msra.mxu0 %v781_v10  ;;  %v798_v27 = vld [vmem:[%s1047_s1 + $0xb0] sm:$0xff]   ;;  %v802_v31 = vld [vmem:[%s1047_s1 + $0xb8] sm:$0xff]   ;;  %v811_v38 = vld [vmem:[%s1048_s0 + $0x2c] ss:$20 sps:$4 sm:$0xff]  }
   0xd   :  { %727 = vmatpush3.bf16.msra.mxu1 %v782_v11  ;;  %700 = vmatprep.subr.bf16.mxu0 %v783_v12  ;;  %v803_v32 = vld [vmem:[%s1048_s0] ss:$20 sps:$4 sm:$0xff]   ;;  %v805_v33 = vld [vmem:[%s1048_s0 + $0x4] ss:$20 sps:$4 sm:$0xff]   ;;  %v806_v34 = vld [vmem:[%s1048_s0 + $0x8] ss:$20 sps:$4 sm:$0xff]  }
   0xe   :  { %728 = vmatprep.subr.bf16.mxu1 %v784_v13  ;;  %407 = vmatprep.mubr.bf16.mxu0 %v805_v33  ;;  %v813_v39 = vld [vmem:[%s1048_s0 + $0x34] ss:$20 sps:$4 sm:$0xff]   ;;  %v816_v42 = vld [vmem:[%s1048_s0 + $0x30] ss:$20 sps:$4 sm:$0xff]   ;;  %v818_v44 = vld [vmem:[%s1047_s1 + $0x118] sm:$0xff]  }
   0xf   :  { %v815_v40 = vld [vmem:[%s1048_s0 + $0x28] ss:$20 sps:$4 sm:$0xff]   ;;  %v817_v41 = vld [vmem:[%s1047_s1 + $0x110] sm:$0xff]   ;;  %v820_v45 = vld [vmem:[%s1048_s0 + $0x38] ss:$20 sps:$4 sm:$0xff]   ;;  %s824_s1 = smov 96  }
  0x10   :  { %701 = vmatpush3.bf16.msra.mxu0 %v785_v14  ;;  %v819_v43 = vld [vmem:[%s1048_s0 + $0x10] ss:$20 sps:$4 sm:$0xff]   ;;  %s823_s0 = smov 64  }
  0x11   :  { %729 = vmatpush3.bf16.msra.mxu1 %v786_v15  ;;  %702 = vmatprep.subr.bf16.mxu0 %v787_v16 }
  0x12   :  { %730 = vmatprep.subr.bf16.mxu1 %v788_v17 }
  0x14   :  { %703 = vmatpush3.bf16.msra.mxu0 %v789_v18 }
  0x15   :  { %731 = vmatpush3.bf16.msra.mxu1 %v790_v19  ;;  %704 = vmatprep.subr.bf16.mxu0 %v791_v20 }
  0x16   :  { %732 = vmatprep.subr.bf16.mxu1 %v792_v21 }
  0x18   :  { %705 = vmatpush3.bf16.msra.mxu0 %v793_v22 }
  0x19   :  { %733 = vmatpush3.bf16.msra.mxu1 %v794_v23  ;;  %706 = vmatprep.subr.bf16.mxu0 %v795_v24 }
  0x1a   :  { %734 = vmatprep.subr.bf16.mxu1 %v796_v25 }
  0x1c   :  { %707 = vmatpush3.bf16.msra.mxu0 %v797_v26 }
  0x1d   :  { %735 = vmatpush3.bf16.msra.mxu1 %v798_v27  ;;  %708 = vmatprep.subr.bf16.mxu0 %v799_v28 }
  0x1e   :  { %736 = vmatprep.subr.bf16.mxu1 %v800_v29 }
  0x20   :  { %709 = vmatpush3.bf16.msra.mxu0 %v801_v30 }
  0x21   :  { %737 = vmatpush3.bf16.msra.mxu1 %v802_v31  ;;  %756 = vmatprep.subr.bf16.mxu0 %v809_v36 }
  0x23   :  { %408 = vmatmul.mubr.bf16.vlgmr.msra.gmra.mrb[0].mxu0 %v803_v32 }
  0x24   :  { %457 = vmatmul.mubr.bf16.vlgmr.msra.gmra.mrb[0].mxu1 %v806_v34  ;;  %757 = vmatpush3.bf16.msra.mxu0 %v809_v36 }
  0x25   :  { %758 = vmatprep.subr.bf16.mxu0 %v810_v37  ;;  %415 = vmatprep.mubr.bf16.mxu0 %v811_v38 }
  0x26   :  { %464 = vmatprep.mubr.bf16.mxu1 %v813_v39 }
  0x28   :  { %759 = vmatpush3.bf16.msra.mxu0 %v810_v37 }
  0x29   :  { %760 = vmatprep.subr.bf16.mxu0 %v817_v41 }
  0x2b   :  { %416 = vmatmul.mubr.bf16.gmra.mrb[4].mxu0 %v815_v40 }
  0x2c   :  { %465 = vmatmul.mubr.bf16.gmra.mrb[4].mxu1 %v816_v42  ;;  %764 = vmatprep.mubr.msk.bf16.mxu0 %vm368_vm0, %v819_v43 }
  0x2d   :  { %761 = vmatpush3.bf16.msra.mxu0 %v817_v41 }
  0x2e   :  { %762 = vmatprep.subr.bf16.mxu0 %v818_v44 }
  0x31   :  { %763 = vmatpush3.bf16.msra.mxu0 %v818_v44 }
  0x34   :  { %765 = vmatmul.mubr.msk.bf16.vlgmr.msra.gmra.mrb[8].mxu0 %vm368_vm0, %v820_v45 }
  0xf6   :  { %v710_v46 = vpop.f32.mrb[0].mxu0 }
  0xf7   :  { %v738_v47 = vpop.f32.mrb[0].mxu1  ;;  %v711_v48 = vpop.f32.mrb[1].mxu0 }
  0xf8   :  { %v712_v49 = vadd.f32 %v711_v48, %v710_v46  ;;  %v739_v50 = vpop.f32.mrb[1].mxu1  ;;  %v713_v51 = vpop.f32.mrb[2].mxu0 }
  0xf9   :  { %v740_v52 = vadd.f32 %v739_v50, %v738_v47  ;;  %v741_v53 = vpop.f32.mrb[2].mxu1  ;;  %v714_v54 = vpop.f32.mrb[3].mxu0 }
  0xfa   :  { %v715_v55 = vadd.f32 %v714_v54, %v713_v51  ;;  %v742_v56 = vpop.f32.mrb[3].mxu1 }
  0xfb   :  { %v743_v57 = vadd.f32 %v742_v56, %v741_v53  ;;  %v459_v58 = vadd.f32 %v740_v52, %v712_v49 }
  0xfd   :  { %v462_v59 = vadd.f32 %v743_v57, %v715_v55 }
  0xfe   :  { %v716_v60 = vpop.f32.mrb[4].mxu0 }
  0xff   :  { %v744_v61 = vpop.f32.mrb[4].mxu1  ;;  %v717_v62 = vpop.f32.mrb[5].mxu0 }
 0x100   :  { %v718_v63 = vadd.f32 %v717_v62, %v716_v60  ;;  %v745_v0 = vpop.f32.mrb[5].mxu1  ;;  %v719_v1 = vpop.f32.mrb[6].mxu0  ;;  %v575_v60 = vld [vmem:[%s1049_s2] sm:$0x1] }
 0x101   :  { %v746_v2 = vadd.f32 %v745_v0, %v744_v61  ;;  %v747_v3 = vpop.f32.mrb[6].mxu1  ;;  %v720_v4 = vpop.f32.mrb[7].mxu0  ;;  %v579_v0 = vld [vmem:[%s1050_s3] sm:$0x1] }
 0x102   :  { %v721_v5 = vadd.f32 %v720_v4, %v719_v1  ;;  %v748_v6 = vpop.f32.mrb[7].mxu1 }
 0x103   :  { %v749_v7 = vadd.f32 %v748_v6, %v747_v3  ;;  %v467_v8 = vadd.f32 %v746_v2, %v718_v63 }
 0x105   :  { %v470_v9 = vadd.f32 %v749_v7, %v721_v5 }
 0x107   :  { %v766_v10 = vpop.f32.mrb[8].mxu0 }
 0x108   :  { %v991_v11 = vadd.f32 %v766_v10, %v467_v8  ;;  %v507_v12 = vpop.f32.mrb[9].mxu0 }
 0x109   :  { %v993_v13 = vadd.f32 %v507_v12, %v459_v58  ;;  %v767_v14 = vpop.f32.mrb[10].mxu0  ;;  %v583_v58 = vlaneseq }
 0x10a   :  { %v995_v15 = vadd.f32 %v767_v14, %v470_v9  ;;  %v510_v16 = vpop.f32.mrb[11].mxu0  ;;  %v533_v21 = vmul.f32 %v991_v11, %v991_v11 }
 0x10b   :  { %v997_v17 = vadd.f32 %v510_v16, %v462_v59  ;;  %v531_v18 = vmul.f32 %v993_v13, %v993_v13  ;;  %v584_v59 = vshrl.u32 %v583_v58, 7 }
 0x10c   :  { %v534_v24 = vmul.f32 %v995_v15, %v995_v15 }
 0x10d   :  { %v522_v19 = vadd.f32 %v997_v17, %v993_v13  ;;  %v532_v20 = vmul.f32 %v997_v17, %v997_v17  ;;  %v585_v61 = vsub.s32 0, %v584_v59 }
 0x10f   :  { %v523_v22 = vadd.f32 %v522_v19, %v991_v11  ;;  %v535_v23 = vadd.f32 %v532_v20, %v531_v18 }
 0x111   :  { %v524_v25 = vadd.f32 %v523_v22, %v995_v15  ;;  %v536_v26 = vadd.f32 %v535_v23, %v533_v21 }
 0x113   :  { %v525_v27 = vrot.slane %v524_v25, 4  ;;  %v537_v28 = vadd.f32 %v536_v26, %v534_v24 }
 0x115   :  { %v526_v29 = vadd.f32 %v525_v27, %v524_v25  ;;  %v538_v30 = vrot.slane %v537_v28, 4 }
 0x117   :  { %v527_v31 = vrot.slane %v526_v29, 2  ;;  %v539_v32 = vadd.f32 %v538_v30, %v537_v28 }
 0x119   :  { %v528_v33 = vadd.f32 %v527_v31, %v526_v29  ;;  %v540_v34 = vrot.slane %v539_v32, 2 }
 0x11b   :  { %v529_v35 = vrot.slane %v528_v33, 1  ;;  %v541_v36 = vadd.f32 %v540_v34, %v539_v32 }
 0x11d   :  { %v530_v37 = vadd.f32 %v529_v35, %v528_v33  ;;  %v542_v38 = vrot.slane %v541_v36, 1 }
 0x11f   :  { %554 = vrot.lane.b32.xlu1 %v530_v37, %s823_s0  ;;  %545 = vrot.lane.b32.xlu0 %v530_v37, %s824_s1  ;;  %v543_v39 = vadd.f32 %v542_v38, %v541_v36 }
 0x123   :  { %558 = vrot.lane.b32.xlu1 %v543_v39, %s823_s0  ;;  %550 = vrot.lane.b32.xlu0 %v543_v39, %s824_s1 }
 0x127   :  { %566 = vrot.lane.b32.xlu1 %v543_v39, %s825_s29  ;;  %562 = vrot.lane.b32.xlu0 %v530_v37, %s825_s29 }
 0x191   :  { %v555_v40 = vpop.permute.xlu1 %554  ;;  %v546_v41 = vpop.permute.xlu0 %545 }
 0x192   :  { %v548_v42 = vadd.f32 %v546_v41, %v530_v37 }
 0x194   :  { %v557_v47 = vadd.f32 %v555_v40, %v548_v42 }
 0x195   :  { %v559_v43 = vpop.permute.xlu1 %558  ;;  %v551_v44 = vpop.permute.xlu0 %550 }
 0x196   :  { %v553_v45 = vadd.f32 %v551_v44, %v543_v39 }
 0x198   :  { %v561_v46 = vadd.f32 %v559_v43, %v553_v45 }
 0x199   :  { %v567_v48 = vpop.permute.xlu1 %566  ;;  %v563_v49 = vpop.permute.xlu0 %562 }
 0x19a   :  { %v569_v50 = vadd.f32 %v567_v48, %v561_v46  ;;  %v565_v51 = vadd.f32 %v563_v49, %v557_v47 }
 0x19c   :  { %v570_v52 = vmul.f32 0.0078125, %v565_v51  ;;  %v571_v53 = vmul.f32 0.0078125, %v569_v50 }
 0x19e   :  { %v572_v54 = vmul.f32 %v570_v52, %v570_v52 }
 0x1a0   :  { %v573_v55 = vsub.f32 %v571_v53, %v572_v54 }
 0x1a2   :  { %v574_v56 = vmax.f32 %v573_v55, 0.0 }
 0x1a4   :  { %v576_v57 = vadd.f32 1e-05, %v574_v56 }
 0x1a6   :  { %821 = vrsqrt.f32 %v576_v57 }
 0x1b0   :  { %v822_v62 = vpop.eup %821 }
 0x1b1   :  { %v578_v63 = vmul.f32 %v822_v62, %v575_v60 }
 0x1b3   :  { %v580_v1 = vmul.f32 %v578_v63, %v570_v52  ;;  %v586_v2 = vrot.slane %v578_v63, %v585_v61 }
 0x1b5   :  { %v581_v3 = vsub.f32 %v579_v0, %v580_v1  ;;  %590 = vrot.lane.b32.xlu1 %v586_v2, %s823_s0  ;;  %587 = vrot.lane.b32.xlu0 %v586_v2, %s825_s29 }
 0x1b7   :  { %v605_v4 = vrot.slane %v581_v3, %v585_v61 }
 0x1b9   :  { %593 = vrot.lane.b32.xlu0 %v586_v2, %s824_s1  ;;  %606 = vrot.lane.b32.xlu1 %v605_v4, %s825_s29 }
 0x1bd   :  { %609 = vrot.lane.b32.xlu0 %v605_v4, %s823_s0  ;;  %612 = vrot.lane.b32.xlu1 %v605_v4, %s824_s1 }
 0x227   :  { %v591_v5 = vpop.permute.xlu1 %590  ;;  %v588_v6 = vpop.permute.xlu0 %587 }
 0x228   :  { %v597_v7 = vsel %vm596_vm1, %v578_v63, %v588_v6 }
 0x229   :  { %v598_v8 = vsel %vm368_vm0, %v597_v7, %v591_v5 }
 0x22b   :  { %v594_v9 = vpop.permute.xlu0 %593  ;;  %v607_v10 = vpop.permute.xlu1 %606 }
 0x22c   :  { %v600_v12 = vsel %vm599_vm2, %v598_v8, %v594_v9  ;;  %v615_v16 = vsel %vm596_vm1, %v581_v3, %v607_v10 }
 0x22d   :  { %v621_v14 = vrot.slane %v600_v12, %v585_v61 }
 0x22f   :  { %v610_v18 = vpop.permute.xlu0 %609  ;;  %v613_v19 = vpop.permute.xlu1 %612  ;;  %v622_v21 = vmul.f32 %v621_v14, %v993_v13  ;;  %v623_v23 = vmul.f32 %v621_v14, %v997_v17  ;;  %v624_v24 = vmul.f32 %v621_v14, %v991_v11  ;;  %v625_v25 = vmul.f32 %v621_v14, %v995_v15 }
 0x230   :  { %v616_v20 = vsel %vm368_vm0, %v615_v16, %v610_v18 }
 0x231   :  { %v617_v22 = vsel %vm599_vm2, %v616_v20, %v613_v19 }
 0x232   :  { %v629_v26 = vrot.slane %v617_v22, %v585_v61 }
 0x234   :  { %v630_v27 = vadd.f32 %v629_v26, %v622_v21  ;;  %v631_v28 = vadd.f32 %v629_v26, %v623_v23  ;;  %v632_v29 = vadd.f32 %v629_v26, %v624_v24  ;;  %v633_v30 = vadd.f32 %v629_v26, %v625_v25 }
 0x236   :  { %v634_v31 = vmax.f32 %v630_v27, 0.0  ;;  %v635_v32 = vmax.f32 %v631_v28, 0.0  ;;  %v636_v33 = vmax.f32 %v632_v29, 0.0  ;;  %v637_v34 = vmax.f32 %v633_v30, 0.0 }
 0x238   :  { %638 = vst [vmem:[%s1051_s4] sm:$0xff] %v634_v31  ;;  %639 = vst [vmem:[%s1051_s4 + $0x8] sm:$0xff] %v635_v32 }
 0x239   :  { %640 = vst [vmem:[%s1051_s4 + $0x10] sm:$0xff] %v636_v33  ;;  %641 = vst [vmem:[%s1051_s4 + $0x18] sm:$0xff] %v637_v34 }

// kernel: generator_forward.7
= control target key start
LH: loop header
LB: loop body
LE: loop exit
PB: predicated region body
PF: predicated region fallthrough
CT: control target
= control target key end

     0   :  { %vm314_vm0 = vcmask 261120   ;;  %vm533_vm1 = vcmask 523264   ;;  %s993_s19 = smov 112   ;;  %s994_s20 = smov 80   ;;  %vm676_vm2 = vcmask 130048   ;;  %vm679_vm3 = vcmask 392192   ;;  %s1371_s1 = inlined_call_operand.vmem [shape: bf16[288,64], index: 1, kind: input, shape index: {}]   ;;  %s1372_s0 = inlined_call_operand.vmem [shape: bf16[128,288], index: 0, kind: input, shape index: {}]   ;;  %s1373_s2 = inlined_call_operand.vmem [shape: f32[1,16], index: 2, kind: input, shape index: {}]   ;;  %s1374_s3 = inlined_call_operand.vmem [shape: f32[1,16], index: 3, kind: input, shape index: {}]   ;;  %s1375_s4 = inlined_call_operand.vmem [shape: f32[128,64], index: 4, kind: output, shape index: {}]  }
   0x1   :  { %v940_v0 = vld [vmem:[%s1371_s1 + $0x40] sm:$0xff]   ;;  %v942_v2 = vld [vmem:[%s1371_s1 + $0x48] sm:$0xff]   ;;  %v944_v4 = vld [vmem:[%s1371_s1 + $0x50] sm:$0xff]   ;;  %s995_s25 = smov 32   ;;  %s996_s26 = smov 16  }
   0x2   :  { %v941_v1 = vld [vmem:[%s1371_s1] sm:$0xff]   ;;  %824 = vmatprep.subr.bf16.mxu0 %v940_v0  ;;  %918 = vmatprep.subr.bf16.mxu1 %v940_v0  ;;  %v943_v3 = vld [vmem:[%s1371_s1 + $0x8] sm:$0xff]   ;;  %v945_v5 = vld [vmem:[%s1371_s1 + $0x10] sm:$0xff]   ;;  %s997_s27 = smov 48  }
   0x3   :  { %825 = vmatpush3.bf16.msra.mxu0 %v941_v1  ;;  %926 = vmatpush3.bf16.msra.mxu1 %v941_v1  ;;  %v946_v6 = vld [vmem:[%s1371_s1 + $0x58] sm:$0xff]   ;;  %v948_v8 = vld [vmem:[%s1371_s1 + $0x60] sm:$0xff]   ;;  %v950_v10 = vld [vmem:[%s1371_s1 + $0x68] sm:$0xff]  }
   0x4   :  { %826 = vmatprep.subr.bf16.mxu0 %v942_v2  ;;  %919 = vmatprep.subr.bf16.mxu1 %v942_v2  ;;  %v947_v7 = vld [vmem:[%s1371_s1 + $0x18] sm:$0xff]   ;;  %v949_v9 = vld [vmem:[%s1371_s1 + $0x20] sm:$0xff]   ;;  %v951_v13 = vld [vmem:[%s1371_s1 + $0x28] sm:$0xff]  }
   0x5   :  { %v958_v11 = vld [vmem:[%s1372_s0 + $0x4] ss:$12 sps:$4 sm:$0xff]   ;;  %v961_v12 = vld [vmem:[%s1372_s0 + $0x94] ss:$12 sps:$4 sm:$0xff]   ;;  %v954_v16 = vld [vmem:[%s1371_s1 + $0x78] sm:$0xff]  }
   0x6   :  { %v952_v14 = vld [vmem:[%s1371_s1 + $0x70] sm:$0xff]   ;;  %371 = vmatprep.mubr.bf16.mxu0 %v958_v11  ;;  %419 = vmatprep.mubr.bf16.mxu1 %v961_v12  ;;  %v955_v17 = vld [vmem:[%s1371_s1 + $0x38] sm:$0xff]   ;;  %v956_v18 = vld [vmem:[%s1372_s0] ss:$12 sps:$4 sm:$0xff]  }
   0x7   :  { %827 = vmatpush3.bf16.msra.mxu0 %v943_v3  ;;  %927 = vmatpush3.bf16.msra.mxu1 %v943_v3  ;;  %v953_v15 = vld [vmem:[%s1371_s1 + $0x30] sm:$0xff]   ;;  %v962_v19 = vld [vmem:[%s1371_s1 + $0x80] sm:$0xff]   ;;  %v963_v21 = vld [vmem:[%s1372_s0 + $0x1c] ss:$12 sps:$4 sm:$0xff]  }
   0x8   :  { %828 = vmatprep.subr.bf16.mxu0 %v944_v4  ;;  %920 = vmatprep.subr.bf16.mxu1 %v944_v4  ;;  %v959_v20 = vld [vmem:[%s1372_s0 + $0x90] ss:$12 sps:$4 sm:$0xff]   ;;  %v965_v22 = vld [vmem:[%s1372_s0 + $0xac] ss:$12 sps:$4 sm:$0xff]   ;;  %v968_v25 = vld [vmem:[%s1372_s0 + $0xa8] ss:$12 sps:$4 sm:$0xff]  }
   0x9   :  { %v969_v23 = vld [vmem:[%s1371_s1 + $0x88] sm:$0xff]   ;;  %v967_v24 = vld [vmem:[%s1372_s0 + $0x18] ss:$12 sps:$4 sm:$0xff]   ;;  %v970_v26 = vld [vmem:[%s1372_s0 + $0x34] ss:$12 sps:$4 sm:$0xff]  }
   0xa   :  { %v972_v27 = vld [vmem:[%s1372_s0 + $0x8] ss:$12 sps:$4 sm:$0xff]   ;;  %v973_v28 = vld [vmem:[%s1372_s0 + $0x30] ss:$12 sps:$4 sm:$0xff]   ;;  %v974_v29 = vld [vmem:[%s1372_s0 + $0x20] ss:$12 sps:$4 sm:$0xff]  }
   0xb   :  { %829 = vmatpush3.bf16.msra.mxu0 %v945_v5  ;;  %928 = vmatpush3.bf16.msra.mxu1 %v945_v5  ;;  %v975_v30 = vld [vmem:[%s1372_s0 + $0x4c] ss:$12 sps:$4 sm:$0xff]   ;;  %v978_v32 = vld [vmem:[%s1372_s0 + $0x48] ss:$12 sps:$4 sm:$0xff]   ;;  %v979_v33 = vld [vmem:[%s1372_s0 + $0x50] ss:$12 sps:$4 sm:$0xff]  }
   0xc   :  { %830 = vmatprep.subr.bf16.mxu0 %v946_v6  ;;  %921 = vmatprep.subr.bf16.mxu1 %v946_v6  ;;  %v977_v31 = vld [vmem:[%s1372_s0 + $0x38] ss:$12 sps:$4 sm:$0xff]   ;;  %v982_v35 = vld [vmem:[%s1372_s0 + $0x68] ss:$12 sps:$4 sm:$0xff]   ;;  %v983_v36 = vld [vmem:[%s1372_s0 + $0x60] ss:$12 sps:$4 sm:$0xff]  }
   0xd   :  { %v980_v34 = vld [vmem:[%s1372_s0 + $0x64] ss:$12 sps:$4 sm:$0xff]   ;;  %v984_v37 = vld [vmem:[%s1372_s0 + $0x80] ss:$12 sps:$4 sm:$0xff]   ;;  %v985_v38 = vld [vmem:[%s1372_s0 + $0x7c] ss:$12 sps:$4 sm:$0xff]  }
   0xe   :  { %v987_v39 = vld [vmem:[%s1372_s0 + $0x98] ss:$12 sps:$4 sm:$0xff]   ;;  %v989_v41 = vld [vmem:[%s1372_s0 + $0xb0] ss:$12 sps:$4 sm:$0xff]  }
   0xf   :  { %831 = vmatpush3.bf16.msra.mxu0 %v947_v7  ;;  %929 = vmatpush3.bf16.msra.mxu1 %v947_v7  ;;  %v988_v40 = vld [vmem:[%s1372_s0 + $0x78] ss:$12 sps:$4 sm:$0xff]   ;;  %s992_s0 = smov 96  }
  0x10   :  { %832 = vmatprep.subr.bf16.mxu0 %v948_v8  ;;  %922 = vmatprep.subr.bf16.mxu1 %v948_v8 }
  0x13   :  { %833 = vmatpush3.bf16.msra.mxu0 %v949_v9  ;;  %930 = vmatpush3.bf16.msra.mxu1 %v949_v9 }
  0x14   :  { %834 = vmatprep.subr.bf16.mxu0 %v950_v10  ;;  %923 = vmatprep.subr.bf16.mxu1 %v950_v10 }
  0x17   :  { %835 = vmatpush3.bf16.msra.mxu0 %v951_v13  ;;  %931 = vmatpush3.bf16.msra.mxu1 %v951_v13 }
  0x18   :  { %836 = vmatprep.subr.bf16.mxu0 %v952_v14  ;;  %924 = vmatprep.subr.bf16.mxu1 %v952_v14 }
  0x1b   :  { %837 = vmatpush3.bf16.msra.mxu0 %v953_v15  ;;  %932 = vmatpush3.bf16.msra.mxu1 %v953_v15 }
  0x1c   :  { %838 = vmatprep.subr.bf16.mxu0 %v954_v16  ;;  %925 = vmatprep.subr.bf16.mxu1 %v954_v16 }
  0x1f   :  { %839 = vmatpush3.bf16.msra.mxu0 %v955_v17  ;;  %933 = vmatpush3.bf16.msra.mxu1 %v955_v17 }
  0x20   :  { %898 = vmatprep.subr.bf16.mxu1 %v962_v19 }
  0x22   :  { %372 = vmatmul.mubr.bf16.vlgmr.msra.gmra.mrb[0].mxu0 %v956_v18  ;;  %420 = vmatmul.mubr.bf16.vlgmr.msra.gmra.mrb[0].mxu1 %v959_v20 }
  0x23   :  { %899 = vmatpush3.bf16.msra.mxu1 %v962_v19  ;;  %379 = vmatprep.mubr.bf16.mxu0 %v963_v21 }
  0x24   :  { %427 = vmatprep.mubr.bf16.mxu1 %v965_v22  ;;  %900 = vmatprep.subr.bf16.mxu1 %v969_v23 }
  0x27   :  { %901 = vmatpush3.bf16.msra.mxu1 %v969_v23 }
  0x2a   :  { %380 = vmatmul.mubr.bf16.gmra.mrb[4].mxu0 %v967_v24  ;;  %428 = vmatmul.mubr.bf16.gmra.mrb[4].mxu1 %v968_v25 }
  0x2b   :  { %387 = vmatprep.mubr.bf16.mxu0 %v970_v26  ;;  %902 = vmatprep.mubr.msk.bf16.mxu1 %vm314_vm0, %v972_v27 }
  0x32   :  { %388 = vmatmul.mubr.bf16.gmra.mrb[8].mxu0 %v973_v28  ;;  %903 = vmatmul.mubr.msk.bf16.vlgmr.msra.gmra.mrb[8].mxu1 %vm314_vm0, %v974_v29 }
  0x33   :  { %395 = vmatprep.mubr.bf16.mxu0 %v975_v30  ;;  %906 = vmatprep.mubr.msk.bf16.mxu1 %vm314_vm0, %v977_v31 }
  0x3a   :  { %396 = vmatmul.mubr.bf16.gmra.mrb[12].mxu0 %v978_v32  ;;  %907 = vmatmul.mubr.msk.bf16.gmra.mrb[12].mxu1 %vm314_vm0, %v979_v33 }
  0x3b   :  { %403 = vmatprep.mubr.bf16.mxu0 %v980_v34  ;;  %910 = vmatprep.mubr.msk.bf16.mxu1 %vm314_vm0, %v982_v35 }
  0x42   :  { %404 = vmatmul.mubr.bf16.gmra.mrb[16].mxu0 %v983_v36  ;;  %911 = vmatmul.mubr.msk.bf16.gmra.mrb[16].mxu1 %vm314_vm0, %v984_v37 }
  0x43   :  { %411 = vmatprep.mubr.bf16.mxu0 %v985_v38  ;;  %914 = vmatprep.mubr.msk.bf16.mxu1 %vm314_vm0, %v987_v39 }
  0x4a   :  { %412 = vmatmul.mubr.bf16.gmra.mrb[20].mxu0 %v988_v40  ;;  %915 = vmatmul.mubr.msk.bf16.gmra.mrb[20].mxu1 %vm314_vm0, %v989_v41 }
  0xf5   :  { %v840_v42 = vpop.f32.mrb[0].mxu0  ;;  %v876_v43 = vpop.f32.mrb[0].mxu1 }
  0xf6   :  { %v841_v44 = vpop.f32.mrb[1].mxu0  ;;  %v877_v45 = vpop.f32.mrb[1].mxu1 }
  0xf7   :  { %v842_v46 = vadd.f32 %v841_v44, %v840_v42  ;;  %v843_v47 = vpop.f32.mrb[2].mxu0  ;;  %v1157_v48 = vadd.f32 %v877_v45, %v876_v43  ;;  %v879_v49 = vpop.f32.mrb[2].mxu1 }
  0xf8   :  { %v844_v50 = vpop.f32.mrb[3].mxu0  ;;  %v880_v51 = vpop.f32.mrb[3].mxu1 }
  0xf9   :  { %v845_v52 = vadd.f32 %v844_v50, %v843_v47  ;;  %v1159_v53 = vadd.f32 %v880_v51, %v879_v49 }
  0xfd   :  { %v846_v54 = vpop.f32.mrb[4].mxu0  ;;  %v882_v55 = vpop.f32.mrb[4].mxu1 }
  0xfe   :  { %v847_v56 = vpop.f32.mrb[5].mxu0  ;;  %v883_v57 = vpop.f32.mrb[5].mxu1 }
  0xff   :  { %v848_v58 = vadd.f32 %v847_v56, %v846_v54  ;;  %v849_v59 = vpop.f32.mrb[6].mxu0  ;;  %v1161_v60 = vadd.f32 %v883_v57, %v882_v55  ;;  %v885_v61 = vpop.f32.mrb[6].mxu1 }
 0x100   :  { %v850_v62 = vpop.f32.mrb[7].mxu0  ;;  %v886_v63 = vpop.f32.mrb[7].mxu1 }
 0x101   :  { %v851_v0 = vadd.f32 %v850_v62, %v849_v59  ;;  %v1163_v1 = vadd.f32 %v886_v63, %v885_v61 }
 0x105   :  { %v852_v2 = vpop.f32.mrb[8].mxu0  ;;  %v904_v3 = vpop.f32.mrb[8].mxu1 }
 0x106   :  { %v1165_v4 = vadd.f32 %v904_v3, %v848_v58  ;;  %v853_v5 = vpop.f32.mrb[9].mxu0  ;;  %v470_v6 = vpop.f32.mrb[9].mxu1 }
 0x107   :  { %v854_v7 = vadd.f32 %v853_v5, %v852_v2  ;;  %v1167_v8 = vadd.f32 %v842_v46, %v470_v6  ;;  %v855_v9 = vpop.f32.mrb[10].mxu0  ;;  %v905_v10 = vpop.f32.mrb[10].mxu1 }
 0x108   :  { %v1169_v11 = vadd.f32 %v905_v10, %v851_v0  ;;  %v856_v12 = vpop.f32.mrb[11].mxu0  ;;  %v473_v13 = vpop.f32.mrb[11].mxu1  ;;  %v573_v17 = vmul.f32 %v1165_v4, %v1165_v4  ;;  %v537_v23 = vsel %vm533_vm1, %v1165_v4, 0.0 }
 0x109   :  { %v571_v14 = vmul.f32 %v1167_v8, %v1167_v8  ;;  %v857_v15 = vadd.f32 %v856_v12, %v855_v9  ;;  %v1173_v16 = vadd.f32 %v845_v52, %v473_v13  ;;  %v534_v18 = vsel %vm533_vm1, %v1167_v8, 0.0 }
 0x10a   :  { %v574_v21 = vmul.f32 %v1169_v11, %v1169_v11  ;;  %v590_v32 = vsel %vm533_vm1, %v573_v17, 0.0  ;;  %v539_v33 = vsel %vm533_vm1, %v1169_v11, 0.0 }
 0x10b   :  { %v535_v19 = vsel %vm533_vm1, %v1173_v16, 0.0  ;;  %v572_v20 = vmul.f32 %v1173_v16, %v1173_v16  ;;  %v587_v24 = vsel %vm533_vm1, %v571_v14, 0.0 }
 0x10c   :  { %v536_v22 = vadd.f32 %v535_v19, %v534_v18  ;;  %v592_v38 = vsel %vm533_vm1, %v574_v21, 0.0 }
 0x10d   :  { %v588_v25 = vsel %vm533_vm1, %v572_v20, 0.0  ;;  %v858_v26 = vpop.f32.mrb[12].mxu0  ;;  %v908_v27 = vpop.f32.mrb[12].mxu1 }
 0x10e   :  { %v538_v28 = vadd.f32 %v537_v23, %v536_v22  ;;  %v589_v29 = vadd.f32 %v588_v25, %v587_v24  ;;  %v859_v30 = vpop.f32.mrb[13].mxu0  ;;  %v486_v31 = vpop.f32.mrb[13].mxu1 }
 0x10f   :  { %v860_v34 = vadd.f32 %v859_v30, %v858_v26  ;;  %v1192_v35 = vadd.f32 %v854_v7, %v486_v31  ;;  %v861_v36 = vpop.f32.mrb[14].mxu0  ;;  %v909_v37 = vpop.f32.mrb[14].mxu1 }
 0x110   :  { %v591_v39 = vadd.f32 %v590_v32, %v589_v29  ;;  %v540_v40 = vadd.f32 %v539_v33, %v538_v28  ;;  %v862_v41 = vpop.f32.mrb[15].mxu0  ;;  %v489_v42 = vpop.f32.mrb[15].mxu1 }
 0x111   :  { %v1195_v43 = vadd.f32 %v908_v27, %v860_v34  ;;  %v541_v44 = vsel %vm533_vm1, %v1192_v35, 0.0  ;;  %v575_v45 = vmul.f32 %v1192_v35, %v1192_v35  ;;  %v863_v46 = vadd.f32 %v862_v41, %v861_v36 }
 0x112   :  { %v542_v47 = vadd.f32 %v541_v44, %v540_v40  ;;  %v593_v49 = vadd.f32 %v592_v38, %v591_v39  ;;  %v1201_v50 = vadd.f32 %v857_v15, %v489_v42 }
 0x113   :  { %v594_v51 = vsel %vm533_vm1, %v575_v45, 0.0  ;;  %v1204_v52 = vadd.f32 %v909_v37, %v863_v46  ;;  %v577_v57 = vmul.f32 %v1195_v43, %v1195_v43  ;;  %v545_v2 = vsel %vm533_vm1, %v1195_v43, 0.0 }
 0x114   :  { %v595_v54 = vadd.f32 %v594_v51, %v593_v49  ;;  %v543_v55 = vsel %vm533_vm1, %v1201_v50, 0.0  ;;  %v576_v56 = vmul.f32 %v1201_v50, %v1201_v50 }
 0x115   :  { %v544_v58 = vadd.f32 %v543_v55, %v542_v47  ;;  %v864_v59 = vpop.f32.mrb[16].mxu0  ;;  %v912_v61 = vpop.f32.mrb[16].mxu1  ;;  %v598_v13 = vsel %vm533_vm1, %v577_v57, 0.0  ;;  %v578_v14 = vmul.f32 %v1204_v52, %v1204_v52  ;;  %v547_v19 = vsel %vm533_vm1, %v1204_v52, 0.0 }
 0x116   :  { %v596_v62 = vsel %vm533_vm1, %v576_v56, 0.0  ;;  %v865_v63 = vpop.f32.mrb[17].mxu0  ;;  %v502_v0 = vpop.f32.mrb[17].mxu1 }
 0x117   :  { %v597_v3 = vadd.f32 %v596_v62, %v595_v54  ;;  %v866_v5 = vadd.f32 %v865_v63, %v864_v59  ;;  %v867_v6 = vpop.f32.mrb[18].mxu0  ;;  %v913_v7 = vpop.f32.mrb[18].mxu1  ;;  %v546_v9 = vadd.f32 %v545_v2, %v544_v58  ;;  %v600_v24 = vsel %vm533_vm1, %v578_v14, 0.0 }
 0x118   :  { %v868_v10 = vpop.f32.mrb[19].mxu0  ;;  %v505_v12 = vpop.f32.mrb[19].mxu1 }
 0x119   :  { %v869_v15 = vadd.f32 %v868_v10, %v867_v6  ;;  %v1218_v17 = vadd.f32 %v866_v5, %v502_v0  ;;  %v599_v18 = vadd.f32 %v598_v13, %v597_v3  ;;  %v548_v23 = vadd.f32 %v547_v19, %v546_v9 }
 0x11b   :  { %v549_v20 = vsel %vm533_vm1, %v1218_v17, 0.0  ;;  %v579_v21 = vmul.f32 %v1218_v17, %v1218_v17  ;;  %v1226_v22 = vadd.f32 %v869_v15, %v505_v12  ;;  %v601_v30 = vadd.f32 %v600_v24, %v599_v18 }
 0x11c   :  { %v550_v29 = vadd.f32 %v549_v20, %v548_v23 }
 0x11d   :  { %v602_v25 = vsel %vm533_vm1, %v579_v21, 0.0  ;;  %v580_v26 = vmul.f32 %v1226_v22, %v1226_v22  ;;  %v870_v27 = vpop.f32.mrb[20].mxu0  ;;  %v916_v28 = vpop.f32.mrb[20].mxu1  ;;  %v551_v34 = vsel %vm533_vm1, %v1226_v22, 0.0 }
 0x11e   :  { %v1233_v31 = vadd.f32 %v916_v28, %v1161_v60  ;;  %v871_v32 = vpop.f32.mrb[21].mxu0  ;;  %v518_v33 = vpop.f32.mrb[21].mxu1  ;;  %v603_v40 = vadd.f32 %v602_v25, %v601_v30  ;;  %v552_v47 = vadd.f32 %v551_v34, %v550_v29 }
 0x11f   :  { %v872_v36 = vadd.f32 %v871_v32, %v870_v27  ;;  %v1238_v37 = vadd.f32 %v1157_v48, %v518_v33  ;;  %v873_v38 = vpop.f32.mrb[22].mxu0  ;;  %v917_v39 = vpop.f32.mrb[22].mxu1  ;;  %v604_v60 = vsel %vm533_vm1, %v580_v26, 0.0 }
 0x120   :  { %v1241_v41 = vadd.f32 %v917_v39, %v1163_v1  ;;  %v874_v42 = vpop.f32.mrb[23].mxu0  ;;  %v521_v44 = vpop.f32.mrb[23].mxu1  ;;  %v605_v1 = vadd.f32 %v604_v60, %v603_v40  ;;  %v585_v5 = vmul.f32 %v1233_v31, %v1233_v31  ;;  %v561_v12 = vsel %vm533_vm1, %v1233_v31, 0.0 }
 0x121   :  { %v1244_v45 = vadd.f32 %v912_v61, %v872_v36  ;;  %v875_v46 = vadd.f32 %v874_v42, %v873_v38  ;;  %v1247_v49 = vadd.f32 %v1159_v53, %v521_v44  ;;  %v583_v57 = vmul.f32 %v1238_v37, %v1238_v37 }
 0x122   :  { %v557_v62 = vsel %vm533_vm1, %v1238_v37, 0.0  ;;  %v586_v13 = vmul.f32 %v1241_v41, %v1241_v41  ;;  %v614_v19 = vsel %vm533_vm1, %v585_v5, 0.0  ;;  %v563_v20 = vsel %vm533_vm1, %v1241_v41, 0.0  ;;  %v655_v5 = vld [vmem:[%s1373_s2] sm:$0x1] }
 0x123   :  { %v553_v48 = vsel %vm533_vm1, %v1244_v45, 0.0  ;;  %v581_v51 = vmul.f32 %v1244_v45, %v1244_v45  ;;  %v1253_v54 = vadd.f32 %v913_v7, %v875_v46  ;;  %v584_v0 = vmul.f32 %v1247_v49, %v1247_v49 }
 0x124   :  { %v554_v55 = vadd.f32 %v553_v48, %v552_v47  ;;  %v610_v6 = vsel %vm533_vm1, %v583_v57, 0.0  ;;  %v559_v7 = vsel %vm533_vm1, %v1247_v49, 0.0  ;;  %v616_v24 = vsel %vm533_vm1, %v586_v13, 0.0 }
 0x125   :  { %v606_v56 = vsel %vm533_vm1, %v581_v51, 0.0  ;;  %v555_v58 = vsel %vm533_vm1, %v1253_v54, 0.0  ;;  %v582_v53 = vmul.f32 %v1253_v54, %v1253_v54  ;;  %v612_v14 = vsel %vm533_vm1, %v584_v0, 0.0 }
 0x126   :  { %v607_v59 = vadd.f32 %v606_v56, %v605_v1  ;;  %v556_v61 = vadd.f32 %v555_v58, %v554_v55 }
 0x127   :  { %v608_v63 = vsel %vm533_vm1, %v582_v53, 0.0 }
 0x128   :  { %v609_v2 = vadd.f32 %v608_v63, %v607_v59  ;;  %v558_v3 = vadd.f32 %v557_v62, %v556_v61 }
 0x12a   :  { %v560_v9 = vadd.f32 %v559_v7, %v558_v3  ;;  %v611_v10 = vadd.f32 %v610_v6, %v609_v2  ;;  %v663_v2 = vlaneseq }
 0x12c   :  { %v562_v15 = vadd.f32 %v561_v12, %v560_v9  ;;  %v613_v18 = vadd.f32 %v612_v14, %v611_v10  ;;  %v664_v3 = vshrl.u32 %v663_v2, 7  ;;  %v659_v10 = vld [vmem:[%s1374_s3] sm:$0x1] }
 0x12e   :  { %v564_v21 = vadd.f32 %v563_v20, %v562_v15  ;;  %v615_v23 = vadd.f32 %v614_v19, %v613_v18  ;;  %v665_v6 = vsub.s32 0, %v664_v3 }
 0x130   :  { %v565_v25 = vrot.slane %v564_v21, 4  ;;  %v617_v26 = vadd.f32 %v616_v24, %v615_v23 }
 0x132   :  { %v566_v27 = vadd.f32 %v565_v25, %v564_v21  ;;  %v618_v28 = vrot.slane %v617_v26, 4 }
 0x134   :  { %v567_v29 = vrot.slane %v566_v27, 2  ;;  %v619_v30 = vadd.f32 %v618_v28, %v617_v26 }
 0x136   :  { %v568_v32 = vadd.f32 %v567_v29, %v566_v27  ;;  %v620_v33 = vrot.slane %v619_v30, 2 }
 0x138   :  { %v569_v34 = vrot.slane %v568_v32, 1  ;;  %v621_v36 = vadd.f32 %v620_v33, %v619_v30 }
 0x13a   :  { %v570_v38 = vadd.f32 %v569_v34, %v568_v32  ;;  %v622_v39 = vrot.slane %v621_v36, 1 }
 0x13c   :  { %634 = vrot.lane.b32.xlu1 %v570_v38, %s992_s0  ;;  %625 = vrot.lane.b32.xlu0 %v570_v38, %s993_s19  ;;  %v623_v40 = vadd.f32 %v622_v39, %v621_v36 }
 0x140   :  { %638 = vrot.lane.b32.xlu1 %v623_v40, %s992_s0  ;;  %630 = vrot.lane.b32.xlu0 %v623_v40, %s993_s19 }
 0x144   :  { %646 = vrot.lane.b32.xlu1 %v623_v40, %s994_s20  ;;  %642 = vrot.lane.b32.xlu0 %v570_v38, %s994_s20 }
 0x1ae   :  { %v635_v42 = vpop.permute.xlu1 %634  ;;  %v626_v44 = vpop.permute.xlu0 %625 }
 0x1af   :  { %v628_v60 = vadd.f32 %v626_v44, %v570_v38 }
 0x1b1   :  { %v637_v1 = vadd.f32 %v635_v42, %v628_v60 }
 0x1b2   :  { %v639_v46 = vpop.permute.xlu1 %638  ;;  %v631_v47 = vpop.permute.xlu0 %630 }
 0x1b3   :  { %v633_v48 = vadd.f32 %v631_v47, %v623_v40 }
 0x1b5   :  { %v641_v51 = vadd.f32 %v639_v46, %v633_v48 }
 0x1b6   :  { %v647_v55 = vpop.permute.xlu1 %646  ;;  %v643_v56 = vpop.permute.xlu0 %642 }
 0x1b7   :  { %v649_v57 = vadd.f32 %v647_v55, %v641_v51  ;;  %v645_v58 = vadd.f32 %v643_v56, %v637_v1 }
 0x1b9   :  { %v650_v53 = vmul.f32 0.001953125, %v645_v58  ;;  %v651_v59 = vmul.f32 0.001953125, %v649_v57 }
 0x1bb   :  { %v652_v61 = vmul.f32 %v650_v53, %v650_v53 }
 0x1bd   :  { %v653_v62 = vsub.f32 %v651_v59, %v652_v61 }
 0x1bf   :  { %v654_v63 = vmax.f32 %v653_v62, 0.0 }
 0x1c1   :  { %v656_v0 = vadd.f32 1e-05, %v654_v63 }
 0x1c3   :  { %990 = vrsqrt.f32 %v656_v0 }
 0x1cd   :  { %v991_v7 = vpop.eup %990 }
 0x1ce   :  { %v658_v9 = vmul.f32 %v991_v7, %v655_v5 }
 0x1d0   :  { %v660_v12 = vmul.f32 %v658_v9, %v650_v53  ;;  %v666_v13 = vrot.slane %v658_v9, %v665_v6 }
 0x1d2   :  { %v661_v14 = vsub.f32 %v659_v10, %v660_v12  ;;  %670 = vrot.lane.b32.xlu1 %v666_v13, %s995_s25  ;;  %667 = vrot.lane.b32.xlu0 %v666_v13, %s996_s26 }
 0x1d4   :  { %v685_v15 = vrot.slane %v661_v14, %v665_v6 }
 0x1d6   :  { %673 = vrot.lane.b32.xlu0 %v666_v13, %s997_s27  ;;  %686 = vrot.lane.b32.xlu1 %v685_v15, %s996_s26 }
 0x1da   :  { %689 = vrot.lane.b32.xlu0 %v685_v15, %s995_s25  ;;  %692 = vrot.lane.b32.xlu1 %v685_v15, %s997_s27 }
 0x244   :  { %v671_v18 = vpop.permute.xlu1 %670  ;;  %v668_v19 = vpop.permute.xlu0 %667 }
 0x245   :  { %v677_v20 = vsel %vm676_vm2, %v658_v9, %v668_v19 }
 0x246   :  { %v678_v21 = vsel %vm314_vm0, %v677_v20, %v671_v18 }
 0x248   :  { %v674_v23 = vpop.permute.xlu0 %673  ;;  %v687_v24 = vpop.permute.xlu1 %686 }
 0x249   :  { %v680_v25 = vsel %vm679_vm3, %v678_v21, %v674_v23  ;;  %v695_v33 = vsel %vm676_vm2, %v661_v14, %v687_v24 }
 0x24a   :  { %v701_v26 = vrot.slane %v680_v25, %v665_v6 }
 0x24c   :  { %v690_v27 = vpop.permute.xlu0 %689  ;;  %v693_v28 = vpop.permute.xlu1 %692  ;;  %v702_v29 = vmul.f32 %v701_v26, %v1167_v8  ;;  %v703_v30 = vmul.f32 %v701_v26, %v1173_v16  ;;  %v704_v32 = vmul.f32 %v701_v26, %v1165_v4  ;;  %v705_v34 = vmul.f32 %v701_v26, %v1169_v11 }
 0x24d   :  { %v706_v36 = vmul.f32 %v701_v26, %v1192_v35  ;;  %v707_v38 = vmul.f32 %v701_v26, %v1201_v50  ;;  %v696_v39 = vsel %vm314_vm0, %v695_v33, %v690_v27  ;;  %v708_v40 = vmul.f32 %v701_v26, %v1195_v43 }
 0x24e   :  { %v709_v42 = vmul.f32 %v701_v26, %v1204_v52  ;;  %v710_v44 = vmul.f32 %v701_v26, %v1218_v17  ;;  %v697_v8 = vsel %vm679_vm3, %v696_v39, %v693_v28  ;;  %v711_v16 = vmul.f32 %v701_v26, %v1226_v22 }
 0x24f   :  { %v712_v4 = vmul.f32 %v701_v26, %v1244_v45  ;;  %v713_v11 = vmul.f32 %v701_v26, %v1253_v54  ;;  %v721_v60 = vrot.slane %v697_v8, %v665_v6  ;;  %v714_v35 = vmul.f32 %v701_v26, %v1238_v37 }
 0x250   :  { %v715_v50 = vmul.f32 %v701_v26, %v1247_v49  ;;  %v716_v46 = vmul.f32 %v701_v26, %v1233_v31  ;;  %v717_v43 = vmul.f32 %v701_v26, %v1241_v41 }
 0x251   :  { %v722_v52 = vadd.f32 %v721_v60, %v702_v29  ;;  %v723_v47 = vadd.f32 %v721_v60, %v703_v30  ;;  %v724_v17 = vadd.f32 %v721_v60, %v704_v32  ;;  %v725_v48 = vadd.f32 %v721_v60, %v705_v34 }
 0x252   :  { %v726_v51 = vadd.f32 %v721_v60, %v706_v36  ;;  %v727_v1 = vadd.f32 %v721_v60, %v707_v38  ;;  %v728_v22 = vadd.f32 %v721_v60, %v708_v40  ;;  %v729_v55 = vadd.f32 %v721_v60, %v709_v42 }
 0x253   :  { %v730_v45 = vadd.f32 %v721_v60, %v710_v44  ;;  %v731_v56 = vadd.f32 %v721_v60, %v711_v16  ;;  %v732_v54 = vadd.f32 %v721_v60, %v712_v4  ;;  %v733_v57 = vadd.f32 %v721_v60, %v713_v11 }
 0x254   :  { %v734_v58 = vadd.f32 %v721_v60, %v714_v35  ;;  %v735_v37 = vadd.f32 %v721_v60, %v715_v50  ;;  %v736_v53 = vadd.f32 %v721_v60, %v716_v46  ;;  %v737_v49 = vadd.f32 %v721_v60, %v717_v43 }
 0x255   :  { %v738_v59 = vmax.f32 %v722_v52, 0.0  ;;  %v739_v31 = vmax.f32 %v723_v47, 0.0  ;;  %v740_v61 = vmax.f32 %v724_v17, 0.0  ;;  %v741_v41 = vmax.f32 %v725_v48, 0.0 }
 0x256   :  { %v742_v62 = vmax.f32 %v726_v51, 0.0  ;;  %v743_v63 = vmax.f32 %v727_v1, 0.0  ;;  %v744_v0 = vmax.f32 %v728_v22, 0.0  ;;  %v745_v2 = vmax.f32 %v729_v55, 0.0 }
 0x257   :  { %v746_v3 = vmax.f32 %v730_v45, 0.0  ;;  %v747_v5 = vmax.f32 %v731_v56, 0.0  ;;  %v748_v6 = vmax.f32 %v732_v54, 0.0  ;;  %v749_v7 = vmax.f32 %v733_v57, 0.0  ;;  %754 = vst.msk [vmem:[%s1375_s4] sm:$0xff] %vm533_vm1, %v738_v59  ;;  %755 = vst.msk [vmem:[%s1375_s4 + $0x8] sm:$0xff] %vm533_vm1, %v739_v31 }
 0x258   :  { %756 = vst.msk [vmem:[%s1375_s4 + $0x10] sm:$0xff] %vm533_vm1, %v740_v61  ;;  %757 = vst.msk [vmem:[%s1375_s4 + $0x18] sm:$0xff] %vm533_vm1, %v741_v41  ;;  %v750_v9 = vmax.f32 %v734_v58, 0.0  ;;  %v751_v10 = vmax.f32 %v735_v37, 0.0  ;;  %v752_v12 = vmax.f32 %v736_v53, 0.0  ;;  %v753_v13 = vmax.f32 %v737_v49, 0.0 }
 0x259   :  { %758 = vst.msk [vmem:[%s1375_s4 + $0x20] sm:$0xff] %vm533_vm1, %v742_v62  ;;  %759 = vst.msk [vmem:[%s1375_s4 + $0x28] sm:$0xff] %vm533_vm1, %v743_v63 }
 0x25a   :  { %760 = vst.msk [vmem:[%s1375_s4 + $0x30] sm:$0xff] %vm533_vm1, %v744_v0  ;;  %761 = vst.msk [vmem:[%s1375_s4 + $0x38] sm:$0xff] %vm533_vm1, %v745_v2 }
 0x25b   :  { %762 = vst.msk [vmem:[%s1375_s4 + $0x40] sm:$0xff] %vm533_vm1, %v746_v3  ;;  %763 = vst.msk [vmem:[%s1375_s4 + $0x48] sm:$0xff] %vm533_vm1, %v747_v5 }
 0x25c   :  { %764 = vst.msk [vmem:[%s1375_s4 + $0x50] sm:$0xff] %vm533_vm1, %v748_v6  ;;  %765 = vst.msk [vmem:[%s1375_s4 + $0x58] sm:$0xff] %vm533_vm1, %v749_v7 }
 0x25d   :  { %766 = vst.msk [vmem:[%s1375_s4 + $0x60] sm:$0xff] %vm533_vm1, %v750_v9  ;;  %767 = vst.msk [vmem:[%s1375_s4 + $0x68] sm:$0xff] %vm533_vm1, %v751_v10 }
 0x25e   :  { %768 = vst.msk [vmem:[%s1375_s4 + $0x70] sm:$0xff] %vm533_vm1, %v752_v12  ;;  %769 = vst.msk [vmem:[%s1375_s4 + $0x78] sm:$0xff] %vm533_vm1, %v753_v13 }

// kernel: generator_forward.8
= control target key start
LH: loop header
LB: loop body
LE: loop exit
PB: predicated region body
PF: predicated region fallthrough
CT: control target
= control target key end

     0   :  { %v1738_v0 = vmov 0   ;;  %vm442_vm0 = vcmask 130048   ;;  %vm828_vm1 = vcmask 261120   ;;  %s1740_s26 = smov 120   ;;  %s1741_s27 = smov 104   ;;  %vm1211_vm2 = vcmask 64512   ;;  %s3321_s1 = inlined_call_operand.vmem [shape: bf16[144,32], index: 1, kind: input, shape index: {}]   ;;  %s3322_s0 = inlined_call_operand.vmem [shape: bf16[512,144], index: 0, kind: input, shape index: {}]   ;;  %s3323_s2 = inlined_call_operand.vmem [shape: f32[1,8], index: 2, kind: input, shape index: {}]   ;;  %s3324_s3 = inlined_call_operand.vmem [shape: f32[1,8], index: 3, kind: input, shape index: {}]   ;;  %s3325_s4 = inlined_call_operand.vmem [shape: f32[512,32], index: 4, kind: output, shape index: {}]  }
   0x1   :  { %539 = vmatprep.subr.bf16.mxu0 %v1738_v0  ;;  %v1631_v1 = vld [vmem:[%s3321_s1] sm:$0xff]   ;;  %1606 = vmatprep.subr.bf16.mxu1 %v1738_v0  ;;  %v1632_v2 = vld [vmem:[%s3321_s1 + $0x8] sm:$0xff]   ;;  %v1633_v3 = vld [vmem:[%s3321_s1 + $0x10] sm:$0xff]   ;;  %s1742_s6 = smov 16   ;;  %s1743_s7 = smov 8   ;;  %vm1214_vm3 = vcmask 195584  }
   0x2   :  { %540 = vmatpush1.bf16.msra.mxu0 %v1631_v1  ;;  %1615 = vmatpush1.bf16.msra.mxu1 %v1631_v1  ;;  %v1634_v4 = vld [vmem:[%s3321_s1 + $0x18] sm:$0xff]   ;;  %v1642_v5 = vld [vmem:[%s3322_s0 + $0x4] ss:$8 sps:$4 sm:$0xff]   ;;  %v1637_v9 = vld [vmem:[%s3321_s1 + $0x30] sm:$0xff]   ;;  %s1744_s8 = smov 24  }
   0x3   :  { %541 = vmatprep.subr.bf16.mxu0 %v1738_v0  ;;  %1607 = vmatprep.subr.bf16.mxu1 %v1738_v0  ;;  %v1635_v6 = vld [vmem:[%s3321_s1 + $0x20] sm:$0xff]   ;;  %v1636_v7 = vld [vmem:[%s3321_s1 + $0x28] sm:$0xff]   ;;  %v1638_v10 = vld [vmem:[%s3321_s1 + $0x38] sm:$0xff]  }
   0x4   :  { %1574 = vmatprep.mubr.msk.bf16.mxu0 %vm442_vm0, %v1642_v5  ;;  %v1666_v8 = vld [vmem:[%s3322_s0 + $0x104] ss:$8 sps:$4 sm:$0xff]   ;;  %v1640_v12 = vld [vmem:[%s3322_s0] ss:$8 sps:$4 sm:$0xff]   ;;  %v1643_v13 = vld [vmem:[%s3322_s0 + $0x14] ss:$8 sps:$4 sm:$0xff]  }
   0x5   :  { %1590 = vmatprep.mubr.msk.bf16.mxu1 %vm442_vm0, %v1666_v8  ;;  %v1639_v11 = vld [vmem:[%s3321_s1 + $0x40] sm:$0xff]   ;;  %v1670_v15 = vld [vmem:[%s3322_s0 + $0x114] ss:$8 sps:$4 sm:$0xff]   ;;  %v1645_v16 = vld [vmem:[%s3322_s0 + $0x10] ss:$8 sps:$4 sm:$0xff]  }
   0x6   :  { %542 = vmatpush1.bf16.msra.mxu0 %v1632_v2  ;;  %1616 = vmatpush1.bf16.msra.mxu1 %v1632_v2  ;;  %v1664_v14 = vld [vmem:[%s3322_s0 + $0x100] ss:$8 sps:$4 sm:$0xff]   ;;  %v1646_v17 = vld [vmem:[%s3322_s0 + $0x24] ss:$8 sps:$4 sm:$0xff]   ;;  %v1672_v18 = vld [vmem:[%s3322_s0 + $0x110] ss:$8 sps:$4 sm:$0xff]  }
   0x7   :  { %543 = vmatprep.subr.bf16.mxu0 %v1738_v0  ;;  %1608 = vmatprep.subr.bf16.mxu1 %v1738_v0  ;;  %v1676_v19 = vld [vmem:[%s3322_s0 + $0x124] ss:$8 sps:$4 sm:$0xff]   ;;  %v1648_v20 = vld [vmem:[%s3322_s0 + $0x20] ss:$8 sps:$4 sm:$0xff]   ;;  %v1649_v21 = vld [vmem:[%s3322_s0 + $0x34] ss:$8 sps:$4 sm:$0xff]  }
   0x8   :  { %v1678_v22 = vld [vmem:[%s3322_s0 + $0x120] ss:$8 sps:$4 sm:$0xff]   ;;  %v1682_v23 = vld [vmem:[%s3322_s0 + $0x134] ss:$8 sps:$4 sm:$0xff]   ;;  %v1651_v24 = vld [vmem:[%s3322_s0 + $0x30] ss:$8 sps:$4 sm:$0xff]  }
   0x9   :  { %v1684_v25 = vld [vmem:[%s3322_s0 + $0x130] ss:$8 sps:$4 sm:$0xff]   ;;  %v1652_v26 = vld [vmem:[%s3322_s0 + $0x44] ss:$8 sps:$4 sm:$0xff]   ;;  %v1654_v28 = vld [vmem:[%s3322_s0 + $0x40] ss:$8 sps:$4 sm:$0xff]  }
   0xa   :  { %544 = vmatpush1.bf16.msra.mxu0 %v1633_v3  ;;  %1617 = vmatpush1.bf16.msra.mxu1 %v1633_v3  ;;  %v1688_v27 = vld [vmem:[%s3322_s0 + $0x144] ss:$8 sps:$4 sm:$0xff]   ;;  %v1690_v29 = vld [vmem:[%s3322_s0 + $0x140] ss:$8 sps:$4 sm:$0xff]   ;;  %v1655_v30 = vld [vmem:[%s3322_s0 + $0x54] ss:$8 sps:$4 sm:$0xff]  }
   0xb   :  { %545 = vmatprep.subr.bf16.mxu0 %v1738_v0  ;;  %1609 = vmatprep.subr.bf16.mxu1 %v1738_v0  ;;  %v1694_v31 = vld [vmem:[%s3322_s0 + $0x154] ss:$8 sps:$4 sm:$0xff]   ;;  %v1657_v32 = vld [vmem:[%s3322_s0 + $0x50] ss:$8 sps:$4 sm:$0xff]   ;;  %v1658_v34 = vld [vmem:[%s3322_s0 + $0x64] ss:$8 sps:$4 sm:$0xff]  }
   0xc   :  { %v1696_v33 = vld [vmem:[%s3322_s0 + $0x150] ss:$8 sps:$4 sm:$0xff]   ;;  %v1700_v35 = vld [vmem:[%s3322_s0 + $0x164] ss:$8 sps:$4 sm:$0xff]   ;;  %v1660_v36 = vld [vmem:[%s3322_s0 + $0x60] ss:$8 sps:$4 sm:$0xff]  }
   0xd   :  { %v1702_v37 = vld [vmem:[%s3322_s0 + $0x160] ss:$8 sps:$4 sm:$0xff]   ;;  %v1661_v38 = vld [vmem:[%s3322_s0 + $0x74] ss:$8 sps:$4 sm:$0xff]   ;;  %v1663_v40 = vld [vmem:[%s3322_s0 + $0x70] ss:$8 sps:$4 sm:$0xff]  }
   0xe   :  { %546 = vmatpush1.bf16.msra.mxu0 %v1634_v4  ;;  %1618 = vmatpush1.bf16.msra.mxu1 %v1634_v4  ;;  %v1706_v39 = vld [vmem:[%s3322_s0 + $0x174] ss:$8 sps:$4 sm:$0xff]   ;;  %v1708_v41 = vld [vmem:[%s3322_s0 + $0x170] ss:$8 sps:$4 sm:$0xff]   ;;  %v1667_v42 = vld [vmem:[%s3322_s0 + $0x84] ss:$8 sps:$4 sm:$0xff]  }
   0xf   :  { %547 = vmatprep.subr.bf16.mxu0 %v1738_v0  ;;  %1610 = vmatprep.subr.bf16.mxu1 %v1738_v0  ;;  %v1712_v43 = vld [vmem:[%s3322_s0 + $0x184] ss:$8 sps:$4 sm:$0xff]   ;;  %v1669_v44 = vld [vmem:[%s3322_s0 + $0x80] ss:$8 sps:$4 sm:$0xff]   ;;  %v1673_v46 = vld [vmem:[%s3322_s0 + $0x94] ss:$8 sps:$4 sm:$0xff]  }
  0x10   :  { %v1714_v45 = vld [vmem:[%s3322_s0 + $0x180] ss:$8 sps:$4 sm:$0xff]   ;;  %v1715_v47 = vld [vmem:[%s3322_s0 + $0x194] ss:$8 sps:$4 sm:$0xff]   ;;  %v1675_v48 = vld [vmem:[%s3322_s0 + $0x90] ss:$8 sps:$4 sm:$0xff]  }
  0x11   :  { %v1717_v49 = vld [vmem:[%s3322_s0 + $0x190] ss:$8 sps:$4 sm:$0xff]   ;;  %v1679_v50 = vld [vmem:[%s3322_s0 + $0xa4] ss:$8 sps:$4 sm:$0xff]   ;;  %v1681_v52 = vld [vmem:[%s3322_s0 + $0xa0] ss:$8 sps:$4 sm:$0xff]  }
  0x12   :  { %548 = vmatpush1.bf16.msra.mxu0 %v1635_v6  ;;  %1619 = vmatpush1.bf16.msra.mxu1 %v1635_v6  ;;  %v1718_v51 = vld [vmem:[%s3322_s0 + $0x1a4] ss:$8 sps:$4 sm:$0xff]   ;;  %v1720_v53 = vld [vmem:[%s3322_s0 + $0x1a0] ss:$8 sps:$4 sm:$0xff]   ;;  %v1685_v54 = vld [vmem:[%s3322_s0 + $0xb4] ss:$8 sps:$4 sm:$0xff]  }
  0x13   :  { %549 = vmatprep.subr.bf16.mxu0 %v1738_v0  ;;  %1611 = vmatprep.subr.bf16.mxu1 %v1738_v0  ;;  %v1721_v55 = vld [vmem:[%s3322_s0 + $0x1b4] ss:$8 sps:$4 sm:$0xff]   ;;  %v1687_v56 = vld [vmem:[%s3322_s0 + $0xb0] ss:$8 sps:$4 sm:$0xff]   ;;  %v1691_v58 = vld [vmem:[%s3322_s0 + $0xc4] ss:$8 sps:$4 sm:$0xff]  }
  0x14   :  { %v1723_v57 = vld [vmem:[%s3322_s0 + $0x1b0] ss:$8 sps:$4 sm:$0xff]   ;;  %v1724_v59 = vld [vmem:[%s3322_s0 + $0x1c4] ss:$8 sps:$4 sm:$0xff]   ;;  %v1693_v60 = vld [vmem:[%s3322_s0 + $0xc0] ss:$8 sps:$4 sm:$0xff]  }
  0x15   :  { %v1726_v61 = vld [vmem:[%s3322_s0 + $0x1c0] ss:$8 sps:$4 sm:$0xff]   ;;  %v1697_v62 = vld [vmem:[%s3322_s0 + $0xd4] ss:$8 sps:$4 sm:$0xff]   ;;  %v1729_v1 = vld [vmem:[%s3322_s0 + $0x1d0] ss:$8 sps:$4 sm:$0xff]  }
  0x16   :  { %550 = vmatpush1.bf16.msra.mxu0 %v1636_v7  ;;  %1620 = vmatpush1.bf16.msra.mxu1 %v1636_v7  ;;  %v1727_v63 = vld [vmem:[%s3322_s0 + $0x1d4] ss:$8 sps:$4 sm:$0xff]   ;;  %v1703_v2 = vld [vmem:[%s3322_s0 + $0xe4] ss:$8 sps:$4 sm:$0xff]   ;;  %v1705_v4 = vld [vmem:[%s3322_s0 + $0xe0] ss:$8 sps:$4 sm:$0xff]  }
  0x17   :  { %551 = vmatprep.subr.bf16.mxu0 %v1738_v0  ;;  %1612 = vmatprep.subr.bf16.mxu1 %v1738_v0  ;;  %v1730_v3 = vld [vmem:[%s3322_s0 + $0x1e4] ss:$8 sps:$4 sm:$0xff]   ;;  %v1732_v5 = vld [vmem:[%s3322_s0 + $0x1e0] ss:$8 sps:$4 sm:$0xff]   ;;  %v1709_v6 = vld [vmem:[%s3322_s0 + $0xf4] ss:$8 sps:$4 sm:$0xff]  }
  0x18   :  { %v1733_v7 = vld [vmem:[%s3322_s0 + $0x1f4] ss:$8 sps:$4 sm:$0xff]   ;;  %v1711_v8 = vld [vmem:[%s3322_s0 + $0xf0] ss:$8 sps:$4 sm:$0xff]  }
  0x1a   :  { %552 = vmatpush1.bf16.msra.mxu0 %v1637_v9  ;;  %1621 = vmatpush1.bf16.msra.mxu1 %v1637_v9  ;;  %v1735_v9 = vld [vmem:[%s3322_s0 + $0x1f0] ss:$8 sps:$4 sm:$0xff]  }
  0x1b   :  { %553 = vmatprep.subr.bf16.mxu0 %v1738_v0  ;;  %1613 = vmatprep.subr.bf16.mxu1 %v1738_v0 }
  0x1e   :  { %554 = vmatpush1.bf16.msra.mxu0 %v1638_v10  ;;  %1622 = vmatpush1.bf16.msra.mxu1 %v1638_v10 }
  0x1f   :  { %555 = vmatprep.subr.bf16.mxu0 %v1738_v0  ;;  %1614 = vmatprep.subr.bf16.mxu1 %v1738_v0  ;;  %v1699_v0 = vld [vmem:[%s3322_s0 + $0xd0] ss:$8 sps:$4 sm:$0xff]   ;;  %s1739_s0 = smov 112  }
  0x22   :  { %556 = vmatpush1.bf16.msra.mxu0 %v1639_v11  ;;  %1623 = vmatpush1.bf16.msra.mxu1 %v1639_v11 }
  0x25   :  { %572 = vmatmul.mubr.bf16.vlgmr.msra.gmra.mrb[0].mxu0 %v1640_v12  ;;  %700 = vmatmul.mubr.bf16.vlgmr.msra.gmra.mrb[0].mxu1 %v1664_v14 }
  0x26   :  { %1575 = vmatprep.mubr.msk.bf16.mxu0 %vm442_vm0, %v1643_v13  ;;  %1591 = vmatprep.mubr.msk.bf16.mxu1 %vm442_vm0, %v1670_v15 }
  0x2d   :  { %580 = vmatmul.mubr.bf16.gmra.mrb[4].mxu0 %v1645_v16  ;;  %708 = vmatmul.mubr.bf16.gmra.mrb[4].mxu1 %v1672_v18 }
  0x2e   :  { %1576 = vmatprep.mubr.msk.bf16.mxu0 %vm442_vm0, %v1646_v17  ;;  %1592 = vmatprep.mubr.msk.bf16.mxu1 %vm442_vm0, %v1676_v19 }
  0x35   :  { %588 = vmatmul.mubr.bf16.gmra.mrb[8].mxu0 %v1648_v20  ;;  %716 = vmatmul.mubr.bf16.gmra.mrb[8].mxu1 %v1678_v22 }
  0x36   :  { %1577 = vmatprep.mubr.msk.bf16.mxu0 %vm442_vm0, %v1649_v21  ;;  %1593 = vmatprep.mubr.msk.bf16.mxu1 %vm442_vm0, %v1682_v23 }
  0x3d   :  { %596 = vmatmul.mubr.bf16.gmra.mrb[12].mxu0 %v1651_v24  ;;  %724 = vmatmul.mubr.bf16.gmra.mrb[12].mxu1 %v1684_v25 }
  0x3e   :  { %1578 = vmatprep.mubr.msk.bf16.mxu0 %vm442_vm0, %v1652_v26  ;;  %1594 = vmatprep.mubr.msk.bf16.mxu1 %vm442_vm0, %v1688_v27 }
  0x45   :  { %604 = vmatmul.mubr.bf16.gmra.mrb[16].mxu0 %v1654_v28  ;;  %732 = vmatmul.mubr.bf16.gmra.mrb[16].mxu1 %v1690_v29 }
  0x46   :  { %1579 = vmatprep.mubr.msk.bf16.mxu0 %vm442_vm0, %v1655_v30  ;;  %1595 = vmatprep.mubr.msk.bf16.mxu1 %vm442_vm0, %v1694_v31 }
  0x4d   :  { %612 = vmatmul.mubr.bf16.gmra.mrb[20].mxu0 %v1657_v32  ;;  %740 = vmatmul.mubr.bf16.gmra.mrb[20].mxu1 %v1696_v33 }
  0x4e   :  { %1580 = vmatprep.mubr.msk.bf16.mxu0 %vm442_vm0, %v1658_v34  ;;  %1596 = vmatprep.mubr.msk.bf16.mxu1 %vm442_vm0, %v1700_v35 }
  0x55   :  { %620 = vmatmul.mubr.bf16.gmra.mrb[24].mxu0 %v1660_v36  ;;  %748 = vmatmul.mubr.bf16.gmra.mrb[24].mxu1 %v1702_v37 }
  0x56   :  { %1581 = vmatprep.mubr.msk.bf16.mxu0 %vm442_vm0, %v1661_v38  ;;  %1597 = vmatprep.mubr.msk.bf16.mxu1 %vm442_vm0, %v1706_v39 }
  0x5d   :  { %628 = vmatmul.mubr.bf16.gmra.mrb[28].mxu0 %v1663_v40  ;;  %756 = vmatmul.mubr.bf16.gmra.mrb[28].mxu1 %v1708_v41 }
  0x5e   :  { %1582 = vmatprep.mubr.msk.bf16.mxu0 %vm442_vm0, %v1667_v42  ;;  %1598 = vmatprep.mubr.msk.bf16.mxu1 %vm442_vm0, %v1712_v43 }
  0x65   :  { %636 = vmatmul.mubr.bf16.gmra.mrb[32].mxu0 %v1669_v44  ;;  %764 = vmatmul.mubr.bf16.gmra.mrb[32].mxu1 %v1714_v45 }
  0x66   :  { %1583 = vmatprep.mubr.msk.bf16.mxu0 %vm442_vm0, %v1673_v46  ;;  %1599 = vmatprep.mubr.msk.bf16.mxu1 %vm442_vm0, %v1715_v47 }
  0x6d   :  { %644 = vmatmul.mubr.bf16.gmra.mrb[36].mxu0 %v1675_v48  ;;  %772 = vmatmul.mubr.bf16.gmra.mrb[36].mxu1 %v1717_v49 }
  0x6e   :  { %1584 = vmatprep.mubr.msk.bf16.mxu0 %vm442_vm0, %v1679_v50  ;;  %1600 = vmatprep.mubr.msk.bf16.mxu1 %vm442_vm0, %v1718_v51 }
  0x75   :  { %652 = vmatmul.mubr.bf16.gmra.mrb[40].mxu0 %v1681_v52  ;;  %780 = vmatmul.mubr.bf16.gmra.mrb[40].mxu1 %v1720_v53 }
  0x76   :  { %1585 = vmatprep.mubr.msk.bf16.mxu0 %vm442_vm0, %v1685_v54  ;;  %1601 = vmatprep.mubr.msk.bf16.mxu1 %vm442_vm0, %v1721_v55 }
  0x7d   :  { %660 = vmatmul.mubr.bf16.gmra.mrb[44].mxu0 %v1687_v56  ;;  %788 = vmatmul.mubr.bf16.gmra.mrb[44].mxu1 %v1723_v57 }
  0x7e   :  { %1586 = vmatprep.mubr.msk.bf16.mxu0 %vm442_vm0, %v1691_v58  ;;  %1602 = vmatprep.mubr.msk.bf16.mxu1 %vm442_vm0, %v1724_v59 }
  0x85   :  { %668 = vmatmul.mubr.bf16.gmra.mrb[48].mxu0 %v1693_v60  ;;  %796 = vmatmul.mubr.bf16.gmra.mrb[48].mxu1 %v1726_v61 }
  0x86   :  { %1587 = vmatprep.mubr.msk.bf16.mxu0 %vm442_vm0, %v1697_v62  ;;  %1603 = vmatprep.mubr.msk.bf16.mxu1 %vm442_vm0, %v1727_v63 }
  0x8d   :  { %676 = vmatmul.mubr.bf16.gmra.mrb[52].mxu0 %v1699_v0  ;;  %804 = vmatmul.mubr.bf16.gmra.mrb[52].mxu1 %v1729_v1 }
  0x8e   :  { %1588 = vmatprep.mubr.msk.bf16.mxu0 %vm442_vm0, %v1703_v2  ;;  %1604 = vmatprep.mubr.msk.bf16.mxu1 %vm442_vm0, %v1730_v3 }
  0x95   :  { %684 = vmatmul.mubr.bf16.gmra.mrb[56].mxu0 %v1705_v4  ;;  %812 = vmatmul.mubr.bf16.gmra.mrb[56].mxu1 %v1732_v5 }
  0x96   :  { %1589 = vmatprep.mubr.msk.bf16.mxu0 %vm442_vm0, %v1709_v6  ;;  %1605 = vmatprep.mubr.msk.bf16.mxu1 %vm442_vm0, %v1733_v7 }
  0x9d   :  { %692 = vmatmul.mubr.bf16.gmra.mrb[60].mxu0 %v1711_v8  ;;  %820 = vmatmul.mubr.bf16.gmra.mrb[60].mxu1 %v1735_v9 }
  0xf8   :  { %v2021_v10 = vpop.f32.mrb[0].mxu0  ;;  %v2023_v11 = vpop.f32.mrb[0].mxu1 }
  0xf9   :  { %v962_v12 = vmul.f32 %v2021_v10, %v2021_v10  ;;  %v575_v13 = vpop.f32.mrb[1].mxu0  ;;  %v703_v14 = vpop.f32.mrb[1].mxu1  ;;  %v829_v17 = vsel %vm828_vm1, %v2021_v10, 0.0 }
  0xfa   :  { %v2027_v15 = vpop.f32.mrb[2].mxu0  ;;  %v2029_v16 = vpop.f32.mrb[2].mxu1 }
  0xfb   :  { %v830_v18 = vsel %vm828_vm1, %v2027_v15, 0.0  ;;  %v963_v19 = vmul.f32 %v2027_v15, %v2027_v15  ;;  %v578_v20 = vpop.f32.mrb[3].mxu0  ;;  %v706_v21 = vpop.f32.mrb[3].mxu1  ;;  %v1026_v23 = vsel %vm828_vm1, %v962_v12, 0.0 }
  0xfc   :  { %v831_v22 = vadd.f32 %v830_v18, %v829_v17 }
  0xfd   :  { %v1027_v24 = vsel %vm828_vm1, %v963_v19, 0.0 }
  0xfe   :  { %v1028_v25 = vadd.f32 %v1027_v24, %v1026_v23 }
 0x100   :  { %v2039_v26 = vpop.f32.mrb[4].mxu0  ;;  %v2041_v27 = vpop.f32.mrb[4].mxu1 }
 0x101   :  { %v832_v28 = vsel %vm828_vm1, %v2039_v26, 0.0  ;;  %v964_v29 = vmul.f32 %v2039_v26, %v2039_v26  ;;  %v583_v30 = vpop.f32.mrb[5].mxu0  ;;  %v711_v31 = vpop.f32.mrb[5].mxu1 }
 0x102   :  { %v833_v32 = vadd.f32 %v832_v28, %v831_v22  ;;  %v2047_v33 = vpop.f32.mrb[6].mxu0  ;;  %v2049_v34 = vpop.f32.mrb[6].mxu1 }
 0x103   :  { %v1029_v35 = vsel %vm828_vm1, %v964_v29, 0.0  ;;  %v834_v36 = vsel %vm828_vm1, %v2047_v33, 0.0  ;;  %v965_v37 = vmul.f32 %v2047_v33, %v2047_v33  ;;  %v586_v38 = vpop.f32.mrb[7].mxu0  ;;  %v714_v39 = vpop.f32.mrb[7].mxu1 }
 0x104   :  { %v1030_v40 = vadd.f32 %v1029_v35, %v1028_v25  ;;  %v835_v41 = vadd.f32 %v834_v36, %v833_v32 }
 0x105   :  { %v1031_v42 = vsel %vm828_vm1, %v965_v37, 0.0 }
 0x106   :  { %v1032_v43 = vadd.f32 %v1031_v42, %v1030_v40 }
 0x108   :  { %v2057_v44 = vpop.f32.mrb[8].mxu0  ;;  %v2059_v45 = vpop.f32.mrb[8].mxu1 }
 0x109   :  { %v836_v46 = vsel %vm828_vm1, %v2057_v44, 0.0  ;;  %v966_v47 = vmul.f32 %v2057_v44, %v2057_v44  ;;  %v591_v48 = vpop.f32.mrb[9].mxu0  ;;  %v719_v49 = vpop.f32.mrb[9].mxu1 }
 0x10a   :  { %v837_v50 = vadd.f32 %v836_v46, %v835_v41  ;;  %v2065_v51 = vpop.f32.mrb[10].mxu0  ;;  %v2067_v52 = vpop.f32.mrb[10].mxu1 }
 0x10b   :  { %v1033_v53 = vsel %vm828_vm1, %v966_v47, 0.0  ;;  %v838_v54 = vsel %vm828_vm1, %v2065_v51, 0.0  ;;  %v967_v55 = vmul.f32 %v2065_v51, %v2065_v51  ;;  %v594_v56 = vpop.f32.mrb[11].mxu0  ;;  %v722_v57 = vpop.f32.mrb[11].mxu1 }
 0x10c   :  { %v1034_v58 = vadd.f32 %v1033_v53, %v1032_v43  ;;  %v839_v59 = vadd.f32 %v838_v54, %v837_v50 }
 0x10d   :  { %v1035_v60 = vsel %vm828_vm1, %v967_v55, 0.0 }
 0x10e   :  { %v1036_v61 = vadd.f32 %v1035_v60, %v1034_v58 }
 0x110   :  { %v2075_v62 = vpop.f32.mrb[12].mxu0  ;;  %v2077_v63 = vpop.f32.mrb[12].mxu1 }
 0x111   :  { %v840_v0 = vsel %vm828_vm1, %v2075_v62, 0.0  ;;  %v968_v1 = vmul.f32 %v2075_v62, %v2075_v62  ;;  %v599_v2 = vpop.f32.mrb[13].mxu0  ;;  %v727_v3 = vpop.f32.mrb[13].mxu1 }
 0x112   :  { %v841_v4 = vadd.f32 %v840_v0, %v839_v59  ;;  %v2083_v5 = vpop.f32.mrb[14].mxu0  ;;  %v2085_v6 = vpop.f32.mrb[14].mxu1 }
 0x113   :  { %v1037_v7 = vsel %vm828_vm1, %v968_v1, 0.0  ;;  %v842_v8 = vsel %vm828_vm1, %v2083_v5, 0.0  ;;  %v969_v9 = vmul.f32 %v2083_v5, %v2083_v5  ;;  %v602_v12 = vpop.f32.mrb[15].mxu0  ;;  %v730_v13 = vpop.f32.mrb[15].mxu1 }
 0x114   :  { %v1038_v14 = vadd.f32 %v1037_v7, %v1036_v61  ;;  %v843_v17 = vadd.f32 %v842_v8, %v841_v4 }
 0x115   :  { %v1039_v18 = vsel %vm828_vm1, %v969_v9, 0.0 }
 0x116   :  { %v1040_v19 = vadd.f32 %v1039_v18, %v1038_v14 }
 0x118   :  { %v2093_v20 = vpop.f32.mrb[16].mxu0  ;;  %v2095_v21 = vpop.f32.mrb[16].mxu1 }
 0x119   :  { %v844_v22 = vsel %vm828_vm1, %v2093_v20, 0.0  ;;  %v970_v23 = vmul.f32 %v2093_v20, %v2093_v20  ;;  %v607_v24 = vpop.f32.mrb[17].mxu0  ;;  %v735_v25 = vpop.f32.mrb[17].mxu1 }
 0x11a   :  { %v845_v28 = vadd.f32 %v844_v22, %v843_v17  ;;  %v2101_v29 = vpop.f32.mrb[18].mxu0  ;;  %v2103_v30 = vpop.f32.mrb[18].mxu1 }
 0x11b   :  { %v1041_v31 = vsel %vm828_vm1, %v970_v23, 0.0  ;;  %v846_v32 = vsel %vm828_vm1, %v2101_v29, 0.0  ;;  %v971_v35 = vmul.f32 %v2101_v29, %v2101_v29  ;;  %v610_v36 = vpop.f32.mrb[19].mxu0  ;;  %v738_v37 = vpop.f32.mrb[19].mxu1 }
 0x11c   :  { %v1042_v38 = vadd.f32 %v1041_v31, %v1040_v19  ;;  %v847_v39 = vadd.f32 %v846_v32, %v845_v28 }
 0x11d   :  { %v1043_v40 = vsel %vm828_vm1, %v971_v35, 0.0 }
 0x11e   :  { %v1044_v41 = vadd.f32 %v1043_v40, %v1042_v38 }
 0x120   :  { %v2111_v42 = vpop.f32.mrb[20].mxu0  ;;  %v2113_v43 = vpop.f32.mrb[20].mxu1 }
 0x121   :  { %v848_v46 = vsel %vm828_vm1, %v2111_v42, 0.0  ;;  %v972_v47 = vmul.f32 %v2111_v42, %v2111_v42  ;;  %v615_v48 = vpop.f32.mrb[21].mxu0  ;;  %v743_v49 = vpop.f32.mrb[21].mxu1 }
 0x122   :  { %v849_v50 = vadd.f32 %v848_v46, %v847_v39  ;;  %v2119_v53 = vpop.f32.mrb[22].mxu0  ;;  %v2121_v54 = vpop.f32.mrb[22].mxu1 }
 0x123   :  { %v1045_v55 = vsel %vm828_vm1, %v972_v47, 0.0  ;;  %v850_v56 = vsel %vm828_vm1, %v2119_v53, 0.0  ;;  %v973_v57 = vmul.f32 %v2119_v53, %v2119_v53  ;;  %v618_v58 = vpop.f32.mrb[23].mxu0  ;;  %v746_v59 = vpop.f32.mrb[23].mxu1 }
 0x124   :  { %v1046_v60 = vadd.f32 %v1045_v55, %v1044_v41  ;;  %v851_v61 = vadd.f32 %v850_v56, %v849_v50 }
 0x125   :  { %v1047_v0 = vsel %vm828_vm1, %v973_v57, 0.0 }
 0x126   :  { %v1048_v1 = vadd.f32 %v1047_v0, %v1046_v60 }
 0x128   :  { %v2129_v2 = vpop.f32.mrb[24].mxu0  ;;  %v2131_v3 = vpop.f32.mrb[24].mxu1 }
 0x129   :  { %v852_v4 = vsel %vm828_vm1, %v2129_v2, 0.0  ;;  %v974_v7 = vmul.f32 %v2129_v2, %v2129_v2  ;;  %v623_v8 = vpop.f32.mrb[25].mxu0  ;;  %v751_v9 = vpop.f32.mrb[25].mxu1 }
 0x12a   :  { %v853_v12 = vadd.f32 %v852_v4, %v851_v61  ;;  %v2137_v13 = vpop.f32.mrb[26].mxu0  ;;  %v2139_v14 = vpop.f32.mrb[26].mxu1 }
 0x12b   :  { %v1049_v17 = vsel %vm828_vm1, %v974_v7, 0.0  ;;  %v854_v18 = vsel %vm828_vm1, %v2137_v13, 0.0  ;;  %v975_v19 = vmul.f32 %v2137_v13, %v2137_v13  ;;  %v626_v22 = vpop.f32.mrb[27].mxu0  ;;  %v754_v23 = vpop.f32.mrb[27].mxu1 }
 0x12c   :  { %v1050_v24 = vadd.f32 %v1049_v17, %v1048_v1  ;;  %v855_v25 = vadd.f32 %v854_v18, %v853_v12 }
 0x12d   :  { %v1051_v28 = vsel %vm828_vm1, %v975_v19, 0.0 }
 0x12e   :  { %v1052_v31 = vadd.f32 %v1051_v28, %v1050_v24 }
 0x130   :  { %v2147_v32 = vpop.f32.mrb[28].mxu0  ;;  %v2149_v35 = vpop.f32.mrb[28].mxu1 }
 0x131   :  { %3349 = vst [vmem:[#allocation2_spill] sm:$0xff] %v2147_v32  ;;  %v856_v36 = vsel %vm828_vm1, %v2147_v32, 0.0  ;;  %v976_v37 = vmul.f32 %v2147_v32, %v2147_v32  ;;  %v631_v38 = vpop.f32.mrb[29].mxu0  ;;  %v759_v39 = vpop.f32.mrb[29].mxu1  ;;  %v894_v32 = vsel %vm828_vm1, %v2029_v16, 0.0 }
 0x132   :  { %v857_v40 = vadd.f32 %v856_v36, %v855_v25  ;;  %v2155_v41 = vpop.f32.mrb[30].mxu0  ;;  %v2157_v46 = vpop.f32.mrb[30].mxu1 }
 0x133   :  { %3350 = vst [vmem:[#allocation3_spill] sm:$0xff] %v2155_v41  ;;  %v1053_v47 = vsel %vm828_vm1, %v976_v37, 0.0  ;;  %v858_v48 = vsel %vm828_vm1, %v2155_v41, 0.0  ;;  %v977_v49 = vmul.f32 %v2155_v41, %v2155_v41  ;;  %v634_v50 = vpop.f32.mrb[31].mxu0  ;;  %v762_v55 = vpop.f32.mrb[31].mxu1 }
 0x134   :  { %v1054_v56 = vadd.f32 %v1053_v47, %v1052_v31  ;;  %v859_v57 = vadd.f32 %v858_v48, %v857_v40 }
 0x135   :  { %v1055_v58 = vsel %vm828_vm1, %v977_v49, 0.0 }
 0x136   :  { %v1056_v59 = vadd.f32 %v1055_v58, %v1054_v56 }
 0x138   :  { %v2165_v60 = vpop.f32.mrb[32].mxu0  ;;  %v2167_v61 = vpop.f32.mrb[32].mxu1 }
 0x139   :  { %3351 = vst [vmem:[#allocation4_spill] sm:$0xff] %v2165_v60  ;;  %v860_v0 = vsel %vm828_vm1, %v2165_v60, 0.0  ;;  %v978_v1 = vmul.f32 %v2165_v60, %v2165_v60  ;;  %v639_v4 = vpop.f32.mrb[33].mxu0  ;;  %v767_v7 = vpop.f32.mrb[33].mxu1 }
 0x13a   :  { %v861_v8 = vadd.f32 %v860_v0, %v859_v57  ;;  %v2173_v9 = vpop.f32.mrb[34].mxu0  ;;  %v2175_v12 = vpop.f32.mrb[34].mxu1 }
 0x13b   :  { %3352 = vst [vmem:[#allocation5_spill] sm:$0xff] %v2173_v9  ;;  %v1057_v17 = vsel %vm828_vm1, %v978_v1, 0.0  ;;  %v862_v18 = vsel %vm828_vm1, %v2173_v9, 0.0  ;;  %v979_v19 = vmul.f32 %v2173_v9, %v2173_v9  ;;  %v642_v22 = vpop.f32.mrb[35].mxu0  ;;  %v770_v23 = vpop.f32.mrb[35].mxu1 }
 0x13c   :  { %v1058_v24 = vadd.f32 %v1057_v17, %v1056_v59  ;;  %v863_v25 = vadd.f32 %v862_v18, %v861_v8 }
 0x13d   :  { %v1059_v28 = vsel %vm828_vm1, %v979_v19, 0.0 }
 0x13e   :  { %v1060_v31 = vadd.f32 %v1059_v28, %v1058_v24 }
 0x140   :  { %v2183_v36 = vpop.f32.mrb[36].mxu0  ;;  %v2185_v37 = vpop.f32.mrb[36].mxu1 }
 0x141   :  { %3353 = vst [vmem:[#allocation6_spill] sm:$0xff] %v2183_v36  ;;  %v864_v38 = vsel %vm828_vm1, %v2183_v36, 0.0  ;;  %v980_v39 = vmul.f32 %v2183_v36, %v2183_v36  ;;  %v647_v40 = vpop.f32.mrb[37].mxu0  ;;  %v775_v47 = vpop.f32.mrb[37].mxu1 }
 0x142   :  { %v865_v48 = vadd.f32 %v864_v38, %v863_v25  ;;  %v2191_v49 = vpop.f32.mrb[38].mxu0  ;;  %v2193_v50 = vpop.f32.mrb[38].mxu1 }
 0x143   :  { %3354 = vst [vmem:[#allocation7_spill] sm:$0xff] %v2191_v49  ;;  %v1061_v55 = vsel %vm828_vm1, %v980_v39, 0.0  ;;  %v866_v56 = vsel %vm828_vm1, %v2191_v49, 0.0  ;;  %v981_v57 = vmul.f32 %v2191_v49, %v2191_v49  ;;  %v650_v58 = vpop.f32.mrb[39].mxu0  ;;  %v778_v59 = vpop.f32.mrb[39].mxu1 }
 0x144   :  { %v1062_v0 = vadd.f32 %v1061_v55, %v1060_v31  ;;  %v867_v1 = vadd.f32 %v866_v56, %v865_v48 }
 0x145   :  { %v1063_v4 = vsel %vm828_vm1, %v981_v57, 0.0 }
 0x146   :  { %v1064_v7 = vadd.f32 %v1063_v4, %v1062_v0 }
 0x148   :  { %v2201_v8 = vpop.f32.mrb[40].mxu0  ;;  %v2203_v17 = vpop.f32.mrb[40].mxu1 }
 0x149   :  { %3355 = vst [vmem:[#allocation8_spill] sm:$0xff] %v2201_v8  ;;  %v868_v18 = vsel %vm828_vm1, %v2201_v8, 0.0  ;;  %v982_v19 = vmul.f32 %v2201_v8, %v2201_v8  ;;  %v655_v22 = vpop.f32.mrb[41].mxu0  ;;  %v783_v23 = vpop.f32.mrb[41].mxu1 }
 0x14a   :  { %v869_v24 = vadd.f32 %v868_v18, %v867_v1  ;;  %v2209_v25 = vpop.f32.mrb[42].mxu0  ;;  %v2211_v28 = vpop.f32.mrb[42].mxu1 }
 0x14b   :  { %3356 = vst [vmem:[#allocation9_spill] sm:$0xff] %v2209_v25  ;;  %v1065_v31 = vsel %vm828_vm1, %v982_v19, 0.0  ;;  %v870_v38 = vsel %vm828_vm1, %v2209_v25, 0.0  ;;  %v983_v39 = vmul.f32 %v2209_v25, %v2209_v25  ;;  %v658_v40 = vpop.f32.mrb[43].mxu0  ;;  %v786_v47 = vpop.f32.mrb[43].mxu1 }
 0x14c   :  { %v1066_v48 = vadd.f32 %v1065_v31, %v1064_v7  ;;  %v871_v55 = vadd.f32 %v870_v38, %v869_v24 }
 0x14d   :  { %v1067_v56 = vsel %vm828_vm1, %v983_v39, 0.0 }
 0x14e   :  { %v1068_v57 = vadd.f32 %v1067_v56, %v1066_v48 }
 0x150   :  { %v2219_v58 = vpop.f32.mrb[44].mxu0  ;;  %v2221_v59 = vpop.f32.mrb[44].mxu1 }
 0x151   :  { %3357 = vst [vmem:[#allocation10_spill] sm:$0xff] %v2219_v58  ;;  %v872_v0 = vsel %vm828_vm1, %v2219_v58, 0.0  ;;  %v984_v1 = vmul.f32 %v2219_v58, %v2219_v58  ;;  %v663_v4 = vpop.f32.mrb[45].mxu0  ;;  %v791_v18 = vpop.f32.mrb[45].mxu1 }
 0x152   :  { %v873_v19 = vadd.f32 %v872_v0, %v871_v55  ;;  %v2227_v22 = vpop.f32.mrb[46].mxu0  ;;  %v2229_v7 = vpop.f32.mrb[46].mxu1 }
 0x153   :  { %3358 = vst [vmem:[#allocation11_spill] sm:$0xff] %v2227_v22  ;;  %v1069_v23 = vsel %vm828_vm1, %v984_v1, 0.0  ;;  %v874_v24 = vsel %vm828_vm1, %v2227_v22, 0.0  ;;  %v985_v31 = vmul.f32 %v2227_v22, %v2227_v22  ;;  %v666_v38 = vpop.f32.mrb[47].mxu0  ;;  %v794_v39 = vpop.f32.mrb[47].mxu1 }
 0x154   :  { %v1070_v40 = vadd.f32 %v1069_v23, %v1068_v57  ;;  %v875_v47 = vadd.f32 %v874_v24, %v873_v19 }
 0x155   :  { %v1071_v48 = vsel %vm828_vm1, %v985_v31, 0.0 }
 0x156   :  { %v1072_v56 = vadd.f32 %v1071_v48, %v1070_v40 }
 0x158   :  { %v2237_v55 = vpop.f32.mrb[48].mxu0  ;;  %v2239_v0 = vpop.f32.mrb[48].mxu1 }
 0x159   :  { %3359 = vst [vmem:[#allocation12_spill] sm:$0xff] %v2237_v55  ;;  %v876_v1 = vsel %vm828_vm1, %v2237_v55, 0.0  ;;  %v986_v4 = vmul.f32 %v2237_v55, %v2237_v55  ;;  %v671_v18 = vpop.f32.mrb[49].mxu0  ;;  %v799_v58 = vpop.f32.mrb[49].mxu1 }
 0x15a   :  { %v877_v22 = vadd.f32 %v876_v1, %v875_v47  ;;  %v2245_v38 = vpop.f32.mrb[50].mxu0  ;;  %v2247_v57 = vpop.f32.mrb[50].mxu1 }
 0x15b   :  { %3360 = vst [vmem:[#allocation13_spill] sm:$0xff] %v2245_v38  ;;  %3361 = vst [vmem:[#allocation14_spill] sm:$0xff] %v2247_v57  ;;  %v1073_v19 = vsel %vm828_vm1, %v986_v4, 0.0  ;;  %v878_v23 = vsel %vm828_vm1, %v2245_v38, 0.0  ;;  %v987_v24 = vmul.f32 %v2245_v38, %v2245_v38  ;;  %v674_v31 = vpop.f32.mrb[51].mxu0  ;;  %v802_v39 = vpop.f32.mrb[51].mxu1 }
 0x15c   :  { %v1074_v40 = vadd.f32 %v1073_v19, %v1072_v56  ;;  %v879_v48 = vadd.f32 %v878_v23, %v877_v22 }
 0x15d   :  { %v1075_v18 = vsel %vm828_vm1, %v987_v24, 0.0 }
 0x15e   :  { %v1076_v58 = vadd.f32 %v1075_v18, %v1074_v40 }
 0x160   :  { %v2255_v47 = vpop.f32.mrb[52].mxu0  ;;  %v2257_v1 = vpop.f32.mrb[52].mxu1 }
 0x161   :  { %3362 = vst [vmem:[#allocation15_spill] sm:$0xff] %v2255_v47  ;;  %3363 = vst [vmem:[#allocation16_spill] sm:$0xff] %v2257_v1  ;;  %v880_v4 = vsel %vm828_vm1, %v2255_v47, 0.0  ;;  %v988_v55 = vmul.f32 %v2255_v47, %v2255_v47  ;;  %v679_v25 = vpop.f32.mrb[53].mxu0  ;;  %v807_v8 = vpop.f32.mrb[53].mxu1 }
 0x162   :  { %v881_v38 = vadd.f32 %v880_v4, %v879_v48  ;;  %v2263_v31 = vpop.f32.mrb[54].mxu0  ;;  %v2265_v56 = vpop.f32.mrb[54].mxu1 }
 0x163   :  { %3364 = vst [vmem:[#allocation17_spill] sm:$0xff] %v2263_v31  ;;  %3365 = vst [vmem:[#allocation18_spill] sm:$0xff] %v2265_v56  ;;  %v1077_v22 = vsel %vm828_vm1, %v988_v55, 0.0  ;;  %v882_v19 = vsel %vm828_vm1, %v2263_v31, 0.0  ;;  %v989_v23 = vmul.f32 %v2263_v31, %v2263_v31  ;;  %v682_v24 = vpop.f32.mrb[55].mxu0  ;;  %v810_v39 = vpop.f32.mrb[55].mxu1 }
 0x164   :  { %v1078_v40 = vadd.f32 %v1077_v22, %v1076_v58  ;;  %v883_v18 = vadd.f32 %v882_v19, %v881_v38 }
 0x165   :  { %v1079_v25 = vsel %vm828_vm1, %v989_v23, 0.0 }
 0x166   :  { %v1080_v8 = vadd.f32 %v1079_v25, %v1078_v40 }
 0x168   :  { %v2273_v48 = vpop.f32.mrb[56].mxu0  ;;  %v2275_v4 = vpop.f32.mrb[56].mxu1 }
 0x169   :  { %3366 = vst [vmem:[#allocation19_spill] sm:$0xff] %v2273_v48  ;;  %3367 = vst [vmem:[#allocation20_spill] sm:$0xff] %v2275_v4  ;;  %v884_v55 = vsel %vm828_vm1, %v2273_v48, 0.0  ;;  %v990_v47 = vmul.f32 %v2273_v48, %v2273_v48  ;;  %v687_v49 = vpop.f32.mrb[57].mxu0  ;;  %v815_v36 = vpop.f32.mrb[57].mxu1 }
 0x16a   :  { %v885_v31 = vadd.f32 %v884_v55, %v883_v18  ;;  %v2281_v24 = vpop.f32.mrb[58].mxu0  ;;  %v2283_v58 = vpop.f32.mrb[58].mxu1 }
 0x16b   :  { %3368 = vst [vmem:[#allocation21_spill] sm:$0xff] %v2281_v24  ;;  %3369 = vst [vmem:[#allocation22_spill] sm:$0xff] %v2283_v58  ;;  %v1081_v38 = vsel %vm828_vm1, %v990_v47, 0.0  ;;  %v886_v22 = vsel %vm828_vm1, %v2281_v24, 0.0  ;;  %v991_v19 = vmul.f32 %v2281_v24, %v2281_v24  ;;  %v690_v23 = vpop.f32.mrb[59].mxu0  ;;  %v818_v39 = vpop.f32.mrb[59].mxu1 }
 0x16c   :  { %v1082_v40 = vadd.f32 %v1081_v38, %v1080_v8  ;;  %v887_v25 = vadd.f32 %v886_v22, %v885_v31  ;;  %v994_v31 = vmul.f32 %v2023_v11, %v2023_v11 }
 0x16d   :  { %v1083_v49 = vsel %vm828_vm1, %v991_v19, 0.0 }
 0x16e   :  { %v1084_v36 = vadd.f32 %v1083_v49, %v1082_v40  ;;  %v995_v49 = vmul.f32 %v2029_v16, %v2029_v16  ;;  %v1089_v41 = vsel %vm828_vm1, %v994_v31, 0.0 }
 0x170   :  { %v2291_v18 = vpop.f32.mrb[60].mxu0  ;;  %v2293_v55 = vpop.f32.mrb[60].mxu1 }
 0x171   :  { %3370 = vst [vmem:[#allocation23_spill] sm:$0xff] %v2291_v18  ;;  %3371 = vst [vmem:[#allocation24_spill] sm:$0xff] %v2293_v55  ;;  %v888_v47 = vsel %vm828_vm1, %v2291_v18, 0.0  ;;  %v992_v48 = vmul.f32 %v2291_v18, %v2291_v18  ;;  %v695_v9 = vpop.f32.mrb[61].mxu0  ;;  %v823_v60 = vpop.f32.mrb[61].mxu1 }
 0x172   :  { %v889_v24 = vadd.f32 %v888_v47, %v887_v25  ;;  %v2299_v23 = vpop.f32.mrb[62].mxu0  ;;  %v2301_v8 = vpop.f32.mrb[62].mxu1  ;;  %v892_v25 = vsel %vm828_vm1, %v2023_v11, 0.0 }
 0x173   :  { %v1085_v38 = vsel %vm828_vm1, %v992_v48, 0.0  ;;  %v890_v22 = vsel %vm828_vm1, %v2299_v23, 0.0  ;;  %v993_v19 = vmul.f32 %v2299_v23, %v2299_v23  ;;  %v698_v39 = vpop.f32.mrb[63].mxu0  ;;  %v826_v40 = vpop.f32.mrb[63].mxu1 }
 0x174   :  { %v1086_v9 = vadd.f32 %v1085_v38, %v1084_v36  ;;  %v891_v60 = vadd.f32 %v890_v22, %v889_v24  ;;  %v996_v39 = vmul.f32 %v2041_v27, %v2041_v27  ;;  %v1091_v38 = vsel %vm828_vm1, %v995_v49, 0.0 }
 0x175   :  { %v1087_v47 = vsel %vm828_vm1, %v993_v19, 0.0  ;;  %v896_v22 = vsel %vm828_vm1, %v2041_v27, 0.0  ;;  %v997_v19 = vmul.f32 %v2049_v34, %v2049_v34  ;;  %v900_v49 = vsel %vm828_vm1, %v2059_v45, 0.0 }
 0x176   :  { %v893_v18 = vadd.f32 %v892_v25, %v891_v60  ;;  %v1088_v48 = vadd.f32 %v1087_v47, %v1086_v9  ;;  %v1093_v31 = vsel %vm828_vm1, %v996_v39, 0.0  ;;  %v898_v60 = vsel %vm828_vm1, %v2049_v34, 0.0 }
 0x177   :  { %v998_v25 = vmul.f32 %v2059_v45, %v2059_v45  ;;  %v999_v47 = vmul.f32 %v2067_v52, %v2067_v52 }
 0x178   :  { %v895_v36 = vadd.f32 %v894_v32, %v893_v18  ;;  %v1090_v24 = vadd.f32 %v1089_v41, %v1088_v48  ;;  %v1095_v18 = vsel %vm828_vm1, %v997_v19, 0.0 }
 0x179   :  { %v1097_v39 = vsel %vm828_vm1, %v998_v25, 0.0  ;;  %v1099_v19 = vsel %vm828_vm1, %v999_v47, 0.0 }
 0x17a   :  { %v897_v40 = vadd.f32 %v896_v22, %v895_v36  ;;  %v1092_v9 = vadd.f32 %v1091_v38, %v1090_v24  ;;  %v902_v24 = vsel %vm828_vm1, %v2067_v52, 0.0  ;;  %v1000_v38 = vmul.f32 %v2077_v63, %v2077_v63 }
 0x17c   :  { %v899_v32 = vadd.f32 %v898_v60, %v897_v40  ;;  %v1094_v41 = vadd.f32 %v1093_v31, %v1092_v9  ;;  %v904_v9 = vsel %vm828_vm1, %v2077_v63, 0.0  ;;  %v1001_v31 = vmul.f32 %v2085_v6, %v2085_v6 }
 0x17d   :  { %v1101_v25 = vsel %vm828_vm1, %v1000_v38, 0.0 }
 0x17e   :  { %v901_v48 = vadd.f32 %v900_v49, %v899_v32  ;;  %v1096_v36 = vadd.f32 %v1095_v18, %v1094_v41  ;;  %v906_v41 = vsel %vm828_vm1, %v2085_v6, 0.0  ;;  %v1002_v18 = vmul.f32 %v2095_v21, %v2095_v21 }
 0x17f   :  { %v1103_v47 = vsel %vm828_vm1, %v1001_v31, 0.0 }
 0x180   :  { %v903_v22 = vadd.f32 %v902_v24, %v901_v48  ;;  %v1098_v40 = vadd.f32 %v1097_v39, %v1096_v36  ;;  %v908_v36 = vsel %vm828_vm1, %v2095_v21, 0.0  ;;  %v1003_v39 = vmul.f32 %v2103_v30, %v2103_v30 }
 0x181   :  { %v1105_v38 = vsel %vm828_vm1, %v1002_v18, 0.0 }
 0x182   :  { %v905_v60 = vadd.f32 %v904_v9, %v903_v22  ;;  %v1100_v32 = vadd.f32 %v1099_v19, %v1098_v40  ;;  %v910_v40 = vsel %vm828_vm1, %v2103_v30, 0.0  ;;  %v1004_v19 = vmul.f32 %v2113_v43, %v2113_v43 }
 0x183   :  { %v1107_v31 = vsel %vm828_vm1, %v1003_v39, 0.0 }
 0x184   :  { %v907_v49 = vadd.f32 %v906_v41, %v905_v60  ;;  %v1102_v48 = vadd.f32 %v1101_v25, %v1100_v32  ;;  %v912_v32 = vsel %vm828_vm1, %v2113_v43, 0.0  ;;  %v1005_v25 = vmul.f32 %v2121_v54, %v2121_v54 }
 0x185   :  { %v1109_v18 = vsel %vm828_vm1, %v1004_v19, 0.0 }
 0x186   :  { %v1104_v24 = vadd.f32 %v1103_v47, %v1102_v48  ;;  %v909_v22 = vadd.f32 %v908_v36, %v907_v49  ;;  %v914_v48 = vsel %vm828_vm1, %v2121_v54, 0.0  ;;  %v1006_v47 = vmul.f32 %v2131_v3, %v2131_v3 }
 0x187   :  { %v1111_v39 = vsel %vm828_vm1, %v1005_v25, 0.0 }
 0x188   :  { %v911_v9 = vadd.f32 %v910_v40, %v909_v22  ;;  %v1106_v60 = vadd.f32 %v1105_v38, %v1104_v24  ;;  %v916_v22 = vsel %vm828_vm1, %v2131_v3, 0.0  ;;  %v1007_v38 = vmul.f32 %v2139_v14, %v2139_v14 }
 0x189   :  { %v1113_v19 = vsel %vm828_vm1, %v1006_v47, 0.0 }
 0x18a   :  { %v913_v41 = vadd.f32 %v912_v32, %v911_v9  ;;  %v1108_v49 = vadd.f32 %v1107_v31, %v1106_v60  ;;  %v918_v60 = vsel %vm828_vm1, %v2139_v14, 0.0  ;;  %v1008_v31 = vmul.f32 %v2149_v35, %v2149_v35 }
 0x18b   :  { %v1115_v25 = vsel %vm828_vm1, %v1007_v38, 0.0 }
 0x18c   :  { %v915_v36 = vadd.f32 %v914_v48, %v913_v41  ;;  %v1110_v24 = vadd.f32 %v1109_v18, %v1108_v49  ;;  %v920_v49 = vsel %vm828_vm1, %v2149_v35, 0.0  ;;  %v1009_v18 = vmul.f32 %v2157_v46, %v2157_v46 }
 0x18d   :  { %v1117_v47 = vsel %vm828_vm1, %v1008_v31, 0.0 }
 0x18e   :  { %v917_v40 = vadd.f32 %v916_v22, %v915_v36  ;;  %v1112_v9 = vadd.f32 %v1111_v39, %v1110_v24  ;;  %v922_v24 = vsel %vm828_vm1, %v2157_v46, 0.0  ;;  %v1010_v39 = vmul.f32 %v2167_v61, %v2167_v61 }
 0x18f   :  { %v1119_v38 = vsel %vm828_vm1, %v1009_v18, 0.0 }
 0x190   :  { %v919_v32 = vadd.f32 %v918_v60, %v917_v40  ;;  %v1114_v41 = vadd.f32 %v1113_v19, %v1112_v9  ;;  %v924_v9 = vsel %vm828_vm1, %v2167_v61, 0.0  ;;  %v1011_v19 = vmul.f32 %v2175_v12, %v2175_v12 }
 0x191   :  { %v1121_v31 = vsel %vm828_vm1, %v1010_v39, 0.0 }
 0x192   :  { %v921_v48 = vadd.f32 %v920_v49, %v919_v32  ;;  %v1116_v36 = vadd.f32 %v1115_v25, %v1114_v41  ;;  %v926_v41 = vsel %vm828_vm1, %v2175_v12, 0.0  ;;  %v1012_v25 = vmul.f32 %v2185_v37, %v2185_v37 }
 0x193   :  { %v1123_v18 = vsel %vm828_vm1, %v1011_v19, 0.0 }
 0x194   :  { %v923_v22 = vadd.f32 %v922_v24, %v921_v48  ;;  %v1118_v40 = vadd.f32 %v1117_v47, %v1116_v36  ;;  %v928_v36 = vsel %vm828_vm1, %v2185_v37, 0.0  ;;  %v1013_v47 = vmul.f32 %v2193_v50, %v2193_v50 }
 0x195   :  { %v1125_v39 = vsel %vm828_vm1, %v1012_v25, 0.0 }
 0x196   :  { %v925_v60 = vadd.f32 %v924_v9, %v923_v22  ;;  %v1120_v32 = vadd.f32 %v1119_v38, %v1118_v40  ;;  %v930_v40 = vsel %vm828_vm1, %v2193_v50, 0.0  ;;  %v1014_v38 = vmul.f32 %v2203_v17, %v2203_v17 }
 0x197   :  { %v1127_v19 = vsel %vm828_vm1, %v1013_v47, 0.0 }
 0x198   :  { %v1122_v49 = vadd.f32 %v1121_v31, %v1120_v32  ;;  %v927_v48 = vadd.f32 %v926_v41, %v925_v60  ;;  %v932_v32 = vsel %vm828_vm1, %v2203_v17, 0.0  ;;  %v1015_v31 = vmul.f32 %v2211_v28, %v2211_v28 }
 0x199   :  { %v1129_v25 = vsel %vm828_vm1, %v1014_v38, 0.0 }
 0x19a   :  { %v1124_v24 = vadd.f32 %v1123_v18, %v1122_v49  ;;  %v929_v22 = vadd.f32 %v928_v36, %v927_v48  ;;  %v934_v48 = vsel %vm828_vm1, %v2211_v28, 0.0  ;;  %v1016_v18 = vmul.f32 %v2221_v59, %v2221_v59 }
 0x19b   :  { %v1131_v47 = vsel %vm828_vm1, %v1015_v31, 0.0 }
 0x19c   :  { %v1126_v9 = vadd.f32 %v1125_v39, %v1124_v24  ;;  %v931_v60 = vadd.f32 %v930_v40, %v929_v22  ;;  %v936_v22 = vsel %vm828_vm1, %v2221_v59, 0.0  ;;  %v1017_v39 = vmul.f32 %v2229_v7, %v2229_v7 }
 0x19d   :  { %v1133_v38 = vsel %vm828_vm1, %v1016_v18, 0.0 }
 0x19e   :  { %v1128_v41 = vadd.f32 %v1127_v19, %v1126_v9  ;;  %v933_v49 = vadd.f32 %v932_v32, %v931_v60  ;;  %v938_v60 = vsel %vm828_vm1, %v2229_v7, 0.0  ;;  %v1018_v19 = vmul.f32 %v2239_v0, %v2239_v0 }
 0x19f   :  { %v1135_v31 = vsel %vm828_vm1, %v1017_v39, 0.0 }
 0x1a0   :  { %v1130_v36 = vadd.f32 %v1129_v25, %v1128_v41  ;;  %v935_v24 = vadd.f32 %v934_v48, %v933_v49  ;;  %v940_v49 = vsel %vm828_vm1, %v2239_v0, 0.0  ;;  %v1019_v25 = vmul.f32 %v2247_v57, %v2247_v57 }
 0x1a1   :  { %v1137_v18 = vsel %vm828_vm1, %v1018_v19, 0.0 }
 0x1a2   :  { %v1132_v40 = vadd.f32 %v1131_v47, %v1130_v36  ;;  %v937_v9 = vadd.f32 %v936_v22, %v935_v24  ;;  %v942_v24 = vsel %vm828_vm1, %v2247_v57, 0.0  ;;  %v1020_v47 = vmul.f32 %v2257_v1, %v2257_v1 }
 0x1a3   :  { %v1139_v39 = vsel %vm828_vm1, %v1019_v25, 0.0 }
 0x1a4   :  { %v1134_v32 = vadd.f32 %v1133_v38, %v1132_v40  ;;  %v939_v41 = vadd.f32 %v938_v60, %v937_v9  ;;  %v944_v9 = vsel %vm828_vm1, %v2257_v1, 0.0  ;;  %v1021_v38 = vmul.f32 %v2265_v56, %v2265_v56 }
 0x1a5   :  { %v1141_v19 = vsel %vm828_vm1, %v1020_v47, 0.0 }
 0x1a6   :  { %v1136_v48 = vadd.f32 %v1135_v31, %v1134_v32  ;;  %v941_v36 = vadd.f32 %v940_v49, %v939_v41  ;;  %v946_v41 = vsel %vm828_vm1, %v2265_v56, 0.0  ;;  %v1022_v31 = vmul.f32 %v2275_v4, %v2275_v4 }
 0x1a7   :  { %v1143_v25 = vsel %vm828_vm1, %v1021_v38, 0.0 }
 0x1a8   :  { %v1138_v22 = vadd.f32 %v1137_v18, %v1136_v48  ;;  %v943_v40 = vadd.f32 %v942_v24, %v941_v36  ;;  %v948_v36 = vsel %vm828_vm1, %v2275_v4, 0.0  ;;  %v1023_v18 = vmul.f32 %v2283_v58, %v2283_v58 }
 0x1a9   :  { %v1024_v24 = vmul.f32 %v2293_v55, %v2293_v55 }
 0x1aa   :  { %v1140_v60 = vadd.f32 %v1139_v39, %v1138_v22  ;;  %v945_v32 = vadd.f32 %v944_v9, %v943_v40  ;;  %v1145_v40 = vsel %vm828_vm1, %v1022_v31, 0.0  ;;  %v950_v39 = vsel %vm828_vm1, %v2283_v58, 0.0 }
 0x1ab   :  { %v952_v9 = vsel %vm828_vm1, %v2293_v55, 0.0  ;;  %v954_v31 = vsel %vm828_vm1, %v2301_v8, 0.0 }
 0x1ac   :  { %v1142_v49 = vadd.f32 %v1141_v19, %v1140_v60  ;;  %v947_v48 = vadd.f32 %v946_v41, %v945_v32  ;;  %v1147_v32 = vsel %vm828_vm1, %v1023_v18, 0.0  ;;  %v1149_v19 = vsel %vm828_vm1, %v1024_v24, 0.0 }
 0x1ad   :  { %v1025_v41 = vmul.f32 %v2301_v8, %v2301_v8 }
 0x1ae   :  { %v1144_v47 = vadd.f32 %v1143_v25, %v1142_v49  ;;  %v949_v22 = vadd.f32 %v948_v36, %v947_v48 }
 0x1af   :  { %v1151_v36 = vsel %vm828_vm1, %v1025_v41, 0.0 }
 0x1b0   :  { %v1146_v38 = vadd.f32 %v1145_v40, %v1144_v47  ;;  %v951_v60 = vadd.f32 %v950_v39, %v949_v22 }
 0x1b2   :  { %v1148_v4 = vadd.f32 %v1147_v32, %v1146_v38  ;;  %v953_v49 = vadd.f32 %v952_v9, %v951_v60 }
 0x1b4   :  { %v1150_v48 = vadd.f32 %v1149_v19, %v1148_v4  ;;  %v955_v25 = vadd.f32 %v954_v31, %v953_v49 }
 0x1b6   :  { %v956_v58 = vrot.slane %v955_v25, 4  ;;  %v1152_v55 = vadd.f32 %v1151_v36, %v1150_v48 }
 0x1b8   :  { %v957_v47 = vadd.f32 %v956_v58, %v955_v25  ;;  %v1153_v22 = vrot.slane %v1152_v55, 4 }
 0x1ba   :  { %v958_v40 = vrot.slane %v957_v47, 2  ;;  %v1154_v18 = vadd.f32 %v1153_v22, %v1152_v55 }
 0x1bc   :  { %v959_v39 = vadd.f32 %v958_v40, %v957_v47  ;;  %v1155_v24 = vrot.slane %v1154_v18, 2 }
 0x1be   :  { %v960_v56 = vrot.slane %v959_v39, 1  ;;  %v1156_v1 = vadd.f32 %v1155_v24, %v1154_v18 }
 0x1c0   :  { %v961_v57 = vadd.f32 %v960_v56, %v959_v39  ;;  %v1157_v38 = vrot.slane %v1156_v1, 1  ;;  %v1198_v39 = vlaneseq }
 0x1c2   :  { %1169 = vrot.lane.b32.xlu1 %v961_v57, %s1739_s0  ;;  %1160 = vrot.lane.b32.xlu0 %v961_v57, %s1740_s26  ;;  %v1158_v4 = vadd.f32 %v1157_v38, %v1156_v1  ;;  %v1199_v24 = vshrl.u32 %v1198_v39, 7 }
 0x1c4   :  { %v2472_v38 = vsub.s32 0, %v1199_v24 }
 0x1c6   :  { %1173 = vrot.lane.b32.xlu1 %v1158_v4, %s1739_s0  ;;  %1165 = vrot.lane.b32.xlu0 %v1158_v4, %s1740_s26 }
 0x1ca   :  { %1181 = vrot.lane.b32.xlu1 %v1158_v4, %s1741_s27  ;;  %1177 = vrot.lane.b32.xlu0 %v961_v57, %s1741_s27 }
 0x234   :  { %v1170_v58 = vpop.permute.xlu1 %1169  ;;  %v1161_v9 = vpop.permute.xlu0 %1160 }
 0x235   :  { %v1163_v60 = vadd.f32 %v1161_v9, %v961_v57  ;;  %v1190_v57 = vld [vmem:[%s3323_s2] sm:$0x1] }
 0x236   :  { %v1194_v9 = vld [vmem:[%s3324_s3] sm:$0x1] }
 0x237   :  { %v1172_v49 = vadd.f32 %v1170_v58, %v1163_v60 }
 0x238   :  { %v1174_v55 = vpop.permute.xlu1 %1173  ;;  %v1166_v32 = vpop.permute.xlu0 %1165 }
 0x239   :  { %v1168_v19 = vadd.f32 %v1166_v32, %v1158_v4 }
 0x23b   :  { %v1176_v41 = vadd.f32 %v1174_v55, %v1168_v19 }
 0x23c   :  { %v1182_v56 = vpop.permute.xlu1 %1181  ;;  %v1178_v31 = vpop.permute.xlu0 %1177 }
 0x23d   :  { %v1184_v48 = vadd.f32 %v1182_v56, %v1176_v41  ;;  %v1180_v25 = vadd.f32 %v1178_v31, %v1172_v49 }
 0x23f   :  { %v1185_v36 = vmul.f32 0.00048828125, %v1180_v25  ;;  %v1186_v47 = vmul.f32 0.00048828125, %v1184_v48 }
 0x241   :  { %v1187_v1 = vmul.f32 %v1185_v36, %v1185_v36 }
 0x243   :  { %v1188_v22 = vsub.f32 %v1186_v47, %v1187_v1 }
 0x245   :  { %v1189_v40 = vmax.f32 %v1188_v22, 0.0 }
 0x247   :  { %v1191_v18 = vadd.f32 1e-05, %v1189_v40 }
 0x249   :  { %1736 = vrsqrt.f32 %v1191_v18 }
 0x253   :  { %v1737_v4 = vpop.eup %1736 }
 0x254   :  { %v1193_v58 = vmul.f32 %v1737_v4, %v1190_v57  ;;  %v3372_v57 = vld [vmem:[#allocation2_spill] sm:$0xff]  ;;  %v3373_v4 = vld [vmem:[#allocation3_spill] sm:$0xff] }
 0x256   :  { %v1195_v60 = vmul.f32 %v1193_v58, %v1185_v36  ;;  %v1201_v55 = vrot.slane %v1193_v58, %v2472_v38 }
 0x258   :  { %v1196_v32 = vsub.f32 %v1194_v9, %v1195_v60  ;;  %1205 = vrot.lane.b32.xlu1 %v1201_v55, %s1742_s6  ;;  %1202 = vrot.lane.b32.xlu0 %v1201_v55, %s1743_s7  ;;  %v3375_v9 = vld [vmem:[#allocation5_spill] sm:$0xff]  ;;  %v3376_v60 = vld [vmem:[#allocation6_spill] sm:$0xff] }
 0x25a   :  { %v1220_v19 = vrot.slane %v1196_v32, %v2472_v38 }
 0x25c   :  { %1208 = vrot.lane.b32.xlu0 %v1201_v55, %s1744_s8  ;;  %1221 = vrot.lane.b32.xlu1 %v1220_v19, %s1743_s7  ;;  %v3377_v55 = vld [vmem:[#allocation7_spill] sm:$0xff] }
 0x260   :  { %1224 = vrot.lane.b32.xlu0 %v1220_v19, %s1742_s6  ;;  %1227 = vrot.lane.b32.xlu1 %v1220_v19, %s1744_s8  ;;  %v3378_v19 = vld [vmem:[#allocation8_spill] sm:$0xff] }
 0x2ca   :  { %v1203_v41 = vpop.permute.xlu0 %1202  ;;  %v1206_v49 = vpop.permute.xlu1 %1205 }
 0x2cb   :  { %v1212_v56 = vsel %vm1211_vm2, %v1193_v58, %v1203_v41  ;;  %v3374_v58 = vld [vmem:[#allocation4_spill] sm:$0xff] }
 0x2cc   :  { %v1213_v31 = vsel %vm442_vm0, %v1212_v56, %v1206_v49  ;;  %v3379_v49 = vld [vmem:[#allocation9_spill] sm:$0xff] }
 0x2ce   :  { %v1209_v48 = vpop.permute.xlu0 %1208  ;;  %v1222_v47 = vpop.permute.xlu1 %1221 }
 0x2cf   :  { %v1215_v25 = vsel %vm1214_vm3, %v1213_v31, %v1209_v48  ;;  %v1230_v18 = vsel %vm1211_vm2, %v1196_v32, %v1222_v47  ;;  %v3380_v31 = vld [vmem:[#allocation10_spill] sm:$0xff] }
 0x2d0   :  { %v2482_v36 = vrot.slane %v1215_v25, %v2472_v38  ;;  %v3381_v25 = vld [vmem:[#allocation11_spill] sm:$0xff] }
 0x2d2   :  { %v2486_v1 = vmul.f32 %v2482_v36, %v2021_v10  ;;  %v2490_v22 = vmul.f32 %v2482_v36, %v2027_v15  ;;  %v2494_v40 = vmul.f32 %v2482_v36, %v2039_v26  ;;  %v2498_v39 = vmul.f32 %v2482_v36, %v2047_v33 }
 0x2d3   :  { %v2502_v24 = vmul.f32 %v2482_v36, %v2057_v44  ;;  %v2506_v10 = vmul.f32 %v2482_v36, %v2065_v51  ;;  %v2510_v15 = vmul.f32 %v2482_v36, %v2075_v62  ;;  %v2514_v26 = vmul.f32 %v2482_v36, %v2083_v5 }
 0x2d4   :  { %v2518_v33 = vmul.f32 %v2482_v36, %v2093_v20  ;;  %v2522_v44 = vmul.f32 %v2482_v36, %v2101_v29  ;;  %v2526_v51 = vmul.f32 %v2482_v36, %v2111_v42  ;;  %v2530_v62 = vmul.f32 %v2482_v36, %v2119_v53 }
 0x2d5   :  { %v2534_v5 = vmul.f32 %v2482_v36, %v2129_v2  ;;  %v2538_v20 = vmul.f32 %v2482_v36, %v2137_v13  ;;  %v2542_v29 = vmul.f32 %v2482_v36, %v3372_v57  ;;  %v2546_v42 = vmul.f32 %v2482_v36, %v3373_v4  ;;  %v3383_v57 = vld [vmem:[#allocation12_spill] sm:$0xff] }
 0x2d6   :  { %v2550_v53 = vmul.f32 %v2482_v36, %v3374_v58  ;;  %v2554_v2 = vmul.f32 %v2482_v36, %v3375_v9  ;;  %v2558_v13 = vmul.f32 %v2482_v36, %v3376_v60  ;;  %v2562_v32 = vmul.f32 %v2482_v36, %v3377_v55  ;;  %v3385_v58 = vld [vmem:[#allocation13_spill] sm:$0xff]  ;;  %v3386_v60 = vld [vmem:[#allocation15_spill] sm:$0xff] }
 0x2d7   :  { %v2566_v41 = vmul.f32 %v2482_v36, %v3378_v19  ;;  %v2570_v56 = vmul.f32 %v2482_v36, %v3379_v49  ;;  %v2574_v48 = vmul.f32 %v2482_v36, %v3380_v31  ;;  %v2578_v47 = vmul.f32 %v2482_v36, %v3381_v25  ;;  %v3387_v19 = vld [vmem:[#allocation17_spill] sm:$0xff]  ;;  %v3388_v31 = vld [vmem:[#allocation19_spill] sm:$0xff] }
 0x2d8   :  { %v2582_v4 = vmul.f32 %v2482_v36, %v3383_v57  ;;  %v2586_v9 = vmul.f32 %v2482_v36, %v3385_v58  ;;  %v2590_v55 = vmul.f32 %v2482_v36, %v3386_v60  ;;  %v2594_v49 = vmul.f32 %v2482_v36, %v3387_v19 }
 0x2d9   :  { %3382 = vst [vmem:[#allocation2_spill] sm:$0xff] %v2578_v47  ;;  %v2598_v25 = vmul.f32 %v2482_v36, %v3388_v31  ;;  %v3389_v47 = vld [vmem:[#allocation21_spill] sm:$0xff]  ;;  %v2610_v60 = vmul.f32 %v2482_v36, %v2299_v23  ;;  %v2614_v19 = vmul.f32 %v2482_v36, %v2023_v11  ;;  %v2618_v31 = vmul.f32 %v2482_v36, %v2029_v16 }
 0x2da   :  { %3384 = vst [vmem:[#allocation3_spill] sm:$0xff] %v2582_v4  ;;  %v2602_v57 = vmul.f32 %v2482_v36, %v3389_v47  ;;  %v3390_v4 = vld [vmem:[#allocation23_spill] sm:$0xff]  ;;  %v2622_v47 = vmul.f32 %v2482_v36, %v2041_v27  ;;  %v2630_v23 = vmul.f32 %v2482_v36, %v2059_v45  ;;  %v2634_v11 = vmul.f32 %v2482_v36, %v2067_v52 }
 0x2db   :  { %v2606_v58 = vmul.f32 %v2482_v36, %v3390_v4  ;;  %v2626_v4 = vmul.f32 %v2482_v36, %v2049_v34  ;;  %v2638_v16 = vmul.f32 %v2482_v36, %v2077_v63  ;;  %v2642_v27 = vmul.f32 %v2482_v36, %v2085_v6 }
 0x2dc   :  { %3391 = vst [vmem:[#allocation4_spill] sm:$0xff] %v2634_v11  ;;  %v2646_v34 = vmul.f32 %v2482_v36, %v2095_v21  ;;  %v2650_v45 = vmul.f32 %v2482_v36, %v2103_v30  ;;  %v2654_v52 = vmul.f32 %v2482_v36, %v2113_v43  ;;  %v1225_v11 = vpop.permute.xlu0 %1224  ;;  %v2658_v63 = vmul.f32 %v2482_v36, %v2121_v54 }
 0x2dd   :  { %v2662_v6 = vmul.f32 %v2482_v36, %v2131_v3  ;;  %v2666_v21 = vmul.f32 %v2482_v36, %v2139_v14  ;;  %v2670_v30 = vmul.f32 %v2482_v36, %v2149_v35  ;;  %v2674_v43 = vmul.f32 %v2482_v36, %v2157_v46 }
 0x2de   :  { %3392 = vst [vmem:[#allocation5_spill] sm:$0xff] %v2650_v45  ;;  %v1228_v45 = vpop.permute.xlu1 %1227  ;;  %v2678_v54 = vmul.f32 %v2482_v36, %v2167_v61  ;;  %v2682_v3 = vmul.f32 %v2482_v36, %v2175_v12  ;;  %v2686_v14 = vmul.f32 %v2482_v36, %v2185_v37  ;;  %v2690_v35 = vmul.f32 %v2482_v36, %v2193_v50 }
 0x2df   :  { %v2694_v46 = vmul.f32 %v2482_v36, %v2203_v17  ;;  %v2698_v61 = vmul.f32 %v2482_v36, %v2211_v28  ;;  %v2703_v12 = vmul.f32 %v2482_v36, %v2221_v59  ;;  %v2707_v37 = vmul.f32 %v2482_v36, %v2229_v7  ;;  %v3400_v59 = vld [vmem:[#allocation18_spill] sm:$0xff] }
 0x2e0   :  { %3393 = vst [vmem:[#allocation6_spill] sm:$0xff] %v2678_v54  ;;  %v1231_v54 = vsel %vm442_vm0, %v1230_v18, %v1225_v11  ;;  %v2711_v50 = vmul.f32 %v2482_v36, %v2239_v0  ;;  %v2724_v11 = vmul.f32 %v2482_v36, %v3400_v59 }
 0x2e1   :  { %3394 = vst [vmem:[#allocation7_spill] sm:$0xff] %v2694_v46  ;;  %3395 = vst [vmem:[#allocation8_spill] sm:$0xff] %v2698_v61  ;;  %v1232_v17 = vsel %vm1214_vm3, %v1231_v54, %v1228_v45  ;;  %v3397_v46 = vld [vmem:[#allocation14_spill] sm:$0xff]  ;;  %v3399_v61 = vld [vmem:[#allocation16_spill] sm:$0xff] }
 0x2e2   :  { %3396 = vst [vmem:[#allocation9_spill] sm:$0xff] %v2707_v37  ;;  %v2716_v28 = vmul.f32 %v2482_v36, %v3397_v46  ;;  %v2720_v18 = vmul.f32 %v2482_v36, %v3399_v61  ;;  %v2727_v7 = vrot.slane %v1232_v17, %v2472_v38  ;;  %v3401_v37 = vld [vmem:[#allocation20_spill] sm:$0xff]  ;;  %v3402_v45 = vld [vmem:[#allocation22_spill] sm:$0xff]  ;;  %v2743_v61 = vmul.f32 %v2482_v36, %v2301_v8 }
 0x2e3   :  { %v2731_v0 = vmul.f32 %v2482_v36, %v3401_v37  ;;  %v2735_v54 = vmul.f32 %v2482_v36, %v3402_v45  ;;  %v3403_v46 = vld [vmem:[#allocation24_spill] sm:$0xff]  ;;  %v3405_v45 = vld [vmem:[#allocation3_spill] sm:$0xff] }
 0x2e4   :  { %3398 = vst [vmem:[#allocation10_spill] sm:$0xff] %v2716_v28  ;;  %v2739_v28 = vmul.f32 %v2482_v36, %v3403_v46  ;;  %v2747_v38 = vadd.f32 %v2727_v7, %v2486_v1  ;;  %v2751_v37 = vadd.f32 %v2727_v7, %v2490_v22  ;;  %v2755_v17 = vadd.f32 %v2727_v7, %v2494_v40 }
 0x2e5   :  { %v2759_v59 = vadd.f32 %v2727_v7, %v2498_v39  ;;  %v2763_v8 = vadd.f32 %v2727_v7, %v2502_v24  ;;  %v2767_v36 = vadd.f32 %v2727_v7, %v2506_v10  ;;  %v2771_v1 = vadd.f32 %v2727_v7, %v2510_v15 }
 0x2e6   :  { %v2775_v22 = vadd.f32 %v2727_v7, %v2514_v26  ;;  %v2779_v40 = vadd.f32 %v2727_v7, %v2518_v33  ;;  %v2783_v39 = vadd.f32 %v2727_v7, %v2522_v44  ;;  %v2787_v24 = vadd.f32 %v2727_v7, %v2526_v51 }
 0x2e7   :  { %v2791_v10 = vadd.f32 %v2727_v7, %v2530_v62  ;;  %v2795_v15 = vadd.f32 %v2727_v7, %v2534_v5  ;;  %v2799_v26 = vadd.f32 %v2727_v7, %v2538_v20  ;;  %v2803_v33 = vadd.f32 %v2727_v7, %v2542_v29 }
 0x2e8   :  { %v2807_v44 = vadd.f32 %v2727_v7, %v2546_v42  ;;  %v2811_v51 = vadd.f32 %v2727_v7, %v2550_v53  ;;  %v2815_v62 = vadd.f32 %v2727_v7, %v2554_v2  ;;  %v2819_v5 = vadd.f32 %v2727_v7, %v2558_v13  ;;  %v3404_v2 = vld [vmem:[#allocation2_spill] sm:$0xff] }
 0x2e9   :  { %v2823_v20 = vadd.f32 %v2727_v7, %v2562_v32  ;;  %v2827_v29 = vadd.f32 %v2727_v7, %v2566_v41  ;;  %v2831_v42 = vadd.f32 %v2727_v7, %v2570_v56  ;;  %v2835_v53 = vadd.f32 %v2727_v7, %v2574_v48 }
 0x2ea   :  { %v2839_v13 = vadd.f32 %v2727_v7, %v3404_v2  ;;  %v2843_v32 = vadd.f32 %v2727_v7, %v3405_v45  ;;  %v2847_v41 = vadd.f32 %v2727_v7, %v2586_v9  ;;  %v2851_v56 = vadd.f32 %v2727_v7, %v2590_v55  ;;  %v3407_v45 = vld [vmem:[#allocation4_spill] sm:$0xff] }
 0x2eb   :  { %v2855_v48 = vadd.f32 %v2727_v7, %v2594_v49  ;;  %v2859_v46 = vadd.f32 %v2727_v7, %v2598_v25  ;;  %v2863_v2 = vadd.f32 %v2727_v7, %v2602_v57  ;;  %v2867_v9 = vadd.f32 %v2727_v7, %v2606_v58 }
 0x2ec   :  { %v2871_v55 = vadd.f32 %v2727_v7, %v2610_v60  ;;  %v2875_v49 = vadd.f32 %v2727_v7, %v2614_v19  ;;  %v2879_v25 = vadd.f32 %v2727_v7, %v2618_v31  ;;  %v2883_v57 = vadd.f32 %v2727_v7, %v2622_v47 }
 0x2ed   :  { %v2887_v58 = vadd.f32 %v2727_v7, %v2626_v4  ;;  %v2891_v60 = vadd.f32 %v2727_v7, %v2630_v23  ;;  %v2895_v19 = vadd.f32 %v2727_v7, %v3407_v45  ;;  %v2899_v31 = vadd.f32 %v2727_v7, %v2638_v16 }
 0x2ee   :  { %v2903_v47 = vadd.f32 %v2727_v7, %v2642_v27  ;;  %v2907_v4 = vadd.f32 %v2727_v7, %v2646_v34  ;;  %v2915_v45 = vadd.f32 %v2727_v7, %v2654_v52  ;;  %v2919_v16 = vadd.f32 %v2727_v7, %v2658_v63 }
 0x2ef   :  { %3406 = vst [vmem:[#allocation11_spill] sm:$0xff] %v2887_v58  ;;  %v3408_v58 = vld [vmem:[#allocation5_spill] sm:$0xff]  ;;  %v2923_v27 = vadd.f32 %v2727_v7, %v2662_v6  ;;  %v2927_v34 = vadd.f32 %v2727_v7, %v2666_v21  ;;  %v2935_v52 = vadd.f32 %v2727_v7, %v2674_v43  ;;  %v2943_v6 = vadd.f32 %v2727_v7, %v2682_v3 }
 0x2f0   :  { %v2911_v23 = vadd.f32 %v2727_v7, %v3408_v58  ;;  %3409 = vst [vmem:[#allocation12_spill] sm:$0xff] %v2915_v45  ;;  %v2931_v58 = vadd.f32 %v2727_v7, %v2670_v30  ;;  %v3412_v45 = vld [vmem:[#allocation6_spill] sm:$0xff]  ;;  %v2947_v21 = vadd.f32 %v2727_v7, %v2686_v14  ;;  %v2951_v30 = vadd.f32 %v2727_v7, %v2690_v35 }
 0x2f1   :  { %3411 = vst [vmem:[#allocation15_spill] sm:$0xff] %v2935_v52  ;;  %v2939_v63 = vadd.f32 %v2727_v7, %v3412_v45  ;;  %3413 = vst [vmem:[#allocation17_spill] sm:$0xff] %v2943_v6  ;;  %v3416_v52 = vld [vmem:[#allocation8_spill] sm:$0xff]  ;;  %v2963_v3 = vadd.f32 %v2727_v7, %v2703_v12  ;;  %v3417_v6 = vld [vmem:[#allocation9_spill] sm:$0xff]  ;;  %v2971_v35 = vadd.f32 %v2727_v7, %v2711_v50 }
 0x2f2   :  { %3410 = vst [vmem:[#allocation13_spill] sm:$0xff] %v2931_v58  ;;  %3414 = vst [vmem:[#allocation19_spill] sm:$0xff] %v2951_v30  ;;  %v3415_v58 = vld [vmem:[#allocation7_spill] sm:$0xff]  ;;  %v2959_v45 = vadd.f32 %v2727_v7, %v3416_v52  ;;  %v2967_v14 = vadd.f32 %v2727_v7, %v3417_v6  ;;  %v3418_v30 = vld [vmem:[#allocation10_spill] sm:$0xff]  ;;  %v2979_v52 = vadd.f32 %v2727_v7, %v2720_v18 }
 0x2f3   :  { %v2955_v43 = vadd.f32 %v2727_v7, %v3415_v58  ;;  %v2975_v58 = vadd.f32 %v2727_v7, %v3418_v30  ;;  %v2983_v12 = vadd.f32 %v2727_v7, %v2724_v11  ;;  %v2987_v6 = vadd.f32 %v2727_v7, %v2731_v0 }
 0x2f4   :  { %3419 = vst [vmem:[#allocation21_spill] sm:$0xff] %v2979_v52  ;;  %v2991_v50 = vadd.f32 %v2727_v7, %v2735_v54  ;;  %v2995_v30 = vadd.f32 %v2727_v7, %v2739_v28  ;;  %v2999_v18 = vadd.f32 %v2727_v7, %v2743_v61  ;;  %v1369_v52 = vmax.f32 %v2747_v38, 0.0 }
 0x2f5   :  { %3420 = vst [vmem:[#allocation23_spill] sm:$0xff] %v2983_v12  ;;  %3421 = vst [vmem:[#allocation14_spill] sm:$0xff] %v2987_v6  ;;  %v1370_v11 = vmax.f32 %v2751_v37, 0.0  ;;  %v1371_v12 = vmax.f32 %v2755_v17, 0.0  ;;  %v1372_v0 = vmax.f32 %v2759_v59, 0.0  ;;  %v1373_v6 = vmax.f32 %v2763_v8, 0.0 }
 0x2f6   :  { %3422 = vst [vmem:[#allocation16_spill] sm:$0xff] %v2991_v50  ;;  %3423 = vst [vmem:[#allocation18_spill] sm:$0xff] %v2995_v30  ;;  %v1374_v54 = vmax.f32 %v2767_v36, 0.0  ;;  %v1375_v50 = vmax.f32 %v2771_v1, 0.0  ;;  %v1376_v28 = vmax.f32 %v2775_v22, 0.0  ;;  %v1377_v30 = vmax.f32 %v2779_v40, 0.0 }
 0x2f7   :  { %v1378_v7 = vmax.f32 %v2783_v39, 0.0  ;;  %v1379_v61 = vmax.f32 %v2787_v24, 0.0  ;;  %v1380_v38 = vmax.f32 %v2791_v10, 0.0  ;;  %1433 = vst.msk [vmem:[%s3325_s4] sm:$0xff] %vm828_vm1, %v1369_v52  ;;  %1434 = vst.msk [vmem:[%s3325_s4 + $0x8] sm:$0xff] %vm828_vm1, %v1370_v11  ;;  %v1381_v37 = vmax.f32 %v2795_v15, 0.0 }
 0x2f8   :  { %1435 = vst.msk [vmem:[%s3325_s4 + $0x10] sm:$0xff] %vm828_vm1, %v1371_v12  ;;  %1436 = vst.msk [vmem:[%s3325_s4 + $0x18] sm:$0xff] %vm828_vm1, %v1372_v0  ;;  %v1382_v17 = vmax.f32 %v2799_v26, 0.0  ;;  %v1383_v59 = vmax.f32 %v2803_v33, 0.0  ;;  %v1384_v8 = vmax.f32 %v2807_v44, 0.0  ;;  %v1385_v36 = vmax.f32 %v2811_v51, 0.0 }
 0x2f9   :  { %1437 = vst.msk [vmem:[%s3325_s4 + $0x20] sm:$0xff] %vm828_vm1, %v1373_v6  ;;  %1438 = vst.msk [vmem:[%s3325_s4 + $0x28] sm:$0xff] %vm828_vm1, %v1374_v54  ;;  %v1386_v1 = vmax.f32 %v2815_v62, 0.0  ;;  %v1387_v22 = vmax.f32 %v2819_v5, 0.0  ;;  %v1388_v40 = vmax.f32 %v2823_v20, 0.0  ;;  %v1389_v39 = vmax.f32 %v2827_v29, 0.0 }
 0x2fa   :  { %1439 = vst.msk [vmem:[%s3325_s4 + $0x30] sm:$0xff] %vm828_vm1, %v1375_v50  ;;  %1440 = vst.msk [vmem:[%s3325_s4 + $0x38] sm:$0xff] %vm828_vm1, %v1376_v28  ;;  %v1390_v24 = vmax.f32 %v2831_v42, 0.0  ;;  %v1391_v10 = vmax.f32 %v2835_v53, 0.0  ;;  %v1392_v15 = vmax.f32 %v2839_v13, 0.0  ;;  %v1393_v26 = vmax.f32 %v2843_v32, 0.0 }
 0x2fb   :  { %1441 = vst.msk [vmem:[%s3325_s4 + $0x40] sm:$0xff] %vm828_vm1, %v1377_v30  ;;  %1442 = vst.msk [vmem:[%s3325_s4 + $0x48] sm:$0xff] %vm828_vm1, %v1378_v7  ;;  %v1394_v33 = vmax.f32 %v2847_v41, 0.0  ;;  %v1395_v44 = vmax.f32 %v2851_v56, 0.0  ;;  %v1396_v51 = vmax.f32 %v2855_v48, 0.0  ;;  %v1397_v62 = vmax.f32 %v2859_v46, 0.0 }
 0x2fc   :  { %1443 = vst.msk [vmem:[%s3325_s4 + $0x50] sm:$0xff] %vm828_vm1, %v1379_v61  ;;  %1444 = vst.msk [vmem:[%s3325_s4 + $0x58] sm:$0xff] %vm828_vm1, %v1380_v38  ;;  %v1398_v5 = vmax.f32 %v2863_v2, 0.0  ;;  %v1399_v20 = vmax.f32 %v2867_v9, 0.0  ;;  %v1400_v29 = vmax.f32 %v2871_v55, 0.0  ;;  %v1401_v42 = vmax.f32 %v2875_v49, 0.0 }
 0x2fd   :  { %1445 = vst.msk [vmem:[%s3325_s4 + $0x60] sm:$0xff] %vm828_vm1, %v1381_v37  ;;  %1446 = vst.msk [vmem:[%s3325_s4 + $0x68] sm:$0xff] %vm828_vm1, %v1382_v17  ;;  %v1402_v53 = vmax.f32 %v2879_v25, 0.0  ;;  %v1403_v13 = vmax.f32 %v2883_v57, 0.0  ;;  %v3424_v32 = vld [vmem:[#allocation11_spill] sm:$0xff]  ;;  %v1405_v56 = vmax.f32 %v2891_v60, 0.0 }
 0x2fe   :  { %1447 = vst.msk [vmem:[%s3325_s4 + $0x70] sm:$0xff] %vm828_vm1, %v1383_v59  ;;  %1448 = vst.msk [vmem:[%s3325_s4 + $0x78] sm:$0xff] %vm828_vm1, %v1384_v8  ;;  %v1404_v41 = vmax.f32 %v3424_v32, 0.0  ;;  %v1406_v48 = vmax.f32 %v2895_v19, 0.0  ;;  %v1407_v46 = vmax.f32 %v2899_v31, 0.0  ;;  %v1408_v2 = vmax.f32 %v2903_v47, 0.0 }
 0x2ff   :  { %1449 = vst.msk [vmem:[%s3325_s4 + $0x80] sm:$0xff] %vm828_vm1, %v1385_v36  ;;  %1450 = vst.msk [vmem:[%s3325_s4 + $0x88] sm:$0xff] %vm828_vm1, %v1386_v1  ;;  %v1409_v9 = vmax.f32 %v2907_v4, 0.0  ;;  %v1410_v55 = vmax.f32 %v2911_v23, 0.0  ;;  %v3425_v49 = vld [vmem:[#allocation12_spill] sm:$0xff]  ;;  %v1412_v57 = vmax.f32 %v2919_v16, 0.0 }
 0x300   :  { %1451 = vst.msk [vmem:[%s3325_s4 + $0x90] sm:$0xff] %vm828_vm1, %v1387_v22  ;;  %1452 = vst.msk [vmem:[%s3325_s4 + $0x98] sm:$0xff] %vm828_vm1, %v1388_v40  ;;  %v1411_v25 = vmax.f32 %v3425_v49, 0.0  ;;  %v1413_v60 = vmax.f32 %v2923_v27, 0.0  ;;  %v1414_v19 = vmax.f32 %v2927_v34, 0.0  ;;  %v3426_v31 = vld [vmem:[#allocation13_spill] sm:$0xff] }
 0x301   :  { %1453 = vst.msk [vmem:[%s3325_s4 + $0xa0] sm:$0xff] %vm828_vm1, %v1389_v39  ;;  %1454 = vst.msk [vmem:[%s3325_s4 + $0xa8] sm:$0xff] %vm828_vm1, %v1390_v24  ;;  %v1415_v47 = vmax.f32 %v3426_v31, 0.0  ;;  %v3427_v4 = vld [vmem:[#allocation15_spill] sm:$0xff]  ;;  %v1417_v16 = vmax.f32 %v2939_v63, 0.0  ;;  %v3428_v27 = vld [vmem:[#allocation17_spill] sm:$0xff] }
 0x302   :  { %1455 = vst.msk [vmem:[%s3325_s4 + $0xb0] sm:$0xff] %vm828_vm1, %v1391_v10  ;;  %1456 = vst.msk [vmem:[%s3325_s4 + $0xb8] sm:$0xff] %vm828_vm1, %v1392_v15  ;;  %v1416_v23 = vmax.f32 %v3427_v4, 0.0  ;;  %v1418_v34 = vmax.f32 %v3428_v27, 0.0  ;;  %v1419_v52 = vmax.f32 %v2947_v21, 0.0  ;;  %v3429_v12 = vld [vmem:[#allocation19_spill] sm:$0xff] }
 0x303   :  { %1457 = vst.msk [vmem:[%s3325_s4 + $0xc0] sm:$0xff] %vm828_vm1, %v1393_v26  ;;  %1458 = vst.msk [vmem:[%s3325_s4 + $0xc8] sm:$0xff] %vm828_vm1, %v1394_v33  ;;  %v1420_v6 = vmax.f32 %v3429_v12, 0.0  ;;  %v1421_v63 = vmax.f32 %v2955_v43, 0.0  ;;  %v1422_v21 = vmax.f32 %v2959_v45, 0.0  ;;  %v1423_v50 = vmax.f32 %v2963_v3, 0.0 }
 0x304   :  { %1459 = vst.msk [vmem:[%s3325_s4 + $0xd0] sm:$0xff] %vm828_vm1, %v1395_v44  ;;  %1460 = vst.msk [vmem:[%s3325_s4 + $0xd8] sm:$0xff] %vm828_vm1, %v1396_v51  ;;  %v1424_v30 = vmax.f32 %v2967_v14, 0.0  ;;  %v1425_v43 = vmax.f32 %v2971_v35, 0.0  ;;  %v1426_v45 = vmax.f32 %v2975_v58, 0.0  ;;  %v3430_v3 = vld [vmem:[#allocation21_spill] sm:$0xff] }
 0x305   :  { %1461 = vst.msk [vmem:[%s3325_s4 + $0xe0] sm:$0xff] %vm828_vm1, %v1397_v62  ;;  %1462 = vst.msk [vmem:[%s3325_s4 + $0xe8] sm:$0xff] %vm828_vm1, %v1398_v5  ;;  %v1427_v14 = vmax.f32 %v3430_v3, 0.0  ;;  %v3431_v11 = vld [vmem:[#allocation23_spill] sm:$0xff]  ;;  %v3432_v35 = vld [vmem:[#allocation14_spill] sm:$0xff]  ;;  %v1432_v38 = vmax.f32 %v2999_v18, 0.0 }
 0x306   :  { %1463 = vst.msk [vmem:[%s3325_s4 + $0xf0] sm:$0xff] %vm828_vm1, %v1399_v20  ;;  %1464 = vst.msk [vmem:[%s3325_s4 + $0xf8] sm:$0xff] %vm828_vm1, %v1400_v29  ;;  %v1428_v0 = vmax.f32 %v3431_v11, 0.0  ;;  %v1429_v58 = vmax.f32 %v3432_v35, 0.0  ;;  %v3433_v54 = vld [vmem:[#allocation16_spill] sm:$0xff]  ;;  %v3434_v7 = vld [vmem:[#allocation18_spill] sm:$0xff] }
 0x307   :  { %1465 = vst.msk [vmem:[%s3325_s4 + $0x100] sm:$0xff] %vm828_vm1, %v1401_v42  ;;  %1466 = vst.msk [vmem:[%s3325_s4 + $0x108] sm:$0xff] %vm828_vm1, %v1402_v53  ;;  %v1430_v28 = vmax.f32 %v3433_v54, 0.0  ;;  %v1431_v61 = vmax.f32 %v3434_v7, 0.0 }
 0x308   :  { %1467 = vst.msk [vmem:[%s3325_s4 + $0x110] sm:$0xff] %vm828_vm1, %v1403_v13  ;;  %1468 = vst.msk [vmem:[%s3325_s4 + $0x118] sm:$0xff] %vm828_vm1, %v1404_v41 }
 0x309   :  { %1469 = vst.msk [vmem:[%s3325_s4 + $0x120] sm:$0xff] %vm828_vm1, %v1405_v56  ;;  %1470 = vst.msk [vmem:[%s3325_s4 + $0x128] sm:$0xff] %vm828_vm1, %v1406_v48 }
 0x30a   :  { %1471 = vst.msk [vmem:[%s3325_s4 + $0x130] sm:$0xff] %vm828_vm1, %v1407_v46  ;;  %1472 = vst.msk [vmem:[%s3325_s4 + $0x138] sm:$0xff] %vm828_vm1, %v1408_v2 }
 0x30b   :  { %1473 = vst.msk [vmem:[%s3325_s4 + $0x140] sm:$0xff] %vm828_vm1, %v1409_v9  ;;  %1474 = vst.msk [vmem:[%s3325_s4 + $0x148] sm:$0xff] %vm828_vm1, %v1410_v55 }
 0x30c   :  { %1475 = vst.msk [vmem:[%s3325_s4 + $0x150] sm:$0xff] %vm828_vm1, %v1411_v25  ;;  %1476 = vst.msk [vmem:[%s3325_s4 + $0x158] sm:$0xff] %vm828_vm1, %v1412_v57 }
 0x30d   :  { %1477 = vst.msk [vmem:[%s3325_s4 + $0x160] sm:$0xff] %vm828_vm1, %v1413_v60  ;;  %1478 = vst.msk [vmem:[%s3325_s4 + $0x168] sm:$0xff] %vm828_vm1, %v1414_v19 }
 0x30e   :  { %1479 = vst.msk [vmem:[%s3325_s4 + $0x170] sm:$0xff] %vm828_vm1, %v1415_v47  ;;  %1480 = vst.msk [vmem:[%s3325_s4 + $0x178] sm:$0xff] %vm828_vm1, %v1416_v23 }
 0x30f   :  { %1481 = vst.msk [vmem:[%s3325_s4 + $0x180] sm:$0xff] %vm828_vm1, %v1417_v16  ;;  %1482 = vst.msk [vmem:[%s3325_s4 + $0x188] sm:$0xff] %vm828_vm1, %v1418_v34 }
 0x310   :  { %1483 = vst.msk [vmem:[%s3325_s4 + $0x190] sm:$0xff] %vm828_vm1, %v1419_v52  ;;  %1484 = vst.msk [vmem:[%s3325_s4 + $0x198] sm:$0xff] %vm828_vm1, %v1420_v6 }
 0x311   :  { %1485 = vst.msk [vmem:[%s3325_s4 + $0x1a0] sm:$0xff] %vm828_vm1, %v1421_v63  ;;  %1486 = vst.msk [vmem:[%s3325_s4 + $0x1a8] sm:$0xff] %vm828_vm1, %v1422_v21 }
 0x312   :  { %1487 = vst.msk [vmem:[%s3325_s4 + $0x1b0] sm:$0xff] %vm828_vm1, %v1423_v50  ;;  %1488 = vst.msk [vmem:[%s3325_s4 + $0x1b8] sm:$0xff] %vm828_vm1, %v1424_v30 }
 0x313   :  { %1489 = vst.msk [vmem:[%s3325_s4 + $0x1c0] sm:$0xff] %vm828_vm1, %v1425_v43  ;;  %1490 = vst.msk [vmem:[%s3325_s4 + $0x1c8] sm:$0xff] %vm828_vm1, %v1426_v45 }
 0x314   :  { %1491 = vst.msk [vmem:[%s3325_s4 + $0x1d0] sm:$0xff] %vm828_vm1, %v1427_v14  ;;  %1492 = vst.msk [vmem:[%s3325_s4 + $0x1d8] sm:$0xff] %vm828_vm1, %v1428_v0 }
 0x315   :  { %1493 = vst.msk [vmem:[%s3325_s4 + $0x1e0] sm:$0xff] %vm828_vm1, %v1429_v58  ;;  %1494 = vst.msk [vmem:[%s3325_s4 + $0x1e8] sm:$0xff] %vm828_vm1, %v1430_v28 }
 0x316   :  { %1495 = vst.msk [vmem:[%s3325_s4 + $0x1f0] sm:$0xff] %vm828_vm1, %v1431_v61  ;;  %1496 = vst.msk [vmem:[%s3325_s4 + $0x1f8] sm:$0xff] %vm828_vm1, %v1432_v38 }

// kernel: generator_forward.9
= control target key start
LH: loop header
LB: loop body
LE: loop exit
PB: predicated region body
PF: predicated region fallthrough
CT: control target
= control target key end

     0   :  { %s723_s12 = smov 0   ;;  %s725_s13 = smov 0   ;;  %s854_s0 = inlined_call_operand.vmem [shape: bf16[12,72], index: 0, kind: input, shape index: {}]   ;;  %s855_s1 = inlined_call_operand.vmem [shape: bf16[72,2048], index: 1, kind: input, shape index: {}]   ;;  %s856_s2 = inlined_call_operand.vmem [shape: f32[12,1], index: 2, kind: input, shape index: {}]   ;;  %s857_s3 = inlined_call_operand.vmem [shape: f32[12,2048], index: 3, kind: output, shape index: {}]  }
   0x1   :  { %s727_s14 = smov 0  }
   0x2 LB: > { %s565_s15 = sadd.s32 4294967295, %s700_s14   ;;  %s740_s16 = sadd.s32 1, %s700_s14   ;;  %s700_s14 = sphi %s727_s14, %s861_s14   ;;  %s696_s13 = sphi %s725_s13, %s860_s13   ;;  %s692_s12 = sphi %s723_s12, %s859_s12  }
   0x3   : > { %s38_s17 = ssub.s32 %s700_s14, %s740_s16  ;;  %s41_s18 = sadd.s32 1, %s696_s13 }
   0x4   : > { %p39_p0 = scmp.eq.s32.totalorder %s38_s17, 0  ;;  %p48_p1 = scmp.ne.s32.totalorder %s696_s13, %s692_s12 }
   0x5   : > { %p49_p2 = scmp.eq.s32.totalorder %s700_s14, 0  ;;  %p99_p3 = scmp.eq.s32.totalorder %s565_s15, 3 }
   0x6   : > { %s751_s19 = scalar_select %p39_p0, %s696_s13, %s41_s18  }
   0x7   : > { %p50_p4 = por %p49_p2, %p48_p1  ;;  %p753_p5 = por %p99_p3, %p48_p1 }
   0x8   : > { %p568_p6 = scmp.ge.s32.totalorder %s700_s14, 4 }
   0xa   : > { %127 = sbr.rel (%p568_p6) target bundleno = 30 (0x1e), region = 24 }
  0x11   : > { %130 = sbr.rel (!%p50_p4) target bundleno = 30 (0x1e), region = 28  ;;  %s132_s21 = sand.u32 (%p50_p4), 1, %s696_s13  }
  0x12   : > { %s603_s22 = sshll.u32 (%p50_p4), %s700_s14, 4  ;;  %s605_s23 = smul.u32 (%p50_p4), 144, %s132_s21 }
  0x13   : > { %s763_s26 = scalar_lea.vmem (%p50_p4), %s855_s1, %s603_s22 }
  0x14   : > { %v150_v0 = vld [vmem:[%s763_s26] sm:$0xff] (%p50_p4)  ;;  %v152_v1 = vld [vmem:[%s763_s26 + $0x8] sm:$0xff] (%p50_p4)  ;;  %s134_s27 = scalar_lea.vmem (%p50_p4), [#allocation2], %s605_s23 }
  0x15   : > { %v154_v2 = vld [vmem:[%s763_s26 + $0x40] sm:$0xff] (%p50_p4)  ;;  %v156_v3 = vld [vmem:[%s763_s26 + $0x48] sm:$0xff] (%p50_p4)  ;;  %151 = vst [vmem:[%s134_s27] sm:$0xff] (%p50_p4), %v150_v0  ;;  %153 = vst [vmem:[%s134_s27 + $0x8] sm:$0xff] (%p50_p4), %v152_v1 }
  0x16   : > { %v158_v4 = vld [vmem:[%s763_s26 + $0x80] sm:$0xff] (%p50_p4)  ;;  %v160_v5 = vld [vmem:[%s763_s26 + $0x88] sm:$0xff] (%p50_p4)  ;;  %155 = vst [vmem:[%s134_s27 + $0x10] sm:$0xff] (%p50_p4), %v154_v2  ;;  %157 = vst [vmem:[%s134_s27 + $0x18] sm:$0xff] (%p50_p4), %v156_v3 }
  0x17   : > { %159 = vst [vmem:[%s134_s27 + $0x20] sm:$0xff] (%p50_p4), %v158_v4  ;;  %161 = vst [vmem:[%s134_s27 + $0x28] sm:$0xff] (%p50_p4), %v160_v5  ;;  %v162_v6 = vld [vmem:[%s763_s26 + $0xc0] sm:$0xff] (%p50_p4)  ;;  %v164_v7 = vld [vmem:[%s763_s26 + $0xc8] sm:$0xff] (%p50_p4) }
  0x18   : > { %v166_v8 = vld [vmem:[%s763_s26 + $0x100] sm:$0xff]  ;;  %163 = vst [vmem:[%s134_s27 + $0x30] sm:$0xff] %v162_v6  ;;  %165 = vst [vmem:[%s134_s27 + $0x38] sm:$0xff] %v164_v7  ;;  %v168_v9 = vld [vmem:[%s763_s26 + $0x108] sm:$0xff] }
  0x19   : > { %167 = vst [vmem:[%s134_s27 + $0x40] sm:$0xff] %v166_v8  ;;  %v170_v10 = vld [vmem:[%s763_s26 + $0x140] sm:$0xff]  ;;  %v172_v11 = vld [vmem:[%s763_s26 + $0x148] sm:$0xff]  ;;  %169 = vst [vmem:[%s134_s27 + $0x48] sm:$0xff] %v168_v9 }
  0x1a   : > { %171 = vst [vmem:[%s134_s27 + $0x50] sm:$0xff] %v170_v10  ;;  %173 = vst [vmem:[%s134_s27 + $0x58] sm:$0xff] %v172_v11  ;;  %v174_v12 = vld [vmem:[%s763_s26 + $0x180] sm:$0xff]  ;;  %v176_v13 = vld [vmem:[%s763_s26 + $0x188] sm:$0xff] }
  0x1b   : > { %v178_v14 = vld [vmem:[%s763_s26 + $0x1c0] sm:$0xff]  ;;  %175 = vst [vmem:[%s134_s27 + $0x60] sm:$0xff] %v174_v12  ;;  %177 = vst [vmem:[%s134_s27 + $0x68] sm:$0xff] %v176_v13  ;;  %v180_v15 = vld [vmem:[%s763_s26 + $0x1c8] sm:$0xff] }
  0x1c   : > { %179 = vst [vmem:[%s134_s27 + $0x70] sm:$0xff] %v178_v14  ;;  %v182_v16 = vld [vmem:[%s763_s26 + $0x200] sm:$0xff]  ;;  %v184_v17 = vld [vmem:[%s763_s26 + $0x208] sm:$0xff]  ;;  %181 = vst [vmem:[%s134_s27 + $0x78] sm:$0xff] %v180_v15 }
  0x1d   : > { %183 = vst [vmem:[%s134_s27 + $0x80] sm:$0xff] %v182_v16  ;;  %185 = vst [vmem:[%s134_s27 + $0x88] sm:$0xff] %v184_v17 }
  0x1e PF: > { %p571_p7 = scmp.ge.s32.totalorder %s700_s14, 1  ;;  %p190_p8 = scmp.lt.s32.totalorder %s700_s14, 5 }
  0x20   : > { %p191_p9 = pnand %p571_p7, %p190_p8 }
  0x21   : > { %s197_s28 = sand.u32 (!%p191_p9), 1, %s692_s12   ;;  %v702_v18 = vmov (!%p191_p9), 0   ;;  %v242_v19 = vld [vmem:[%s856_s2] sm:$0xff] (!%p191_p9)  ;;  %v243_v20 = vld [vmem:[%s856_s2 + $0x8] sm:$0xf] (!%p191_p9)  ;;  %vm353_vm0 = vcmask (!%p191_p9), 1043456  }
  0x22   : > { %194 = sbr.rel (%p191_p9) target bundleno = 300 (0x12c), region = 51  ;;  %398 = vmatprep.mubr.bf16.mxu0 (!%p191_p9), %v702_v18  ;;  %441 = vmatprep.mubr.bf16.mxu1 (!%p191_p9), %v702_v18  ;;  %v661_v45 = vld [vmem:[%s854_s0] sm:$0x3f] (!%p191_p9)   ;;  %vm349_vm1 = vcmask (!%p191_p9), 588800   ;;  %s572_s10 = sshll.u32 (!%p191_p9), %s197_s28, 6 }
  0x23   : > { %s606_s29 = smul.u32 (!%p191_p9), 144, %s197_s28  ;;  %632 = vset.pattern.permute.xlu0 (!%p191_p9), %v702_v18  ;;  %s819_s11 = scalar_lea.vmem (!%p191_p9), [#allocation3], %s572_s10 }
  0x24   : > { %246 = vperm.xlu0 (!%p191_p9), %632, %v242_v19  }
  0x25   : > { %s794_s7 = scalar_lea.vmem (!%p191_p9), [#allocation2], %s606_s29 }
  0x26   : > { %v633_v21 = vld [vmem:[%s794_s7 + $0x4] ss:$16 sps:$4 sm:$0xff] (!%p191_p9)   ;;  %v635_v22 = vld [vmem:[%s794_s7 + $0xc] ss:$16 sps:$4 sm:$0xff] (!%p191_p9)   ;;  %v637_v23 = vld [vmem:[%s794_s7] ss:$16 sps:$4 sm:$0xff] (!%p191_p9)  }
  0x27   : > { %366 = vmatprep.subr.bf16.mxu0 (!%p191_p9), %v633_v21  ;;  %v638_v24 = vld [vmem:[%s794_s7 + $0x8] ss:$16 sps:$4 sm:$0xff] (!%p191_p9)   ;;  %409 = vmatprep.subr.bf16.mxu1 (!%p191_p9), %v635_v22  ;;  %v639_v25 = vld [vmem:[%s794_s7 + $0x24] ss:$16 sps:$4 sm:$0xff] (!%p191_p9)   ;;  %v641_v26 = vld [vmem:[%s794_s7 + $0x2c] ss:$16 sps:$4 sm:$0xff] (!%p191_p9)  }
  0x28   : > { %251 = vperm.xlu0 (!%p191_p9), %632, %v243_v20   ;;  %367 = vmatpush1.bf16.msra.mxu0 (!%p191_p9), %v637_v23  ;;  %v643_v27 = vld [vmem:[%s794_s7 + $0x20] ss:$16 sps:$4 sm:$0xff] (!%p191_p9)   ;;  %v644_v28 = vld [vmem:[%s794_s7 + $0x28] ss:$16 sps:$4 sm:$0xff] (!%p191_p9)   ;;  %v645_v29 = vld [vmem:[%s794_s7 + $0x44] ss:$16 sps:$4 sm:$0xff] (!%p191_p9)  }
  0x29   : > { %410 = vmatpush1.bf16.msra.mxu1 %v638_v24  ;;  %368 = vmatprep.subr.bf16.mxu0 %v639_v25  ;;  %v647_v30 = vld [vmem:[%s794_s7 + $0x4c] ss:$16 sps:$4 sm:$0xff]   ;;  %v649_v31 = vld [vmem:[%s794_s7 + $0x40] ss:$16 sps:$4 sm:$0xff]   ;;  %v650_v32 = vld [vmem:[%s794_s7 + $0x48] ss:$16 sps:$4 sm:$0xff]  }
  0x2a   : > { %411 = vmatprep.subr.bf16.mxu1 %v641_v26  ;;  %v651_v33 = vld [vmem:[%s794_s7 + $0x64] ss:$16 sps:$4 sm:$0xff]   ;;  %v653_v34 = vld [vmem:[%s794_s7 + $0x6c] ss:$16 sps:$4 sm:$0xff]   ;;  %v655_v37 = vld [vmem:[%s794_s7 + $0x60] ss:$16 sps:$4 sm:$0xff]  }
  0x2b   : > { %v240_v35 = vld [vmem:[%s794_s7 + $0x80] sm:$0xff]  ;;  %v241_v36 = vld [vmem:[%s794_s7 + $0x88] sm:$0xff]  ;;  %s604_s12 = sshll.u32 (%p753_p5), %s565_s15, 5 }
  0x2c   : > { %369 = vmatpush1.bf16.msra.mxu0 %v643_v27  ;;  %v656_v38 = vld [vmem:[%s794_s7 + $0x68] ss:$16 sps:$4 sm:$0xff]   ;;  %v591_v39 = vcombine.high %v240_v35, %v240_v35  ;;  %v593_v40 = vcombine.high %v241_v36, %v241_v36  ;;  %v590_v41 = vcombine.low %v240_v35, %v240_v35  ;;  %v592_v42 = vcombine.low %v241_v36, %v241_v36  ;;  %s477_s21 = scalar_lea.vmem (%p753_p5), %s857_s3, %s604_s12 }
  0x2d   : > { %412 = vmatpush1.bf16.msra.mxu1 %v644_v28  ;;  %370 = vmatprep.subr.bf16.mxu0 %v645_v29 }
  0x2e   : > { %413 = vmatprep.subr.bf16.mxu1 %v647_v30  ;;  %v355_v43 = vsel %vm353_vm0, %v590_v41, 0  ;;  %v361_v44 = vsel %vm353_vm0, %v592_v42, 0 }
  0x30   : > { %371 = vmatpush1.bf16.msra.mxu0 %v649_v31 }
  0x31   : > { %414 = vmatpush1.bf16.msra.mxu1 %v650_v32  ;;  %372 = vmatprep.subr.bf16.mxu0 %v651_v33 }
  0x32   : > { %415 = vmatprep.subr.bf16.mxu1 %v653_v34 }
  0x34   : > { %373 = vmatpush1.bf16.msra.mxu0 %v655_v37 }
  0x35   : > { %416 = vmatpush1.bf16.msra.mxu1 %v656_v38  ;;  %594 = vmatprep.subr.msk.bf16.mxu0 %vm353_vm0, %v591_v39 }
  0x36   : > { %596 = vmatprep.subr.msk.bf16.mxu1 %vm353_vm0, %v593_v40 }
  0x38   : > { %375 = vmatpush1.bf16.msra.mxu0 %v355_v43 }
  0x39   : > { %418 = vmatpush1.bf16.msra.mxu1 %v361_v44 }
  0x3b   : > { %595 = vmatmul.mubr.msk.bf16.vlgmr.msra.gmra.mrb[0].mxu0 %vm349_vm1, %v661_v45 }
  0x3c   : > { %597 = vmatmul.mubr.msk.bf16.vlgmr.msra.gmra.mrb[0].mxu1 %vm349_vm1, %v661_v45 }
  0xa3   : > { %v247_v46 = vpop.permute.xlu0 %246 }
  0xa7   : > { %v252_v47 = vpop.permute.xlu0 %251 }
 0x10e   : > { %v400_v48 = vpop.f32.mrb[0].mxu0 }
 0x10f   : > { %v443_v49 = vpop.f32.mrb[0].mxu1  ;;  %v401_v50 = vadd.f32 %v400_v48, %v247_v46  ;;  %v402_v52 = vpop.f32.mrb[1].mxu0 }
 0x110   : > { %v444_v51 = vadd.f32 %v443_v49, %v247_v46  ;;  %v445_v53 = vpop.f32.mrb[1].mxu1  ;;  %v403_v54 = vadd.f32 %v402_v52, %v247_v46  ;;  %v404_v56 = vpop.f32.mrb[2].mxu0 }
 0x111   : > { %v446_v55 = vadd.f32 %v445_v53, %v247_v46  ;;  %v447_v57 = vpop.f32.mrb[2].mxu1  ;;  %662 = vtanh.f32 %v401_v50  ;;  %v405_v58 = vadd.f32 %v404_v56, %v252_v47  ;;  %v406_v59 = vpop.f32.mrb[3].mxu0 }
 0x112   : > { %v449_v60 = vpop.f32.mrb[3].mxu1  ;;  %664 = vtanh.f32 %v444_v51  ;;  %v448_v61 = vadd.f32 %v447_v57, %v252_v47  ;;  %v407_v62 = vadd.f32 %v406_v59, %v252_v47 }
 0x113   : > { %666 = vtanh.f32 %v403_v54  ;;  %v450_v63 = vadd.f32 %v449_v60, %v252_v47 }
 0x114   : > { %668 = vtanh.f32 %v446_v55 }
 0x115   : > { %670 = vtanh.f32 %v405_v58 }
 0x116   : > { %672 = vtanh.f32 %v448_v61 }
 0x117   : > { %674 = vtanh.f32 %v407_v62 }
 0x118   : > { %676 = vtanh.f32 %v450_v63 }
 0x11b   : > { %v663_v0 = vpop.eup %662 }
 0x11c   : > { %v665_v1 = vpop.eup %664  ;;  %460 = vst [vmem:[%s819_s11] sm:$0xff] %v663_v0 }
 0x11d   : > { %v667_v2 = vpop.eup %666  ;;  %462 = vst [vmem:[%s819_s11 + $0x10] sm:$0xff] %v665_v1  ;;  %474 = sbr.rel (!%p753_p5) target bundleno = 300 (0x12c), region = 59 }
 0x11e   : > { %v669_v3 = vpop.eup %668  ;;  %461 = vst [vmem:[%s819_s11 + $0x8] sm:$0xff] %v667_v2 }
 0x11f   : > { %v671_v4 = vpop.eup %670  ;;  %463 = vst [vmem:[%s819_s11 + $0x18] sm:$0xff] %v669_v3 }
 0x120   : > { %v673_v5 = vpop.eup %672  ;;  %464 = vst [vmem:[%s819_s11 + $0x20] sm:$0xf] %v671_v4 }
 0x121   : > { %v675_v6 = vpop.eup %674  ;;  %466 = vst [vmem:[%s819_s11 + $0x30] sm:$0xf] %v673_v5 }
 0x122   : > { %v677_v7 = vpop.eup %676  ;;  %465 = vst [vmem:[%s819_s11 + $0x28] sm:$0xf] %v675_v6 }
 0x123   : > { %467 = vst [vmem:[%s819_s11 + $0x38] sm:$0xf] %v677_v7  ;;  %v490_v8 = vld [vmem:[%s819_s11] sm:$0xff] (%p753_p5) }
 0x124   : > { %v494_v10 = vld [vmem:[%s819_s11 + $0x10] sm:$0xff]  ;;  %491 = vst [vmem:[%s477_s21] sm:$0xff] %v490_v8 }
 0x125   : > { %v492_v9 = vld [vmem:[%s819_s11 + $0x8] sm:$0xff]  ;;  %495 = vst [vmem:[%s477_s21 + $0x10] sm:$0xff] %v494_v10 }
 0x126   : > { %v496_v11 = vld [vmem:[%s819_s11 + $0x18] sm:$0xff]  ;;  %493 = vst [vmem:[%s477_s21 + $0x8] sm:$0xff] %v492_v9 }
 0x127   : > { %v498_v12 = vld [vmem:[%s819_s11 + $0x20] sm:$0xff]  ;;  %497 = vst [vmem:[%s477_s21 + $0x18] sm:$0xff] %v496_v11 }
 0x128   : > { %499 = vst [vmem:[%s477_s21 + $0x80] sm:$0xff] %v498_v12  ;;  %v502_v14 = vld [vmem:[%s819_s11 + $0x30] sm:$0xff] }
 0x129   : > { %v500_v13 = vld [vmem:[%s819_s11 + $0x28] sm:$0xff]  ;;  %503 = vst [vmem:[%s477_s21 + $0x90] sm:$0xff] %v502_v14 }
 0x12a   : > { %501 = vst [vmem:[%s477_s21 + $0x88] sm:$0xff] %v500_v13  ;;  %v504_v15 = vld [vmem:[%s819_s11 + $0x38] sm:$0xff] }
 0x12b   : > { %505 = vst [vmem:[%s477_s21 + $0x98] sm:$0xff] %v504_v15 }
 0x12c PF: > { %p10_p10 = scmp.ge.s32.totalorder %s740_s16, 6   ;;  %s859_s12 = smov %s696_s13 }
 0x12d   : > { %s860_s13 = smov %s751_s19  ;;  %s861_s14 = smov %s740_s16 }
 0x12e   :  { %12 = sbr.rel (!%p10_p10) target bundleno = 2 (0x2), region = 113 }

</bundles_post_ra>
